<compile_context>
chip_gen: v5e
topology: v5e:2x2
jax: 0.10.0
libtpu: 0.0.40
codegen_flags: <defaults>
</compile_context>

<pallas_src>
import math
import functools
import numpy as np

import jax
import jax.numpy as jnp
from jax.experimental import pallas as pl
from jax.experimental.pallas import tpu as pltpu


NEG_INF = -1e9


# ----------------------------------------------------------------------------- in-kernel helpers

def _mm(x_f32, w_bf16, bias_f32=None, activation=None):
    """bf16 MXU matmul with f32 accumulation: (M, K) @ (K, N) + bias."""
    y = jax.lax.dot_general(
        x_f32.astype(jnp.bfloat16), w_bf16,
        (((1,), (0,)), ((), ())), preferred_element_type=jnp.float32)
    if bias_f32 is not None:
        y = y + bias_f32
    if activation == "relu":
        y = jnp.maximum(y, 0.0)
    return y


def _layer_norm(x_f32, g, b, eps):
    mean = jnp.mean(x_f32, axis=-1, keepdims=True)
    c = x_f32 - mean
    var = jnp.mean(c * c, axis=-1, keepdims=True)
    return c * jax.lax.rsqrt(var + eps) * g + b


def _sdpa_head(q_h, k_h, v_h, add_mask, scale):
    """Single-head scaled-dot-product attention with an additive mask."""
    s = jax.lax.dot_general(
        q_h.astype(jnp.bfloat16), k_h.astype(jnp.bfloat16),
        (((1,), (1,)), ((), ())), preferred_element_type=jnp.float32)
    s = s * scale + add_mask                      # additive mask (0 / -1e9), f32
    s = s - jnp.max(s, axis=-1, keepdims=True)
    e = jnp.exp(s)
    p = e * pl.reciprocal(jnp.sum(e, axis=-1, keepdims=True), approx=True)
    ctx = jax.lax.dot_general(
        p.astype(jnp.bfloat16), v_h.astype(jnp.bfloat16),
        (((1,), (0,)), ((), ())), preferred_element_type=jnp.float32)
    return ctx, p


# ----------------------------------------------------------------------------- fused decoder layer kernel

def _decoder_layer_kernel(*refs, n_head, eps, emit_attn):
    (x_ref, enc_ref, tmask_ref, emask_ref,
     sa_wqkv_ref, sa_bqkv_ref, sa_wo_ref, sa_bo_ref,
     ea_wq_ref, ea_bq_ref, ea_wkv_ref, ea_bkv_ref, ea_wo_ref, ea_bo_ref,
     w1_ref, b1_ref, w2_ref, b2_ref, ln_g_ref, ln_b_ref) = refs[:20]
    out_ref = refs[20]
    attn_ref = refs[21] if emit_attn else None

    D = x_ref.shape[2]
    dh = D // n_head
    scale = 1.0 / math.sqrt(dh)

    x = x_ref[0]                 # (St, D) f32
    enc = enc_ref[0]             # (Ss, D) f32
    tmask = tmask_ref[0]         # (St, St) additive f32
    emask = emask_ref[0]         # (St, Ss) additive f32
    g = ln_g_ref[...]            # (1, D)
    b = ln_b_ref[...]            # (1, D)

    # ---- masked self-attention (fused QKV projection) -------------------
    qkv = _mm(x, sa_wqkv_ref[...], sa_bqkv_ref[...])          # (St, 3D)
    ctx_cols = []
    for h in range(n_head):
        q_h = qkv[:, h * dh:(h + 1) * dh]
        k_h = qkv[:, D + h * dh:D + (h + 1) * dh]
        v_h = qkv[:, 2 * D + h * dh:2 * D + (h + 1) * dh]
        ctx_h, _ = _sdpa_head(q_h, k_h, v_h, tmask, scale)
        ctx_cols.append(ctx_h)
    sa_ctx = jnp.concatenate(ctx_cols, axis=-1)                # (St, D)
    sa_out = _mm(sa_ctx, sa_wo_ref[...], sa_bo_ref[...])
    out1 = x + sa_out
    norm1 = _layer_norm(out1, g, b, eps)

    # ---- encoder-decoder attention (fused KV projection) ----------------
    q = _mm(norm1, ea_wq_ref[...], ea_bq_ref[...])             # (St, D)
    kv = _mm(enc, ea_wkv_ref[...], ea_bkv_ref[...])            # (Ss, 2D)
    ctx_cols = []
    for h in range(n_head):
        q_h = q[:, h * dh:(h + 1) * dh]
        k_h = kv[:, h * dh:(h + 1) * dh]
        v_h = kv[:, D + h * dh:D + (h + 1) * dh]
        ctx_h, p_h = _sdpa_head(q_h, k_h, v_h, emask, scale)
        ctx_cols.append(ctx_h)
        if emit_attn:
            attn_ref[0, h] = p_h.astype(attn_ref.dtype)
    ea_ctx = jnp.concatenate(ctx_cols, axis=-1)                # (St, D)
    ea_out = _mm(ea_ctx, ea_wo_ref[...], ea_bo_ref[...])
    out2 = out1 + ea_out
    norm2 = _layer_norm(out2, g, b, eps)

    # ---- position-wise FFN (Conv1d k=1 == per-position linear) ----------
    hdn = _mm(norm2, w1_ref[...], b1_ref[...], activation="relu")
    ffn_out = _mm(hdn, w2_ref[...], b2_ref[...])
    out3 = out2 + ffn_out

    out_ref[0] = _layer_norm(out3, g, b, eps).astype(out_ref.dtype)


def pallas_decoder_layer(x, enc, tmask_add, emask_add, lp, n_head,
                         emit_attn, eps=1e-6):
    B, St, D = x.shape
    Ss = enc.shape[1]
    H = n_head

    kernel = functools.partial(_decoder_layer_kernel, n_head=n_head, eps=eps,
                               emit_attn=emit_attn)

    def wspec(a):
        nd = a.ndim
        return pl.BlockSpec(a.shape, lambda i, _nd=nd: (0,) * _nd)

    in_specs = [
        pl.BlockSpec((1, St, D), lambda i: (i, 0, 0)),       # x
        pl.BlockSpec((1, Ss, D), lambda i: (i, 0, 0)),       # encoder output
        pl.BlockSpec((1, St, St), lambda i: (i, 0, 0)),      # target mask (additive)
        pl.BlockSpec((1, St, Ss), lambda i: (i, 0, 0)),      # dec-enc mask (additive)
        wspec(lp["sa_wqkv"]), wspec(lp["sa_bqkv"]),
        wspec(lp["sa_wo"]), wspec(lp["sa_bo"]),
        wspec(lp["ea_wq"]), wspec(lp["ea_bq"]),
        wspec(lp["ea_wkv"]), wspec(lp["ea_bkv"]),
        wspec(lp["ea_wo"]), wspec(lp["ea_bo"]),
        wspec(lp["w1"]), wspec(lp["b1"]),
        wspec(lp["w2"]), wspec(lp["b2"]),
        wspec(lp["ln_g"]), wspec(lp["ln_b"]),
    ]

    out_shapes = [jax.ShapeDtypeStruct((B, St, D), jnp.float32)]
    out_specs = [pl.BlockSpec((1, St, D), lambda i: (i, 0, 0))]
    if emit_attn:
        out_shapes.append(jax.ShapeDtypeStruct((B, H, St, Ss), jnp.float32))
        out_specs.append(pl.BlockSpec((1, H, St, Ss), lambda i: (i, 0, 0, 0)))

    results = pl.pallas_call(
        kernel,
        out_shape=tuple(out_shapes),
        grid=(B,),
        in_specs=in_specs,
        out_specs=tuple(out_specs),
        compiler_params=pltpu.CompilerParams(dimension_semantics=("parallel",)),
    )(x, enc, tmask_add, emask_add,
      lp["sa_wqkv"], lp["sa_bqkv"], lp["sa_wo"], lp["sa_bo"],
      lp["ea_wq"], lp["ea_bq"], lp["ea_wkv"], lp["ea_bkv"],
      lp["ea_wo"], lp["ea_bo"],
      lp["w1"], lp["b1"], lp["w2"], lp["b2"], lp["ln_g"], lp["ln_b"])

    if emit_attn:
        return results[0], results[1]
    return results[0], None


# ----------------------------------------------------------------------------- final vocab projection

def _vocab_proj_kernel(x_ref, w_ref, o_ref):
    # x: (1, S, D) f32   w: (Vp, D) bf16   o: (1, S, Vp) -- logits = x @ w.T
    logits = jax.lax.dot_general(
        x_ref[0].astype(jnp.bfloat16), w_ref[...],
        (((1,), (1,)), ((), ())), preferred_element_type=jnp.float32)
    o_ref[0] = logits.astype(o_ref.dtype)


def pallas_vocab_projection(x, emb_proj_bf16):
    B, S, D = x.shape
    Vp = emb_proj_bf16.shape[0]
    return pl.pallas_call(
        _vocab_proj_kernel,
        out_shape=jax.ShapeDtypeStruct((B, S, Vp), jnp.float32),
        grid=(B,),
        in_specs=[
            pl.BlockSpec((1, S, D), lambda i: (i, 0, 0)),
            pl.BlockSpec((Vp, D), lambda i: (0, 0)),
        ],
        out_specs=pl.BlockSpec((1, S, Vp), lambda i: (i, 0, 0)),
        compiler_params=pltpu.CompilerParams(dimension_semantics=("parallel",)),
    )(x, emb_proj_bf16)


# ----------------------------------------------------------------------------- model glue (plain JAX)

def create_positional_encoding(n_pos, d):
    position = np.arange(n_pos)[:, None].astype(np.float64)
    idx = np.arange(d)[None, :]
    angle = position / np.power(10000.0, 2.0 * (idx // 2) / d)
    table = np.zeros((n_pos, d), dtype=np.float32)
    table[:, 0::2] = np.sin(angle[:, 0::2])
    table[:, 1::2] = np.cos(angle[:, 1::2])
    table[0, :] = 0.0  # padding position
    return jnp.asarray(table)


def create_position_vector(tokens, pad_idx):
    B, S = tokens.shape
    pos = jnp.arange(1, S + 1, dtype=jnp.int32)[None, :]
    return jnp.where(tokens != pad_idx, pos, 0)


def create_target_mask(source, target, pad_idx):
    B, St = target.shape
    Ss = source.shape[1]
    subsequent = jnp.triu(jnp.ones((St, St), dtype=jnp.bool_), k=1)[None, :, :]
    tgt_pad = (target == pad_idx)[:, None, :]
    target_mask = jnp.broadcast_to(tgt_pad, (B, St, St)) | jnp.broadcast_to(
        subsequent, (B, St, St))
    src_pad = (source == pad_idx)[:, None, :]
    dec_enc_mask = jnp.broadcast_to(src_pad, (B, St, Ss))
    return target_mask, dec_enc_mask


def decoder_forward(params, cfg, target, source, encoder_output):
    pad_idx = cfg["pad_idx"]
    n_head = cfg["n_head"]

    tmask_bool, emask_bool = create_target_mask(source, target, pad_idx)
    # additive masks, kept in f32 so the -1e9 sentinel survives
    tmask_add = jnp.where(tmask_bool, NEG_INF, 0.0).astype(jnp.float32)
    emask_add = jnp.where(emask_bool, NEG_INF, 0.0).astype(jnp.float32)

    target_pos = create_position_vector(target, pad_idx)

    emb_w = params["token_embedding"]
    x = jnp.take(emb_w, target, axis=0) * cfg["embedding_scale"]
    x = x + jnp.take(params["pos_embedding"], target_pos, axis=0)
    # TODO(synk): training-mode dropout (random masking) not implemented; identity.

    attn_map = None
    n_layer = len(params["layers"])
    for li, lp in enumerate(params["layers"]):
        x, amap = pallas_decoder_layer(
            x, encoder_output, tmask_add, emask_add, lp, n_head,
            emit_attn=(li == n_layer - 1))
        if amap is not None:
            attn_map = amap

    # final projection: x @ token_embedding.T (vocab dim padded to 128 multiple)
    logits_pad = pallas_vocab_projection(x, params["token_embedding_proj"])
    logits = logits_pad[:, :, :cfg["output_dim"]]
    return logits, attn_map


# ----------------------------------------------------------------------------- param init

def _init_linear(key, din, dout):
    k1, k2 = jax.random.split(key)
    w = jax.random.normal(k1, (din, dout), jnp.float32) * (1.0 / math.sqrt(din))
    b = jax.random.normal(k2, (1, dout), jnp.float32) * 0.01
    return w, b


def _init_self_attn(key, d):
    ks = jax.random.split(key, 4)
    wq, bq = _init_linear(ks[0], d, d)
    wk, bk = _init_linear(ks[1], d, d)
    wv, bv = _init_linear(ks[2], d, d)
    wo, bo = _init_linear(ks[3], d, d)
    return dict(
        sa_wqkv=jnp.concatenate([wq, wk, wv], axis=1).astype(jnp.bfloat16),
        sa_bqkv=jnp.concatenate([bq, bk, bv], axis=1),
        sa_wo=wo.astype(jnp.bfloat16),
        sa_bo=bo,
    )


def _init_enc_attn(key, d):
    ks = jax.random.split(key, 4)
    wq, bq = _init_linear(ks[0], d, d)
    wk, bk = _init_linear(ks[1], d, d)
    wv, bv = _init_linear(ks[2], d, d)
    wo, bo = _init_linear(ks[3], d, d)
    return dict(
        ea_wq=wq.astype(jnp.bfloat16), ea_bq=bq,
        ea_wkv=jnp.concatenate([wk, wv], axis=1).astype(jnp.bfloat16),
        ea_bkv=jnp.concatenate([bk, bv], axis=1),
        ea_wo=wo.astype(jnp.bfloat16), ea_bo=bo,
    )


def init_params(key, cfg):
    d = cfg["hidden_dim"]
    V = cfg["output_dim"]
    keys = jax.random.split(key, 2 + cfg["n_layer"])

    # token embedding ~ N(0, hidden_dim ** -0.5); row pad_idx zeroed
    emb = jax.random.normal(keys[0], (V, d), jnp.float32) * (d ** -0.5)
    emb = emb.at[cfg["pad_idx"]].set(0.0)

    # lane-dense (multiple of 128) bf16 copy for the final projection kernel
    Vp = ((V + 127) // 128) * 128
    emb_proj = jnp.zeros((Vp, d), jnp.float32).at[:V].set(emb).astype(jnp.bfloat16)

    layers = []
    for li in range(cfg["n_layer"]):
        lk = jax.random.split(keys[2 + li], 4)
        w1, b1 = _init_linear(lk[2], d, cfg["feed_forward_dim"])
        w2, b2 = _init_linear(lk[3], cfg["feed_forward_dim"], d)
        layer = dict(
            w1=w1.astype(jnp.bfloat16), b1=b1,
            w2=w2.astype(jnp.bfloat16), b2=b2,
            # reference DecoderLayer shares one LayerNorm across all 3 sites
            ln_g=jnp.ones((1, d), jnp.float32),
            ln_b=jnp.zeros((1, d), jnp.float32),
        )
        layer.update(_init_self_attn(lk[0], d))
        layer.update(_init_enc_attn(lk[1], d))
        layers.append(layer)

    return dict(
        token_embedding=emb,
        token_embedding_proj=emb_proj,
        pos_embedding=create_positional_encoding(cfg["max_len"] + 1, d),
        layers=layers,
    )


# ----------------------------------------------------------------------------- main

if __name__ == "__main__":
    cfg = dict(
        output_dim=50,        # vocab size
        hidden_dim=32,
        n_head=4,
        feed_forward_dim=64,
        n_layer=2,
        max_len=8,
        pad_idx=0,
    )
    cfg["embedding_scale"] = cfg["hidden_dim"] ** 0.5

    B, S_tgt, S_src = 2, 8, 8
    key = jax.random.PRNGKey(0)
    k_tgt, k_src, k_enc, k_par = jax.random.split(key, 4)

    target = jax.random.randint(k_tgt, (B, S_tgt), 1, cfg["output_dim"], dtype=jnp.int32)
    target = target.at[1, -2:].set(cfg["pad_idx"])          # some padding
    source = jax.random.randint(k_src, (B, S_src), 1, cfg["output_dim"], dtype=jnp.int32)
    source = source.at[1, -3:].set(cfg["pad_idx"])
    encoder_output = jax.random.normal(k_enc, (B, S_src, cfg["hidden_dim"]), jnp.float32)

    params = init_params(k_par, cfg)

    @jax.jit
    def run(params, target, source, encoder_output):
        return decoder_forward(params, cfg, target, source, encoder_output)

    logits, attn_map = run(params, target, source, encoder_output)
    jax.block_until_ready((logits, attn_map))

    assert logits.shape == (B, S_tgt, cfg["output_dim"])
    assert attn_map.shape == (B, cfg["n_head"], S_tgt, S_src)
    assert bool(jnp.all(jnp.isfinite(logits)))
    assert bool(jnp.all(jnp.isfinite(attn_map)))
    print("KERNEL_OK")
</pallas_src>

<mosaic_0001>
module attributes {stable_mosaic.version = 11 : i64} {
  func.func @_decoder_layer_kernel(%arg0: i32, %arg1: memref<1x8x32xf32, #tpu.memory_space<vmem>>, %arg2: memref<1x8x32xf32, #tpu.memory_space<vmem>>, %arg3: memref<1x8x8xf32, #tpu.memory_space<vmem>>, %arg4: memref<1x8x8xf32, #tpu.memory_space<vmem>>, %arg5: memref<32x96xbf16, #tpu.memory_space<vmem>>, %arg6: memref<1x96xf32, #tpu.memory_space<vmem>>, %arg7: memref<32x32xbf16, #tpu.memory_space<vmem>>, %arg8: memref<1x32xf32, #tpu.memory_space<vmem>>, %arg9: memref<32x32xbf16, #tpu.memory_space<vmem>>, %arg10: memref<1x32xf32, #tpu.memory_space<vmem>>, %arg11: memref<32x64xbf16, #tpu.memory_space<vmem>>, %arg12: memref<1x64xf32, #tpu.memory_space<vmem>>, %arg13: memref<32x32xbf16, #tpu.memory_space<vmem>>, %arg14: memref<1x32xf32, #tpu.memory_space<vmem>>, %arg15: memref<32x64xbf16, #tpu.memory_space<vmem>>, %arg16: memref<1x64xf32, #tpu.memory_space<vmem>>, %arg17: memref<64x32xbf16, #tpu.memory_space<vmem>>, %arg18: memref<1x32xf32, #tpu.memory_space<vmem>>, %arg19: memref<1x32xf32, #tpu.memory_space<vmem>>, %arg20: memref<1x32xf32, #tpu.memory_space<vmem>>, %arg21: memref<1x8x32xf32, #tpu.memory_space<vmem>>, %arg22: memref<1x4x8x8xf32, #tpu.memory_space<vmem>>) attributes {dimension_semantics = [#tpu.dimension_semantics<parallel>], iteration_bounds = array<i64: 2>, scalar_prefetch = 0 : i64, scratch_operands = 0 : i64, tpu.core_type = #tpu.core_type<tc>, window_params = [{transform_indices = @transform_0, window_bounds = array<i64: 1, 8, 32>}, {transform_indices = @transform_1, window_bounds = array<i64: 1, 8, 32>}, {transform_indices = @transform_2, window_bounds = array<i64: 1, 8, 8>}, {transform_indices = @transform_3, window_bounds = array<i64: 1, 8, 8>}, {pipeline_mode = #tpu.pipeline_mode<synchronous>, transform_indices = @transform_4, window_bounds = array<i64: 32, 96>}, {pipeline_mode = #tpu.pipeline_mode<synchronous>, transform_indices = @transform_5, window_bounds = array<i64: 1, 96>}, {pipeline_mode = #tpu.pipeline_mode<synchronous>, transform_indices = @transform_6, window_bounds = array<i64: 32, 32>}, {pipeline_mode = #tpu.pipeline_mode<synchronous>, transform_indices = @transform_7, window_bounds = array<i64: 1, 32>}, {pipeline_mode = #tpu.pipeline_mode<synchronous>, transform_indices = @transform_8, window_bounds = array<i64: 32, 32>}, {pipeline_mode = #tpu.pipeline_mode<synchronous>, transform_indices = @transform_9, window_bounds = array<i64: 1, 32>}, {pipeline_mode = #tpu.pipeline_mode<synchronous>, transform_indices = @transform_10, window_bounds = array<i64: 32, 64>}, {pipeline_mode = #tpu.pipeline_mode<synchronous>, transform_indices = @transform_11, window_bounds = array<i64: 1, 64>}, {pipeline_mode = #tpu.pipeline_mode<synchronous>, transform_indices = @transform_12, window_bounds = array<i64: 32, 32>}, {pipeline_mode = #tpu.pipeline_mode<synchronous>, transform_indices = @transform_13, window_bounds = array<i64: 1, 32>}, {pipeline_mode = #tpu.pipeline_mode<synchronous>, transform_indices = @transform_14, window_bounds = array<i64: 32, 64>}, {pipeline_mode = #tpu.pipeline_mode<synchronous>, transform_indices = @transform_15, window_bounds = array<i64: 1, 64>}, {pipeline_mode = #tpu.pipeline_mode<synchronous>, transform_indices = @transform_16, window_bounds = array<i64: 64, 32>}, {pipeline_mode = #tpu.pipeline_mode<synchronous>, transform_indices = @transform_17, window_bounds = array<i64: 1, 32>}, {pipeline_mode = #tpu.pipeline_mode<synchronous>, transform_indices = @transform_18, window_bounds = array<i64: 1, 32>}, {pipeline_mode = #tpu.pipeline_mode<synchronous>, transform_indices = @transform_19, window_bounds = array<i64: 1, 32>}, {transform_indices = @transform_20, window_bounds = array<i64: 1, 8, 32>}, {transform_indices = @transform_21, window_bounds = array<i64: 1, 4, 8, 8>}]} {
    %c0 = arith.constant 0 : index
    %c0_0 = arith.constant 0 : index
    %c0_1 = arith.constant 0 : index
    %0 = vector.load %arg1[%c0, %c0_0, %c0_1] : memref<1x8x32xf32, #tpu.memory_space<vmem>>, vector<1x8x32xf32>
    %1 = vector.shape_cast %0 : vector<1x8x32xf32> to vector<8x32xf32>
    %c0_2 = arith.constant 0 : index
    %c0_3 = arith.constant 0 : index
    %c0_4 = arith.constant 0 : index
    %2 = vector.load %arg2[%c0_2, %c0_3, %c0_4] : memref<1x8x32xf32, #tpu.memory_space<vmem>>, vector<1x8x32xf32>
    %3 = vector.shape_cast %2 : vector<1x8x32xf32> to vector<8x32xf32>
    %c0_5 = arith.constant 0 : index
    %c0_6 = arith.constant 0 : index
    %c0_7 = arith.constant 0 : index
    %4 = vector.load %arg3[%c0_5, %c0_6, %c0_7] : memref<1x8x8xf32, #tpu.memory_space<vmem>>, vector<1x8x8xf32>
    %5 = vector.shape_cast %4 : vector<1x8x8xf32> to vector<8x8xf32>
    %c0_8 = arith.constant 0 : index
    %c0_9 = arith.constant 0 : index
    %c0_10 = arith.constant 0 : index
    %6 = vector.load %arg4[%c0_8, %c0_9, %c0_10] : memref<1x8x8xf32, #tpu.memory_space<vmem>>, vector<1x8x8xf32>
    %7 = vector.shape_cast %6 : vector<1x8x8xf32> to vector<8x8xf32>
    %c0_11 = arith.constant 0 : index
    %c0_12 = arith.constant 0 : index
    %8 = vector.load %arg19[%c0_11, %c0_12] : memref<1x32xf32, #tpu.memory_space<vmem>>, vector<1x32xf32>
    %c0_13 = arith.constant 0 : index
    %c0_14 = arith.constant 0 : index
    %9 = vector.load %arg20[%c0_13, %c0_14] : memref<1x32xf32, #tpu.memory_space<vmem>>, vector<1x32xf32>
    %c0_15 = arith.constant 0 : index
    %c0_16 = arith.constant 0 : index
    %10 = vector.load %arg5[%c0_15, %c0_16] : memref<32x96xbf16, #tpu.memory_space<vmem>>, vector<32x96xbf16>
    %c0_17 = arith.constant 0 : index
    %c0_18 = arith.constant 0 : index
    %11 = vector.load %arg6[%c0_17, %c0_18] : memref<1x96xf32, #tpu.memory_space<vmem>>, vector<1x96xf32>
    %12 = arith.truncf %1 : vector<8x32xf32> to vector<8x32xbf16>
    %cst = arith.constant dense<0.000000e+00> : vector<8x96xf32>
    %13 = tpu.matmul %12, %10, %cst {dimension_numbers = #tpu.dot_dimension_numbers<[1], [0], [0], [1], [0, 0, 1, 1], [], []>} : vector<8x32xbf16>, vector<32x96xbf16>, vector<8x96xf32> -> vector<8x96xf32>
    %14 = vector.broadcast %11 : vector<1x96xf32> to vector<8x96xf32>
    %15 = arith.addf %13, %14 : vector<8x96xf32>
    %16 = vector.extract_strided_slice %15 {offsets = [0, 0], sizes = [8, 8], strides = [1, 1]} : vector<8x96xf32> to vector<8x8xf32>
    %17 = vector.extract_strided_slice %15 {offsets = [0, 32], sizes = [8, 8], strides = [1, 1]} : vector<8x96xf32> to vector<8x8xf32>
    %18 = vector.extract_strided_slice %15 {offsets = [0, 64], sizes = [8, 8], strides = [1, 1]} : vector<8x96xf32> to vector<8x8xf32>
    %19 = arith.truncf %16 : vector<8x8xf32> to vector<8x8xbf16>
    %20 = arith.truncf %17 : vector<8x8xf32> to vector<8x8xbf16>
    %cst_19 = arith.constant dense<0.000000e+00> : vector<8x8xf32>
    %21 = tpu.matmul %19, %20, %cst_19 {dimension_numbers = #tpu.dot_dimension_numbers<[1], [1], [0], [0], [0, 0, 1, 0], [], []>} : vector<8x8xbf16>, vector<8x8xbf16>, vector<8x8xf32> -> vector<8x8xf32>
    %cst_20 = arith.constant 0.353553385 : f32
    %22 = vector.broadcast %cst_20 : f32 to vector<8x8xf32>
    %23 = arith.mulf %21, %22 : vector<8x8xf32>
    %24 = arith.addf %23, %5 : vector<8x8xf32>
    %cst_21 = arith.constant dense<0xFF800000> : vector<8xf32>
    %25 = vector.multi_reduction <maximumf>, %24, %cst_21 [1] : vector<8x8xf32> to vector<8xf32>
    %26 = vector.shape_cast %25 : vector<8xf32> to vector<8x1xf32>
    %27 = vector.broadcast %26 : vector<8x1xf32> to vector<8x8xf32>
    %28 = arith.subf %24, %27 : vector<8x8xf32>
    %29 = math.exp %28 : vector<8x8xf32>
    %cst_22 = arith.constant dense<0.000000e+00> : vector<8xf32>
    %30 = vector.multi_reduction <add>, %29, %cst_22 [1] : vector<8x8xf32> to vector<8xf32>
    %31 = vector.shape_cast %30 : vector<8xf32> to vector<8x1xf32>
    %32 = tpu.reciprocal %31 {approx = true} : vector<8x1xf32> -> vector<8x1xf32>
    %33 = vector.broadcast %32 : vector<8x1xf32> to vector<8x8xf32>
    %34 = arith.mulf %29, %33 : vector<8x8xf32>
    %35 = arith.truncf %34 : vector<8x8xf32> to vector<8x8xbf16>
    %36 = arith.truncf %18 : vector<8x8xf32> to vector<8x8xbf16>
    %cst_23 = arith.constant dense<0.000000e+00> : vector<8x8xf32>
    %37 = tpu.matmul %35, %36, %cst_23 {dimension_numbers = #tpu.dot_dimension_numbers<[1], [0], [0], [1], [0, 0, 1, 1], [], []>} : vector<8x8xbf16>, vector<8x8xbf16>, vector<8x8xf32> -> vector<8x8xf32>
    %38 = vector.extract_strided_slice %15 {offsets = [0, 8], sizes = [8, 8], strides = [1, 1]} : vector<8x96xf32> to vector<8x8xf32>
    %39 = vector.extract_strided_slice %15 {offsets = [0, 40], sizes = [8, 8], strides = [1, 1]} : vector<8x96xf32> to vector<8x8xf32>
    %40 = vector.extract_strided_slice %15 {offsets = [0, 72], sizes = [8, 8], strides = [1, 1]} : vector<8x96xf32> to vector<8x8xf32>
    %41 = arith.truncf %38 : vector<8x8xf32> to vector<8x8xbf16>
    %42 = arith.truncf %39 : vector<8x8xf32> to vector<8x8xbf16>
    %cst_24 = arith.constant dense<0.000000e+00> : vector<8x8xf32>
    %43 = tpu.matmul %41, %42, %cst_24 {dimension_numbers = #tpu.dot_dimension_numbers<[1], [1], [0], [0], [0, 0, 1, 0], [], []>} : vector<8x8xbf16>, vector<8x8xbf16>, vector<8x8xf32> -> vector<8x8xf32>
    %cst_25 = arith.constant 0.353553385 : f32
    %44 = vector.broadcast %cst_25 : f32 to vector<8x8xf32>
    %45 = arith.mulf %43, %44 : vector<8x8xf32>
    %46 = arith.addf %45, %5 : vector<8x8xf32>
    %cst_26 = arith.constant dense<0xFF800000> : vector<8xf32>
    %47 = vector.multi_reduction <maximumf>, %46, %cst_26 [1] : vector<8x8xf32> to vector<8xf32>
    %48 = vector.shape_cast %47 : vector<8xf32> to vector<8x1xf32>
    %49 = vector.broadcast %48 : vector<8x1xf32> to vector<8x8xf32>
    %50 = arith.subf %46, %49 : vector<8x8xf32>
    %51 = math.exp %50 : vector<8x8xf32>
    %cst_27 = arith.constant dense<0.000000e+00> : vector<8xf32>
    %52 = vector.multi_reduction <add>, %51, %cst_27 [1] : vector<8x8xf32> to vector<8xf32>
    %53 = vector.shape_cast %52 : vector<8xf32> to vector<8x1xf32>
    %54 = tpu.reciprocal %53 {approx = true} : vector<8x1xf32> -> vector<8x1xf32>
    %55 = vector.broadcast %54 : vector<8x1xf32> to vector<8x8xf32>
    %56 = arith.mulf %51, %55 : vector<8x8xf32>
    %57 = arith.truncf %56 : vector<8x8xf32> to vector<8x8xbf16>
    %58 = arith.truncf %40 : vector<8x8xf32> to vector<8x8xbf16>
    %cst_28 = arith.constant dense<0.000000e+00> : vector<8x8xf32>
    %59 = tpu.matmul %57, %58, %cst_28 {dimension_numbers = #tpu.dot_dimension_numbers<[1], [0], [0], [1], [0, 0, 1, 1], [], []>} : vector<8x8xbf16>, vector<8x8xbf16>, vector<8x8xf32> -> vector<8x8xf32>
    %60 = vector.extract_strided_slice %15 {offsets = [0, 16], sizes = [8, 8], strides = [1, 1]} : vector<8x96xf32> to vector<8x8xf32>
    %61 = vector.extract_strided_slice %15 {offsets = [0, 48], sizes = [8, 8], strides = [1, 1]} : vector<8x96xf32> to vector<8x8xf32>
    %62 = vector.extract_strided_slice %15 {offsets = [0, 80], sizes = [8, 8], strides = [1, 1]} : vector<8x96xf32> to vector<8x8xf32>
    %63 = arith.truncf %60 : vector<8x8xf32> to vector<8x8xbf16>
    %64 = arith.truncf %61 : vector<8x8xf32> to vector<8x8xbf16>
    %cst_29 = arith.constant dense<0.000000e+00> : vector<8x8xf32>
    %65 = tpu.matmul %63, %64, %cst_29 {dimension_numbers = #tpu.dot_dimension_numbers<[1], [1], [0], [0], [0, 0, 1, 0], [], []>} : vector<8x8xbf16>, vector<8x8xbf16>, vector<8x8xf32> -> vector<8x8xf32>
    %cst_30 = arith.constant 0.353553385 : f32
    %66 = vector.broadcast %cst_30 : f32 to vector<8x8xf32>
    %67 = arith.mulf %65, %66 : vector<8x8xf32>
    %68 = arith.addf %67, %5 : vector<8x8xf32>
    %cst_31 = arith.constant dense<0xFF800000> : vector<8xf32>
    %69 = vector.multi_reduction <maximumf>, %68, %cst_31 [1] : vector<8x8xf32> to vector<8xf32>
    %70 = vector.shape_cast %69 : vector<8xf32> to vector<8x1xf32>
    %71 = vector.broadcast %70 : vector<8x1xf32> to vector<8x8xf32>
    %72 = arith.subf %68, %71 : vector<8x8xf32>
    %73 = math.exp %72 : vector<8x8xf32>
    %cst_32 = arith.constant dense<0.000000e+00> : vector<8xf32>
    %74 = vector.multi_reduction <add>, %73, %cst_32 [1] : vector<8x8xf32> to vector<8xf32>
    %75 = vector.shape_cast %74 : vector<8xf32> to vector<8x1xf32>
    %76 = tpu.reciprocal %75 {approx = true} : vector<8x1xf32> -> vector<8x1xf32>
    %77 = vector.broadcast %76 : vector<8x1xf32> to vector<8x8xf32>
    %78 = arith.mulf %73, %77 : vector<8x8xf32>
    %79 = arith.truncf %78 : vector<8x8xf32> to vector<8x8xbf16>
    %80 = arith.truncf %62 : vector<8x8xf32> to vector<8x8xbf16>
    %cst_33 = arith.constant dense<0.000000e+00> : vector<8x8xf32>
    %81 = tpu.matmul %79, %80, %cst_33 {dimension_numbers = #tpu.dot_dimension_numbers<[1], [0], [0], [1], [0, 0, 1, 1], [], []>} : vector<8x8xbf16>, vector<8x8xbf16>, vector<8x8xf32> -> vector<8x8xf32>
    %82 = vector.extract_strided_slice %15 {offsets = [0, 24], sizes = [8, 8], strides = [1, 1]} : vector<8x96xf32> to vector<8x8xf32>
    %83 = vector.extract_strided_slice %15 {offsets = [0, 56], sizes = [8, 8], strides = [1, 1]} : vector<8x96xf32> to vector<8x8xf32>
    %84 = vector.extract_strided_slice %15 {offsets = [0, 88], sizes = [8, 8], strides = [1, 1]} : vector<8x96xf32> to vector<8x8xf32>
    %85 = arith.truncf %82 : vector<8x8xf32> to vector<8x8xbf16>
    %86 = arith.truncf %83 : vector<8x8xf32> to vector<8x8xbf16>
    %cst_34 = arith.constant dense<0.000000e+00> : vector<8x8xf32>
    %87 = tpu.matmul %85, %86, %cst_34 {dimension_numbers = #tpu.dot_dimension_numbers<[1], [1], [0], [0], [0, 0, 1, 0], [], []>} : vector<8x8xbf16>, vector<8x8xbf16>, vector<8x8xf32> -> vector<8x8xf32>
    %cst_35 = arith.constant 0.353553385 : f32
    %88 = vector.broadcast %cst_35 : f32 to vector<8x8xf32>
    %89 = arith.mulf %87, %88 : vector<8x8xf32>
    %90 = arith.addf %89, %5 : vector<8x8xf32>
    %cst_36 = arith.constant dense<0xFF800000> : vector<8xf32>
    %91 = vector.multi_reduction <maximumf>, %90, %cst_36 [1] : vector<8x8xf32> to vector<8xf32>
    %92 = vector.shape_cast %91 : vector<8xf32> to vector<8x1xf32>
    %93 = vector.broadcast %92 : vector<8x1xf32> to vector<8x8xf32>
    %94 = arith.subf %90, %93 : vector<8x8xf32>
    %95 = math.exp %94 : vector<8x8xf32>
    %cst_37 = arith.constant dense<0.000000e+00> : vector<8xf32>
    %96 = vector.multi_reduction <add>, %95, %cst_37 [1] : vector<8x8xf32> to vector<8xf32>
    %97 = vector.shape_cast %96 : vector<8xf32> to vector<8x1xf32>
    %98 = tpu.reciprocal %97 {approx = true} : vector<8x1xf32> -> vector<8x1xf32>
    %99 = vector.broadcast %98 : vector<8x1xf32> to vector<8x8xf32>
    %100 = arith.mulf %95, %99 : vector<8x8xf32>
    %101 = arith.truncf %100 : vector<8x8xf32> to vector<8x8xbf16>
    %102 = arith.truncf %84 : vector<8x8xf32> to vector<8x8xbf16>
    %cst_38 = arith.constant dense<0.000000e+00> : vector<8x8xf32>
    %103 = tpu.matmul %101, %102, %cst_38 {dimension_numbers = #tpu.dot_dimension_numbers<[1], [0], [0], [1], [0, 0, 1, 1], [], []>} : vector<8x8xbf16>, vector<8x8xbf16>, vector<8x8xf32> -> vector<8x8xf32>
    %104 = tpu.concatenate %37, %59, %81, %103 in 1 : vector<8x8xf32>, vector<8x8xf32>, vector<8x8xf32>, vector<8x8xf32> -> vector<8x32xf32>
    %c0_39 = arith.constant 0 : index
    %c0_40 = arith.constant 0 : index
    %105 = vector.load %arg7[%c0_39, %c0_40] : memref<32x32xbf16, #tpu.memory_space<vmem>>, vector<32x32xbf16>
    %c0_41 = arith.constant 0 : index
    %c0_42 = arith.constant 0 : index
    %106 = vector.load %arg8[%c0_41, %c0_42] : memref<1x32xf32, #tpu.memory_space<vmem>>, vector<1x32xf32>
    %107 = arith.truncf %104 : vector<8x32xf32> to vector<8x32xbf16>
    %cst_43 = arith.constant dense<0.000000e+00> : vector<8x32xf32>
    %108 = tpu.matmul %107, %105, %cst_43 {dimension_numbers = #tpu.dot_dimension_numbers<[1], [0], [0], [1], [0, 0, 1, 1], [], []>} : vector<8x32xbf16>, vector<32x32xbf16>, vector<8x32xf32> -> vector<8x32xf32>
    %109 = vector.broadcast %106 : vector<1x32xf32> to vector<8x32xf32>
    %110 = arith.addf %108, %109 : vector<8x32xf32>
    %111 = arith.addf %1, %110 : vector<8x32xf32>
    %cst_44 = arith.constant dense<0.000000e+00> : vector<8xf32>
    %112 = vector.multi_reduction <add>, %111, %cst_44 [1] : vector<8x32xf32> to vector<8xf32>
    %113 = vector.shape_cast %112 : vector<8xf32> to vector<8x1xf32>
    %cst_45 = arith.constant 3.200000e+01 : f32
    %114 = vector.broadcast %cst_45 : f32 to vector<8x1xf32>
    %115 = arith.divf %113, %114 : vector<8x1xf32>
    %116 = vector.broadcast %115 : vector<8x1xf32> to vector<8x32xf32>
    %117 = arith.subf %111, %116 : vector<8x32xf32>
    %118 = arith.mulf %117, %117 : vector<8x32xf32>
    %cst_46 = arith.constant dense<0.000000e+00> : vector<8xf32>
    %119 = vector.multi_reduction <add>, %118, %cst_46 [1] : vector<8x32xf32> to vector<8xf32>
    %120 = vector.shape_cast %119 : vector<8xf32> to vector<8x1xf32>
    %cst_47 = arith.constant 3.200000e+01 : f32
    %121 = vector.broadcast %cst_47 : f32 to vector<8x1xf32>
    %122 = arith.divf %120, %121 : vector<8x1xf32>
    %cst_48 = arith.constant 9.99999997E-7 : f32
    %123 = vector.broadcast %cst_48 : f32 to vector<8x1xf32>
    %124 = arith.addf %122, %123 : vector<8x1xf32>
    %125 = math.rsqrt %124 : vector<8x1xf32>
    %126 = vector.broadcast %125 : vector<8x1xf32> to vector<8x32xf32>
    %127 = arith.mulf %117, %126 : vector<8x32xf32>
    %128 = vector.broadcast %8 : vector<1x32xf32> to vector<8x32xf32>
    %129 = arith.mulf %127, %128 : vector<8x32xf32>
    %130 = vector.broadcast %9 : vector<1x32xf32> to vector<8x32xf32>
    %131 = arith.addf %129, %130 : vector<8x32xf32>
    %c0_49 = arith.constant 0 : index
    %c0_50 = arith.constant 0 : index
    %132 = vector.load %arg9[%c0_49, %c0_50] : memref<32x32xbf16, #tpu.memory_space<vmem>>, vector<32x32xbf16>
    %c0_51 = arith.constant 0 : index
    %c0_52 = arith.constant 0 : index
    %133 = vector.load %arg10[%c0_51, %c0_52] : memref<1x32xf32, #tpu.memory_space<vmem>>, vector<1x32xf32>
    %134 = arith.truncf %131 : vector<8x32xf32> to vector<8x32xbf16>
    %cst_53 = arith.constant dense<0.000000e+00> : vector<8x32xf32>
    %135 = tpu.matmul %134, %132, %cst_53 {dimension_numbers = #tpu.dot_dimension_numbers<[1], [0], [0], [1], [0, 0, 1, 1], [], []>} : vector<8x32xbf16>, vector<32x32xbf16>, vector<8x32xf32> -> vector<8x32xf32>
    %136 = vector.broadcast %133 : vector<1x32xf32> to vector<8x32xf32>
    %137 = arith.addf %135, %136 : vector<8x32xf32>
    %c0_54 = arith.constant 0 : index
    %c0_55 = arith.constant 0 : index
    %138 = vector.load %arg11[%c0_54, %c0_55] : memref<32x64xbf16, #tpu.memory_space<vmem>>, vector<32x64xbf16>
    %c0_56 = arith.constant 0 : index
    %c0_57 = arith.constant 0 : index
    %139 = vector.load %arg12[%c0_56, %c0_57] : memref<1x64xf32, #tpu.memory_space<vmem>>, vector<1x64xf32>
    %140 = arith.truncf %3 : vector<8x32xf32> to vector<8x32xbf16>
    %cst_58 = arith.constant dense<0.000000e+00> : vector<8x64xf32>
    %141 = tpu.matmul %140, %138, %cst_58 {dimension_numbers = #tpu.dot_dimension_numbers<[1], [0], [0], [1], [0, 0, 1, 1], [], []>} : vector<8x32xbf16>, vector<32x64xbf16>, vector<8x64xf32> -> vector<8x64xf32>
    %142 = vector.broadcast %139 : vector<1x64xf32> to vector<8x64xf32>
    %143 = arith.addf %141, %142 : vector<8x64xf32>
    %144 = vector.extract_strided_slice %137 {offsets = [0, 0], sizes = [8, 8], strides = [1, 1]} : vector<8x32xf32> to vector<8x8xf32>
    %145 = vector.extract_strided_slice %143 {offsets = [0, 0], sizes = [8, 8], strides = [1, 1]} : vector<8x64xf32> to vector<8x8xf32>
    %146 = vector.extract_strided_slice %143 {offsets = [0, 32], sizes = [8, 8], strides = [1, 1]} : vector<8x64xf32> to vector<8x8xf32>
    %147 = arith.truncf %144 : vector<8x8xf32> to vector<8x8xbf16>
    %148 = arith.truncf %145 : vector<8x8xf32> to vector<8x8xbf16>
    %cst_59 = arith.constant dense<0.000000e+00> : vector<8x8xf32>
    %149 = tpu.matmul %147, %148, %cst_59 {dimension_numbers = #tpu.dot_dimension_numbers<[1], [1], [0], [0], [0, 0, 1, 0], [], []>} : vector<8x8xbf16>, vector<8x8xbf16>, vector<8x8xf32> -> vector<8x8xf32>
    %cst_60 = arith.constant 0.353553385 : f32
    %150 = vector.broadcast %cst_60 : f32 to vector<8x8xf32>
    %151 = arith.mulf %149, %150 : vector<8x8xf32>
    %152 = arith.addf %151, %7 : vector<8x8xf32>
    %cst_61 = arith.constant dense<0xFF800000> : vector<8xf32>
    %153 = vector.multi_reduction <maximumf>, %152, %cst_61 [1] : vector<8x8xf32> to vector<8xf32>
    %154 = vector.shape_cast %153 : vector<8xf32> to vector<8x1xf32>
    %155 = vector.broadcast %154 : vector<8x1xf32> to vector<8x8xf32>
    %156 = arith.subf %152, %155 : vector<8x8xf32>
    %157 = math.exp %156 : vector<8x8xf32>
    %cst_62 = arith.constant dense<0.000000e+00> : vector<8xf32>
    %158 = vector.multi_reduction <add>, %157, %cst_62 [1] : vector<8x8xf32> to vector<8xf32>
    %159 = vector.shape_cast %158 : vector<8xf32> to vector<8x1xf32>
    %160 = tpu.reciprocal %159 {approx = true} : vector<8x1xf32> -> vector<8x1xf32>
    %161 = vector.broadcast %160 : vector<8x1xf32> to vector<8x8xf32>
    %162 = arith.mulf %157, %161 : vector<8x8xf32>
    %163 = arith.truncf %162 : vector<8x8xf32> to vector<8x8xbf16>
    %164 = arith.truncf %146 : vector<8x8xf32> to vector<8x8xbf16>
    %cst_63 = arith.constant dense<0.000000e+00> : vector<8x8xf32>
    %165 = tpu.matmul %163, %164, %cst_63 {dimension_numbers = #tpu.dot_dimension_numbers<[1], [0], [0], [1], [0, 0, 1, 1], [], []>} : vector<8x8xbf16>, vector<8x8xbf16>, vector<8x8xf32> -> vector<8x8xf32>
    %c0_64 = arith.constant 0 : index
    %c0_65 = arith.constant 0 : index
    %c0_66 = arith.constant 0 : index
    %c0_67 = arith.constant 0 : index
    %166 = vector.load %arg22[%c0_64, %c0_65, %c0_66, %c0_67] : memref<1x4x8x8xf32, #tpu.memory_space<vmem>>, vector<1x1x8x8xf32>
    %167 = vector.shape_cast %166 : vector<1x1x8x8xf32> to vector<8x8xf32>
    %168 = vector.shape_cast %162 : vector<8x8xf32> to vector<1x1x8x8xf32>
    tpu.vector_store %arg22[%c0_64, %c0_65, %c0_66, %c0_67], %168 {strides = array<i32>} : memref<1x4x8x8xf32, #tpu.memory_space<vmem>>, vector<1x1x8x8xf32>,
    %169 = vector.extract_strided_slice %137 {offsets = [0, 8], sizes = [8, 8], strides = [1, 1]} : vector<8x32xf32> to vector<8x8xf32>
    %170 = vector.extract_strided_slice %143 {offsets = [0, 8], sizes = [8, 8], strides = [1, 1]} : vector<8x64xf32> to vector<8x8xf32>
    %171 = vector.extract_strided_slice %143 {offsets = [0, 40], sizes = [8, 8], strides = [1, 1]} : vector<8x64xf32> to vector<8x8xf32>
    %172 = arith.truncf %169 : vector<8x8xf32> to vector<8x8xbf16>
    %173 = arith.truncf %170 : vector<8x8xf32> to vector<8x8xbf16>
    %cst_68 = arith.constant dense<0.000000e+00> : vector<8x8xf32>
    %174 = tpu.matmul %172, %173, %cst_68 {dimension_numbers = #tpu.dot_dimension_numbers<[1], [1], [0], [0], [0, 0, 1, 0], [], []>} : vector<8x8xbf16>, vector<8x8xbf16>, vector<8x8xf32> -> vector<8x8xf32>
    %cst_69 = arith.constant 0.353553385 : f32
    %175 = vector.broadcast %cst_69 : f32 to vector<8x8xf32>
    %176 = arith.mulf %174, %175 : vector<8x8xf32>
    %177 = arith.addf %176, %7 : vector<8x8xf32>
    %cst_70 = arith.constant dense<0xFF800000> : vector<8xf32>
    %178 = vector.multi_reduction <maximumf>, %177, %cst_70 [1] : vector<8x8xf32> to vector<8xf32>
    %179 = vector.shape_cast %178 : vector<8xf32> to vector<8x1xf32>
    %180 = vector.broadcast %179 : vector<8x1xf32> to vector<8x8xf32>
    %181 = arith.subf %177, %180 : vector<8x8xf32>
    %182 = math.exp %181 : vector<8x8xf32>
    %cst_71 = arith.constant dense<0.000000e+00> : vector<8xf32>
    %183 = vector.multi_reduction <add>, %182, %cst_71 [1] : vector<8x8xf32> to vector<8xf32>
    %184 = vector.shape_cast %183 : vector<8xf32> to vector<8x1xf32>
    %185 = tpu.reciprocal %184 {approx = true} : vector<8x1xf32> -> vector<8x1xf32>
    %186 = vector.broadcast %185 : vector<8x1xf32> to vector<8x8xf32>
    %187 = arith.mulf %182, %186 : vector<8x8xf32>
    %188 = arith.truncf %187 : vector<8x8xf32> to vector<8x8xbf16>
    %189 = arith.truncf %171 : vector<8x8xf32> to vector<8x8xbf16>
    %cst_72 = arith.constant dense<0.000000e+00> : vector<8x8xf32>
    %190 = tpu.matmul %188, %189, %cst_72 {dimension_numbers = #tpu.dot_dimension_numbers<[1], [0], [0], [1], [0, 0, 1, 1], [], []>} : vector<8x8xbf16>, vector<8x8xbf16>, vector<8x8xf32> -> vector<8x8xf32>
    %c0_73 = arith.constant 0 : index
    %c1 = arith.constant 1 : index
    %c0_74 = arith.constant 0 : index
    %c0_75 = arith.constant 0 : index
    %191 = vector.load %arg22[%c0_73, %c1, %c0_74, %c0_75] : memref<1x4x8x8xf32, #tpu.memory_space<vmem>>, vector<1x1x8x8xf32>
    %192 = vector.shape_cast %191 : vector<1x1x8x8xf32> to vector<8x8xf32>
    %193 = vector.shape_cast %187 : vector<8x8xf32> to vector<1x1x8x8xf32>
    tpu.vector_store %arg22[%c0_73, %c1, %c0_74, %c0_75], %193 {strides = array<i32>} : memref<1x4x8x8xf32, #tpu.memory_space<vmem>>, vector<1x1x8x8xf32>,
    %194 = vector.extract_strided_slice %137 {offsets = [0, 16], sizes = [8, 8], strides = [1, 1]} : vector<8x32xf32> to vector<8x8xf32>
    %195 = vector.extract_strided_slice %143 {offsets = [0, 16], sizes = [8, 8], strides = [1, 1]} : vector<8x64xf32> to vector<8x8xf32>
    %196 = vector.extract_strided_slice %143 {offsets = [0, 48], sizes = [8, 8], strides = [1, 1]} : vector<8x64xf32> to vector<8x8xf32>
    %197 = arith.truncf %194 : vector<8x8xf32> to vector<8x8xbf16>
    %198 = arith.truncf %195 : vector<8x8xf32> to vector<8x8xbf16>
    %cst_76 = arith.constant dense<0.000000e+00> : vector<8x8xf32>
    %199 = tpu.matmul %197, %198, %cst_76 {dimension_numbers = #tpu.dot_dimension_numbers<[1], [1], [0], [0], [0, 0, 1, 0], [], []>} : vector<8x8xbf16>, vector<8x8xbf16>, vector<8x8xf32> -> vector<8x8xf32>
    %cst_77 = arith.constant 0.353553385 : f32
    %200 = vector.broadcast %cst_77 : f32 to vector<8x8xf32>
    %201 = arith.mulf %199, %200 : vector<8x8xf32>
    %202 = arith.addf %201, %7 : vector<8x8xf32>
    %cst_78 = arith.constant dense<0xFF800000> : vector<8xf32>
    %203 = vector.multi_reduction <maximumf>, %202, %cst_78 [1] : vector<8x8xf32> to vector<8xf32>
    %204 = vector.shape_cast %203 : vector<8xf32> to vector<8x1xf32>
    %205 = vector.broadcast %204 : vector<8x1xf32> to vector<8x8xf32>
    %206 = arith.subf %202, %205 : vector<8x8xf32>
    %207 = math.exp %206 : vector<8x8xf32>
    %cst_79 = arith.constant dense<0.000000e+00> : vector<8xf32>
    %208 = vector.multi_reduction <add>, %207, %cst_79 [1] : vector<8x8xf32> to vector<8xf32>
    %209 = vector.shape_cast %208 : vector<8xf32> to vector<8x1xf32>
    %210 = tpu.reciprocal %209 {approx = true} : vector<8x1xf32> -> vector<8x1xf32>
    %211 = vector.broadcast %210 : vector<8x1xf32> to vector<8x8xf32>
    %212 = arith.mulf %207, %211 : vector<8x8xf32>
    %213 = arith.truncf %212 : vector<8x8xf32> to vector<8x8xbf16>
    %214 = arith.truncf %196 : vector<8x8xf32> to vector<8x8xbf16>
    %cst_80 = arith.constant dense<0.000000e+00> : vector<8x8xf32>
    %215 = tpu.matmul %213, %214, %cst_80 {dimension_numbers = #tpu.dot_dimension_numbers<[1], [0], [0], [1], [0, 0, 1, 1], [], []>} : vector<8x8xbf16>, vector<8x8xbf16>, vector<8x8xf32> -> vector<8x8xf32>
    %c0_81 = arith.constant 0 : index
    %c2 = arith.constant 2 : index
    %c0_82 = arith.constant 0 : index
    %c0_83 = arith.constant 0 : index
    %216 = vector.load %arg22[%c0_81, %c2, %c0_82, %c0_83] : memref<1x4x8x8xf32, #tpu.memory_space<vmem>>, vector<1x1x8x8xf32>
    %217 = vector.shape_cast %216 : vector<1x1x8x8xf32> to vector<8x8xf32>
    %218 = vector.shape_cast %212 : vector<8x8xf32> to vector<1x1x8x8xf32>
    tpu.vector_store %arg22[%c0_81, %c2, %c0_82, %c0_83], %218 {strides = array<i32>} : memref<1x4x8x8xf32, #tpu.memory_space<vmem>>, vector<1x1x8x8xf32>,
    %219 = vector.extract_strided_slice %137 {offsets = [0, 24], sizes = [8, 8], strides = [1, 1]} : vector<8x32xf32> to vector<8x8xf32>
    %220 = vector.extract_strided_slice %143 {offsets = [0, 24], sizes = [8, 8], strides = [1, 1]} : vector<8x64xf32> to vector<8x8xf32>
    %221 = vector.extract_strided_slice %143 {offsets = [0, 56], sizes = [8, 8], strides = [1, 1]} : vector<8x64xf32> to vector<8x8xf32>
    %222 = arith.truncf %219 : vector<8x8xf32> to vector<8x8xbf16>
    %223 = arith.truncf %220 : vector<8x8xf32> to vector<8x8xbf16>
    %cst_84 = arith.constant dense<0.000000e+00> : vector<8x8xf32>
    %224 = tpu.matmul %222, %223, %cst_84 {dimension_numbers = #tpu.dot_dimension_numbers<[1], [1], [0], [0], [0, 0, 1, 0], [], []>} : vector<8x8xbf16>, vector<8x8xbf16>, vector<8x8xf32> -> vector<8x8xf32>
    %cst_85 = arith.constant 0.353553385 : f32
    %225 = vector.broadcast %cst_85 : f32 to vector<8x8xf32>
    %226 = arith.mulf %224, %225 : vector<8x8xf32>
    %227 = arith.addf %226, %7 : vector<8x8xf32>
    %cst_86 = arith.constant dense<0xFF800000> : vector<8xf32>
    %228 = vector.multi_reduction <maximumf>, %227, %cst_86 [1] : vector<8x8xf32> to vector<8xf32>
    %229 = vector.shape_cast %228 : vector<8xf32> to vector<8x1xf32>
    %230 = vector.broadcast %229 : vector<8x1xf32> to vector<8x8xf32>
    %231 = arith.subf %227, %230 : vector<8x8xf32>
    %232 = math.exp %231 : vector<8x8xf32>
    %cst_87 = arith.constant dense<0.000000e+00> : vector<8xf32>
    %233 = vector.multi_reduction <add>, %232, %cst_87 [1] : vector<8x8xf32> to vector<8xf32>
    %234 = vector.shape_cast %233 : vector<8xf32> to vector<8x1xf32>
    %235 = tpu.reciprocal %234 {approx = true} : vector<8x1xf32> -> vector<8x1xf32>
    %236 = vector.broadcast %235 : vector<8x1xf32> to vector<8x8xf32>
    %237 = arith.mulf %232, %236 : vector<8x8xf32>
    %238 = arith.truncf %237 : vector<8x8xf32> to vector<8x8xbf16>
    %239 = arith.truncf %221 : vector<8x8xf32> to vector<8x8xbf16>
    %cst_88 = arith.constant dense<0.000000e+00> : vector<8x8xf32>
    %240 = tpu.matmul %238, %239, %cst_88 {dimension_numbers = #tpu.dot_dimension_numbers<[1], [0], [0], [1], [0, 0, 1, 1], [], []>} : vector<8x8xbf16>, vector<8x8xbf16>, vector<8x8xf32> -> vector<8x8xf32>
    %c0_89 = arith.constant 0 : index
    %c3 = arith.constant 3 : index
    %c0_90 = arith.constant 0 : index
    %c0_91 = arith.constant 0 : index
    %241 = vector.load %arg22[%c0_89, %c3, %c0_90, %c0_91] : memref<1x4x8x8xf32, #tpu.memory_space<vmem>>, vector<1x1x8x8xf32>
    %242 = vector.shape_cast %241 : vector<1x1x8x8xf32> to vector<8x8xf32>
    %243 = vector.shape_cast %237 : vector<8x8xf32> to vector<1x1x8x8xf32>
    tpu.vector_store %arg22[%c0_89, %c3, %c0_90, %c0_91], %243 {strides = array<i32>} : memref<1x4x8x8xf32, #tpu.memory_space<vmem>>, vector<1x1x8x8xf32>,
    %244 = tpu.concatenate %165, %190, %215, %240 in 1 : vector<8x8xf32>, vector<8x8xf32>, vector<8x8xf32>, vector<8x8xf32> -> vector<8x32xf32>
    %c0_92 = arith.constant 0 : index
    %c0_93 = arith.constant 0 : index
    %245 = vector.load %arg13[%c0_92, %c0_93] : memref<32x32xbf16, #tpu.memory_space<vmem>>, vector<32x32xbf16>
    %c0_94 = arith.constant 0 : index
    %c0_95 = arith.constant 0 : index
    %246 = vector.load %arg14[%c0_94, %c0_95] : memref<1x32xf32, #tpu.memory_space<vmem>>, vector<1x32xf32>
    %247 = arith.truncf %244 : vector<8x32xf32> to vector<8x32xbf16>
    %cst_96 = arith.constant dense<0.000000e+00> : vector<8x32xf32>
    %248 = tpu.matmul %247, %245, %cst_96 {dimension_numbers = #tpu.dot_dimension_numbers<[1], [0], [0], [1], [0, 0, 1, 1], [], []>} : vector<8x32xbf16>, vector<32x32xbf16>, vector<8x32xf32> -> vector<8x32xf32>
    %249 = vector.broadcast %246 : vector<1x32xf32> to vector<8x32xf32>
    %250 = arith.addf %248, %249 : vector<8x32xf32>
    %251 = arith.addf %111, %250 : vector<8x32xf32>
    %cst_97 = arith.constant dense<0.000000e+00> : vector<8xf32>
    %252 = vector.multi_reduction <add>, %251, %cst_97 [1] : vector<8x32xf32> to vector<8xf32>
    %253 = vector.shape_cast %252 : vector<8xf32> to vector<8x1xf32>
    %cst_98 = arith.constant 3.200000e+01 : f32
    %254 = vector.broadcast %cst_98 : f32 to vector<8x1xf32>
    %255 = arith.divf %253, %254 : vector<8x1xf32>
    %256 = vector.broadcast %255 : vector<8x1xf32> to vector<8x32xf32>
    %257 = arith.subf %251, %256 : vector<8x32xf32>
    %258 = arith.mulf %257, %257 : vector<8x32xf32>
    %cst_99 = arith.constant dense<0.000000e+00> : vector<8xf32>
    %259 = vector.multi_reduction <add>, %258, %cst_99 [1] : vector<8x32xf32> to vector<8xf32>
    %260 = vector.shape_cast %259 : vector<8xf32> to vector<8x1xf32>
    %cst_100 = arith.constant 3.200000e+01 : f32
    %261 = vector.broadcast %cst_100 : f32 to vector<8x1xf32>
    %262 = arith.divf %260, %261 : vector<8x1xf32>
    %cst_101 = arith.constant 9.99999997E-7 : f32
    %263 = vector.broadcast %cst_101 : f32 to vector<8x1xf32>
    %264 = arith.addf %262, %263 : vector<8x1xf32>
    %265 = math.rsqrt %264 : vector<8x1xf32>
    %266 = vector.broadcast %265 : vector<8x1xf32> to vector<8x32xf32>
    %267 = arith.mulf %257, %266 : vector<8x32xf32>
    %268 = vector.broadcast %8 : vector<1x32xf32> to vector<8x32xf32>
    %269 = arith.mulf %267, %268 : vector<8x32xf32>
    %270 = vector.broadcast %9 : vector<1x32xf32> to vector<8x32xf32>
    %271 = arith.addf %269, %270 : vector<8x32xf32>
    %c0_102 = arith.constant 0 : index
    %c0_103 = arith.constant 0 : index
    %272 = vector.load %arg15[%c0_102, %c0_103] : memref<32x64xbf16, #tpu.memory_space<vmem>>, vector<32x64xbf16>
    %c0_104 = arith.constant 0 : index
    %c0_105 = arith.constant 0 : index
    %273 = vector.load %arg16[%c0_104, %c0_105] : memref<1x64xf32, #tpu.memory_space<vmem>>, vector<1x64xf32>
    %274 = arith.truncf %271 : vector<8x32xf32> to vector<8x32xbf16>
    %cst_106 = arith.constant dense<0.000000e+00> : vector<8x64xf32>
    %275 = tpu.matmul %274, %272, %cst_106 {dimension_numbers = #tpu.dot_dimension_numbers<[1], [0], [0], [1], [0, 0, 1, 1], [], []>} : vector<8x32xbf16>, vector<32x64xbf16>, vector<8x64xf32> -> vector<8x64xf32>
    %276 = vector.broadcast %273 : vector<1x64xf32> to vector<8x64xf32>
    %277 = arith.addf %275, %276 : vector<8x64xf32>
    %cst_107 = arith.constant 0.000000e+00 : f32
    %278 = vector.broadcast %cst_107 : f32 to vector<8x64xf32>
    %279 = arith.maximumf %277, %278 : vector<8x64xf32>
    %c0_108 = arith.constant 0 : index
    %c0_109 = arith.constant 0 : index
    %280 = vector.load %arg17[%c0_108, %c0_109] : memref<64x32xbf16, #tpu.memory_space<vmem>>, vector<64x32xbf16>
    %c0_110 = arith.constant 0 : index
    %c0_111 = arith.constant 0 : index
    %281 = vector.load %arg18[%c0_110, %c0_111] : memref<1x32xf32, #tpu.memory_space<vmem>>, vector<1x32xf32>
    %282 = arith.truncf %279 : vector<8x64xf32> to vector<8x64xbf16>
    %cst_112 = arith.constant dense<0.000000e+00> : vector<8x32xf32>
    %283 = tpu.matmul %282, %280, %cst_112 {dimension_numbers = #tpu.dot_dimension_numbers<[1], [0], [0], [1], [0, 0, 1, 1], [], []>} : vector<8x64xbf16>, vector<64x32xbf16>, vector<8x32xf32> -> vector<8x32xf32>
    %284 = vector.broadcast %281 : vector<1x32xf32> to vector<8x32xf32>
    %285 = arith.addf %283, %284 : vector<8x32xf32>
    %286 = arith.addf %251, %285 : vector<8x32xf32>
    %cst_113 = arith.constant dense<0.000000e+00> : vector<8xf32>
    %287 = vector.multi_reduction <add>, %286, %cst_113 [1] : vector<8x32xf32> to vector<8xf32>
    %288 = vector.shape_cast %287 : vector<8xf32> to vector<8x1xf32>
    %cst_114 = arith.constant 3.200000e+01 : f32
    %289 = vector.broadcast %cst_114 : f32 to vector<8x1xf32>
    %290 = arith.divf %288, %289 : vector<8x1xf32>
    %291 = vector.broadcast %290 : vector<8x1xf32> to vector<8x32xf32>
    %292 = arith.subf %286, %291 : vector<8x32xf32>
    %293 = arith.mulf %292, %292 : vector<8x32xf32>
    %cst_115 = arith.constant dense<0.000000e+00> : vector<8xf32>
    %294 = vector.multi_reduction <add>, %293, %cst_115 [1] : vector<8x32xf32> to vector<8xf32>
    %295 = vector.shape_cast %294 : vector<8xf32> to vector<8x1xf32>
    %cst_116 = arith.constant 3.200000e+01 : f32
    %296 = vector.broadcast %cst_116 : f32 to vector<8x1xf32>
    %297 = arith.divf %295, %296 : vector<8x1xf32>
    %cst_117 = arith.constant 9.99999997E-7 : f32
    %298 = vector.broadcast %cst_117 : f32 to vector<8x1xf32>
    %299 = arith.addf %297, %298 : vector<8x1xf32>
    %300 = math.rsqrt %299 : vector<8x1xf32>
    %301 = vector.broadcast %300 : vector<8x1xf32> to vector<8x32xf32>
    %302 = arith.mulf %292, %301 : vector<8x32xf32>
    %303 = vector.broadcast %8 : vector<1x32xf32> to vector<8x32xf32>
    %304 = arith.mulf %302, %303 : vector<8x32xf32>
    %305 = vector.broadcast %9 : vector<1x32xf32> to vector<8x32xf32>
    %306 = arith.addf %304, %305 : vector<8x32xf32>
    %c0_118 = arith.constant 0 : index
    %c0_119 = arith.constant 0 : index
    %c0_120 = arith.constant 0 : index
    %307 = vector.load %arg21[%c0_118, %c0_119, %c0_120] : memref<1x8x32xf32, #tpu.memory_space<vmem>>, vector<1x8x32xf32>
    %308 = vector.shape_cast %307 : vector<1x8x32xf32> to vector<8x32xf32>
    %309 = vector.shape_cast %306 : vector<8x32xf32> to vector<1x8x32xf32>
    tpu.vector_store %arg21[%c0_118, %c0_119, %c0_120], %309 {strides = array<i32>} : memref<1x8x32xf32, #tpu.memory_space<vmem>>, vector<1x8x32xf32>,
    return
  }
  func.func @transform_0(%arg0: i32) -> (i32, i32, i32) {
    %c0_i32 = arith.constant 0 : i32
    %c0_i32_0 = arith.constant 0 : i32
    %c0_i32_1 = arith.constant 0 : i32
    return %arg0, %c0_i32, %c0_i32_0 : i32, i32, i32
  }
  func.func @transform_1(%arg0: i32) -> (i32, i32, i32) {
    %c0_i32 = arith.constant 0 : i32
    %c0_i32_0 = arith.constant 0 : i32
    %c0_i32_1 = arith.constant 0 : i32
    return %arg0, %c0_i32, %c0_i32_0 : i32, i32, i32
  }
  func.func @transform_2(%arg0: i32) -> (i32, i32, i32) {
    %c0_i32 = arith.constant 0 : i32
    %c0_i32_0 = arith.constant 0 : i32
    %c0_i32_1 = arith.constant 0 : i32
    return %arg0, %c0_i32, %c0_i32_0 : i32, i32, i32
  }
  func.func @transform_3(%arg0: i32) -> (i32, i32, i32) {
    %c0_i32 = arith.constant 0 : i32
    %c0_i32_0 = arith.constant 0 : i32
    %c0_i32_1 = arith.constant 0 : i32
    return %arg0, %c0_i32, %c0_i32_0 : i32, i32, i32
  }
  func.func @transform_4(%arg0: i32) -> (i32, i32) {
    %c0_i32 = arith.constant 0 : i32
    %c0_i32_0 = arith.constant 0 : i32
    %c0_i32_1 = arith.constant 0 : i32
    return %c0_i32, %c0_i32_0 : i32, i32
  }
  func.func @transform_5(%arg0: i32) -> (i32, i32) {
    %c0_i32 = arith.constant 0 : i32
    %c0_i32_0 = arith.constant 0 : i32
    %c0_i32_1 = arith.constant 0 : i32
    return %c0_i32, %c0_i32_0 : i32, i32
  }
  func.func @transform_6(%arg0: i32) -> (i32, i32) {
    %c0_i32 = arith.constant 0 : i32
    %c0_i32_0 = arith.constant 0 : i32
    %c0_i32_1 = arith.constant 0 : i32
    return %c0_i32, %c0_i32_0 : i32, i32
  }
  func.func @transform_7(%arg0: i32) -> (i32, i32) {
    %c0_i32 = arith.constant 0 : i32
    %c0_i32_0 = arith.constant 0 : i32
    %c0_i32_1 = arith.constant 0 : i32
    return %c0_i32, %c0_i32_0 : i32, i32
  }
  func.func @transform_8(%arg0: i32) -> (i32, i32) {
    %c0_i32 = arith.constant 0 : i32
    %c0_i32_0 = arith.constant 0 : i32
    %c0_i32_1 = arith.constant 0 : i32
    return %c0_i32, %c0_i32_0 : i32, i32
  }
  func.func @transform_9(%arg0: i32) -> (i32, i32) {
    %c0_i32 = arith.constant 0 : i32
    %c0_i32_0 = arith.constant 0 : i32
    %c0_i32_1 = arith.constant 0 : i32
    return %c0_i32, %c0_i32_0 : i32, i32
  }
  func.func @transform_10(%arg0: i32) -> (i32, i32) {
    %c0_i32 = arith.constant 0 : i32
    %c0_i32_0 = arith.constant 0 : i32
    %c0_i32_1 = arith.constant 0 : i32
    return %c0_i32, %c0_i32_0 : i32, i32
  }
  func.func @transform_11(%arg0: i32) -> (i32, i32) {
    %c0_i32 = arith.constant 0 : i32
    %c0_i32_0 = arith.constant 0 : i32
    %c0_i32_1 = arith.constant 0 : i32
    return %c0_i32, %c0_i32_0 : i32, i32
  }
  func.func @transform_12(%arg0: i32) -> (i32, i32) {
    %c0_i32 = arith.constant 0 : i32
    %c0_i32_0 = arith.constant 0 : i32
    %c0_i32_1 = arith.constant 0 : i32
    return %c0_i32, %c0_i32_0 : i32, i32
  }
  func.func @transform_13(%arg0: i32) -> (i32, i32) {
    %c0_i32 = arith.constant 0 : i32
    %c0_i32_0 = arith.constant 0 : i32
    %c0_i32_1 = arith.constant 0 : i32
    return %c0_i32, %c0_i32_0 : i32, i32
  }
  func.func @transform_14(%arg0: i32) -> (i32, i32) {
    %c0_i32 = arith.constant 0 : i32
    %c0_i32_0 = arith.constant 0 : i32
    %c0_i32_1 = arith.constant 0 : i32
    return %c0_i32, %c0_i32_0 : i32, i32
  }
  func.func @transform_15(%arg0: i32) -> (i32, i32) {
    %c0_i32 = arith.constant 0 : i32
    %c0_i32_0 = arith.constant 0 : i32
    %c0_i32_1 = arith.constant 0 : i32
    return %c0_i32, %c0_i32_0 : i32, i32
  }
  func.func @transform_16(%arg0: i32) -> (i32, i32) {
    %c0_i32 = arith.constant 0 : i32
    %c0_i32_0 = arith.constant 0 : i32
    %c0_i32_1 = arith.constant 0 : i32
    return %c0_i32, %c0_i32_0 : i32, i32
  }
  func.func @transform_17(%arg0: i32) -> (i32, i32) {
    %c0_i32 = arith.constant 0 : i32
    %c0_i32_0 = arith.constant 0 : i32
    %c0_i32_1 = arith.constant 0 : i32
    return %c0_i32, %c0_i32_0 : i32, i32
  }
  func.func @transform_18(%arg0: i32) -> (i32, i32) {
    %c0_i32 = arith.constant 0 : i32
    %c0_i32_0 = arith.constant 0 : i32
    %c0_i32_1 = arith.constant 0 : i32
    return %c0_i32, %c0_i32_0 : i32, i32
  }
  func.func @transform_19(%arg0: i32) -> (i32, i32) {
    %c0_i32 = arith.constant 0 : i32
    %c0_i32_0 = arith.constant 0 : i32
    %c0_i32_1 = arith.constant 0 : i32
    return %c0_i32, %c0_i32_0 : i32, i32
  }
  func.func @transform_20(%arg0: i32) -> (i32, i32, i32) {
    %c0_i32 = arith.constant 0 : i32
    %c0_i32_0 = arith.constant 0 : i32
    %c0_i32_1 = arith.constant 0 : i32
    return %arg0, %c0_i32, %c0_i32_0 : i32, i32, i32
  }
  func.func @transform_21(%arg0: i32) -> (i32, i32, i32, i32) {
    %c0_i32 = arith.constant 0 : i32
    %c0_i32_0 = arith.constant 0 : i32
    %c0_i32_1 = arith.constant 0 : i32
    %c0_i32_2 = arith.constant 0 : i32
    return %arg0, %c0_i32, %c0_i32_0, %c0_i32_1 : i32, i32, i32, i32
  }
}

module attributes {stable_mosaic.version = 11 : i64} {
  func.func @_vocab_proj_kernel(%arg0: i32, %arg1: memref<1x8x32xf32, #tpu.memory_space<vmem>>, %arg2: memref<128x32xbf16, #tpu.memory_space<vmem>>, %arg3: memref<1x8x128xf32, #tpu.memory_space<vmem>>) attributes {dimension_semantics = [#tpu.dimension_semantics<parallel>], iteration_bounds = array<i64: 2>, scalar_prefetch = 0 : i64, scratch_operands = 0 : i64, tpu.core_type = #tpu.core_type<tc>, window_params = [{transform_indices = @transform_0, window_bounds = array<i64: 1, 8, 32>}, {pipeline_mode = #tpu.pipeline_mode<synchronous>, transform_indices = @transform_1, window_bounds = array<i64: 128, 32>}, {transform_indices = @transform_2, window_bounds = array<i64: 1, 8, 128>}]} {
    %c0 = arith.constant 0 : index
    %c0_0 = arith.constant 0 : index
    %c0_1 = arith.constant 0 : index
    %0 = vector.load %arg1[%c0, %c0_0, %c0_1] : memref<1x8x32xf32, #tpu.memory_space<vmem>>, vector<1x8x32xf32>
    %1 = vector.shape_cast %0 : vector<1x8x32xf32> to vector<8x32xf32>
    %2 = arith.truncf %1 : vector<8x32xf32> to vector<8x32xbf16>
    %c0_2 = arith.constant 0 : index
    %c0_3 = arith.constant 0 : index
    %3 = vector.load %arg2[%c0_2, %c0_3] : memref<128x32xbf16, #tpu.memory_space<vmem>>, vector<128x32xbf16>
    %cst = arith.constant dense<0.000000e+00> : vector<8x128xf32>
    %4 = tpu.matmul %2, %3, %cst {dimension_numbers = #tpu.dot_dimension_numbers<[1], [1], [0], [0], [0, 0, 1, 0], [], []>} : vector<8x32xbf16>, vector<128x32xbf16>, vector<8x128xf32> -> vector<8x128xf32>
    %c0_4 = arith.constant 0 : index
    %c0_5 = arith.constant 0 : index
    %c0_6 = arith.constant 0 : index
    %5 = vector.load %arg3[%c0_4, %c0_5, %c0_6] : memref<1x8x128xf32, #tpu.memory_space<vmem>>, vector<1x8x128xf32>
    %6 = vector.shape_cast %5 : vector<1x8x128xf32> to vector<8x128xf32>
    %7 = vector.shape_cast %4 : vector<8x128xf32> to vector<1x8x128xf32>
    tpu.vector_store %arg3[%c0_4, %c0_5, %c0_6], %7 {strides = array<i32>} : memref<1x8x128xf32, #tpu.memory_space<vmem>>, vector<1x8x128xf32>,
    return
  }
  func.func @transform_0(%arg0: i32) -> (i32, i32, i32) {
    %c0_i32 = arith.constant 0 : i32
    %c0_i32_0 = arith.constant 0 : i32
    %c0_i32_1 = arith.constant 0 : i32
    return %arg0, %c0_i32, %c0_i32_0 : i32, i32, i32
  }
  func.func @transform_1(%arg0: i32) -> (i32, i32) {
    %c0_i32 = arith.constant 0 : i32
    %c0_i32_0 = arith.constant 0 : i32
    %c0_i32_1 = arith.constant 0 : i32
    return %c0_i32, %c0_i32_0 : i32, i32
  }
  func.func @transform_2(%arg0: i32) -> (i32, i32, i32) {
    %c0_i32 = arith.constant 0 : i32
    %c0_i32_0 = arith.constant 0 : i32
    %c0_i32_1 = arith.constant 0 : i32
    return %arg0, %c0_i32, %c0_i32_0 : i32, i32, i32
  }
}

module attributes {stable_mosaic.version = 11 : i64} {
  func.func @_decoder_layer_kernel(%arg0: i32, %arg1: memref<1x8x32xf32, #tpu.memory_space<vmem>>, %arg2: memref<1x8x32xf32, #tpu.memory_space<vmem>>, %arg3: memref<1x8x8xf32, #tpu.memory_space<vmem>>, %arg4: memref<1x8x8xf32, #tpu.memory_space<vmem>>, %arg5: memref<32x96xbf16, #tpu.memory_space<vmem>>, %arg6: memref<1x96xf32, #tpu.memory_space<vmem>>, %arg7: memref<32x32xbf16, #tpu.memory_space<vmem>>, %arg8: memref<1x32xf32, #tpu.memory_space<vmem>>, %arg9: memref<32x32xbf16, #tpu.memory_space<vmem>>, %arg10: memref<1x32xf32, #tpu.memory_space<vmem>>, %arg11: memref<32x64xbf16, #tpu.memory_space<vmem>>, %arg12: memref<1x64xf32, #tpu.memory_space<vmem>>, %arg13: memref<32x32xbf16, #tpu.memory_space<vmem>>, %arg14: memref<1x32xf32, #tpu.memory_space<vmem>>, %arg15: memref<32x64xbf16, #tpu.memory_space<vmem>>, %arg16: memref<1x64xf32, #tpu.memory_space<vmem>>, %arg17: memref<64x32xbf16, #tpu.memory_space<vmem>>, %arg18: memref<1x32xf32, #tpu.memory_space<vmem>>, %arg19: memref<1x32xf32, #tpu.memory_space<vmem>>, %arg20: memref<1x32xf32, #tpu.memory_space<vmem>>, %arg21: memref<1x8x32xf32, #tpu.memory_space<vmem>>) attributes {dimension_semantics = [#tpu.dimension_semantics<parallel>], iteration_bounds = array<i64: 2>, scalar_prefetch = 0 : i64, scratch_operands = 0 : i64, tpu.core_type = #tpu.core_type<tc>, window_params = [{transform_indices = @transform_0, window_bounds = array<i64: 1, 8, 32>}, {transform_indices = @transform_1, window_bounds = array<i64: 1, 8, 32>}, {transform_indices = @transform_2, window_bounds = array<i64: 1, 8, 8>}, {transform_indices = @transform_3, window_bounds = array<i64: 1, 8, 8>}, {pipeline_mode = #tpu.pipeline_mode<synchronous>, transform_indices = @transform_4, window_bounds = array<i64: 32, 96>}, {pipeline_mode = #tpu.pipeline_mode<synchronous>, transform_indices = @transform_5, window_bounds = array<i64: 1, 96>}, {pipeline_mode = #tpu.pipeline_mode<synchronous>, transform_indices = @transform_6, window_bounds = array<i64: 32, 32>}, {pipeline_mode = #tpu.pipeline_mode<synchronous>, transform_indices = @transform_7, window_bounds = array<i64: 1, 32>}, {pipeline_mode = #tpu.pipeline_mode<synchronous>, transform_indices = @transform_8, window_bounds = array<i64: 32, 32>}, {pipeline_mode = #tpu.pipeline_mode<synchronous>, transform_indices = @transform_9, window_bounds = array<i64: 1, 32>}, {pipeline_mode = #tpu.pipeline_mode<synchronous>, transform_indices = @transform_10, window_bounds = array<i64: 32, 64>}, {pipeline_mode = #tpu.pipeline_mode<synchronous>, transform_indices = @transform_11, window_bounds = array<i64: 1, 64>}, {pipeline_mode = #tpu.pipeline_mode<synchronous>, transform_indices = @transform_12, window_bounds = array<i64: 32, 32>}, {pipeline_mode = #tpu.pipeline_mode<synchronous>, transform_indices = @transform_13, window_bounds = array<i64: 1, 32>}, {pipeline_mode = #tpu.pipeline_mode<synchronous>, transform_indices = @transform_14, window_bounds = array<i64: 32, 64>}, {pipeline_mode = #tpu.pipeline_mode<synchronous>, transform_indices = @transform_15, window_bounds = array<i64: 1, 64>}, {pipeline_mode = #tpu.pipeline_mode<synchronous>, transform_indices = @transform_16, window_bounds = array<i64: 64, 32>}, {pipeline_mode = #tpu.pipeline_mode<synchronous>, transform_indices = @transform_17, window_bounds = array<i64: 1, 32>}, {pipeline_mode = #tpu.pipeline_mode<synchronous>, transform_indices = @transform_18, window_bounds = array<i64: 1, 32>}, {pipeline_mode = #tpu.pipeline_mode<synchronous>, transform_indices = @transform_19, window_bounds = array<i64: 1, 32>}, {transform_indices = @transform_20, window_bounds = array<i64: 1, 8, 32>}]} {
    %c0 = arith.constant 0 : index
    %c0_0 = arith.constant 0 : index
    %c0_1 = arith.constant 0 : index
    %0 = vector.load %arg1[%c0, %c0_0, %c0_1] : memref<1x8x32xf32, #tpu.memory_space<vmem>>, vector<1x8x32xf32>
    %1 = vector.shape_cast %0 : vector<1x8x32xf32> to vector<8x32xf32>
    %c0_2 = arith.constant 0 : index
    %c0_3 = arith.constant 0 : index
    %c0_4 = arith.constant 0 : index
    %2 = vector.load %arg2[%c0_2, %c0_3, %c0_4] : memref<1x8x32xf32, #tpu.memory_space<vmem>>, vector<1x8x32xf32>
    %3 = vector.shape_cast %2 : vector<1x8x32xf32> to vector<8x32xf32>
    %c0_5 = arith.constant 0 : index
    %c0_6 = arith.constant 0 : index
    %c0_7 = arith.constant 0 : index
    %4 = vector.load %arg3[%c0_5, %c0_6, %c0_7] : memref<1x8x8xf32, #tpu.memory_space<vmem>>, vector<1x8x8xf32>
    %5 = vector.shape_cast %4 : vector<1x8x8xf32> to vector<8x8xf32>
    %c0_8 = arith.constant 0 : index
    %c0_9 = arith.constant 0 : index
    %c0_10 = arith.constant 0 : index
    %6 = vector.load %arg4[%c0_8, %c0_9, %c0_10] : memref<1x8x8xf32, #tpu.memory_space<vmem>>, vector<1x8x8xf32>
    %7 = vector.shape_cast %6 : vector<1x8x8xf32> to vector<8x8xf32>
    %c0_11 = arith.constant 0 : index
    %c0_12 = arith.constant 0 : index
    %8 = vector.load %arg19[%c0_11, %c0_12] : memref<1x32xf32, #tpu.memory_space<vmem>>, vector<1x32xf32>
    %c0_13 = arith.constant 0 : index
    %c0_14 = arith.constant 0 : index
    %9 = vector.load %arg20[%c0_13, %c0_14] : memref<1x32xf32, #tpu.memory_space<vmem>>, vector<1x32xf32>
    %c0_15 = arith.constant 0 : index
    %c0_16 = arith.constant 0 : index
    %10 = vector.load %arg5[%c0_15, %c0_16] : memref<32x96xbf16, #tpu.memory_space<vmem>>, vector<32x96xbf16>
    %c0_17 = arith.constant 0 : index
    %c0_18 = arith.constant 0 : index
    %11 = vector.load %arg6[%c0_17, %c0_18] : memref<1x96xf32, #tpu.memory_space<vmem>>, vector<1x96xf32>
    %12 = arith.truncf %1 : vector<8x32xf32> to vector<8x32xbf16>
    %cst = arith.constant dense<0.000000e+00> : vector<8x96xf32>
    %13 = tpu.matmul %12, %10, %cst {dimension_numbers = #tpu.dot_dimension_numbers<[1], [0], [0], [1], [0, 0, 1, 1], [], []>} : vector<8x32xbf16>, vector<32x96xbf16>, vector<8x96xf32> -> vector<8x96xf32>
    %14 = vector.broadcast %11 : vector<1x96xf32> to vector<8x96xf32>
    %15 = arith.addf %13, %14 : vector<8x96xf32>
    %16 = vector.extract_strided_slice %15 {offsets = [0, 0], sizes = [8, 8], strides = [1, 1]} : vector<8x96xf32> to vector<8x8xf32>
    %17 = vector.extract_strided_slice %15 {offsets = [0, 32], sizes = [8, 8], strides = [1, 1]} : vector<8x96xf32> to vector<8x8xf32>
    %18 = vector.extract_strided_slice %15 {offsets = [0, 64], sizes = [8, 8], strides = [1, 1]} : vector<8x96xf32> to vector<8x8xf32>
    %19 = arith.truncf %16 : vector<8x8xf32> to vector<8x8xbf16>
    %20 = arith.truncf %17 : vector<8x8xf32> to vector<8x8xbf16>
    %cst_19 = arith.constant dense<0.000000e+00> : vector<8x8xf32>
    %21 = tpu.matmul %19, %20, %cst_19 {dimension_numbers = #tpu.dot_dimension_numbers<[1], [1], [0], [0], [0, 0, 1, 0], [], []>} : vector<8x8xbf16>, vector<8x8xbf16>, vector<8x8xf32> -> vector<8x8xf32>
    %cst_20 = arith.constant 0.353553385 : f32
    %22 = vector.broadcast %cst_20 : f32 to vector<8x8xf32>
    %23 = arith.mulf %21, %22 : vector<8x8xf32>
    %24 = arith.addf %23, %5 : vector<8x8xf32>
    %cst_21 = arith.constant dense<0xFF800000> : vector<8xf32>
    %25 = vector.multi_reduction <maximumf>, %24, %cst_21 [1] : vector<8x8xf32> to vector<8xf32>
    %26 = vector.shape_cast %25 : vector<8xf32> to vector<8x1xf32>
    %27 = vector.broadcast %26 : vector<8x1xf32> to vector<8x8xf32>
    %28 = arith.subf %24, %27 : vector<8x8xf32>
    %29 = math.exp %28 : vector<8x8xf32>
    %cst_22 = arith.constant dense<0.000000e+00> : vector<8xf32>
    %30 = vector.multi_reduction <add>, %29, %cst_22 [1] : vector<8x8xf32> to vector<8xf32>
    %31 = vector.shape_cast %30 : vector<8xf32> to vector<8x1xf32>
    %32 = tpu.reciprocal %31 {approx = true} : vector<8x1xf32> -> vector<8x1xf32>
    %33 = vector.broadcast %32 : vector<8x1xf32> to vector<8x8xf32>
    %34 = arith.mulf %29, %33 : vector<8x8xf32>
    %35 = arith.truncf %34 : vector<8x8xf32> to vector<8x8xbf16>
    %36 = arith.truncf %18 : vector<8x8xf32> to vector<8x8xbf16>
    %cst_23 = arith.constant dense<0.000000e+00> : vector<8x8xf32>
    %37 = tpu.matmul %35, %36, %cst_23 {dimension_numbers = #tpu.dot_dimension_numbers<[1], [0], [0], [1], [0, 0, 1, 1], [], []>} : vector<8x8xbf16>, vector<8x8xbf16>, vector<8x8xf32> -> vector<8x8xf32>
    %38 = vector.extract_strided_slice %15 {offsets = [0, 8], sizes = [8, 8], strides = [1, 1]} : vector<8x96xf32> to vector<8x8xf32>
    %39 = vector.extract_strided_slice %15 {offsets = [0, 40], sizes = [8, 8], strides = [1, 1]} : vector<8x96xf32> to vector<8x8xf32>
    %40 = vector.extract_strided_slice %15 {offsets = [0, 72], sizes = [8, 8], strides = [1, 1]} : vector<8x96xf32> to vector<8x8xf32>
    %41 = arith.truncf %38 : vector<8x8xf32> to vector<8x8xbf16>
    %42 = arith.truncf %39 : vector<8x8xf32> to vector<8x8xbf16>
    %cst_24 = arith.constant dense<0.000000e+00> : vector<8x8xf32>
    %43 = tpu.matmul %41, %42, %cst_24 {dimension_numbers = #tpu.dot_dimension_numbers<[1], [1], [0], [0], [0, 0, 1, 0], [], []>} : vector<8x8xbf16>, vector<8x8xbf16>, vector<8x8xf32> -> vector<8x8xf32>
    %cst_25 = arith.constant 0.353553385 : f32
    %44 = vector.broadcast %cst_25 : f32 to vector<8x8xf32>
    %45 = arith.mulf %43, %44 : vector<8x8xf32>
    %46 = arith.addf %45, %5 : vector<8x8xf32>
    %cst_26 = arith.constant dense<0xFF800000> : vector<8xf32>
    %47 = vector.multi_reduction <maximumf>, %46, %cst_26 [1] : vector<8x8xf32> to vector<8xf32>
    %48 = vector.shape_cast %47 : vector<8xf32> to vector<8x1xf32>
    %49 = vector.broadcast %48 : vector<8x1xf32> to vector<8x8xf32>
    %50 = arith.subf %46, %49 : vector<8x8xf32>
    %51 = math.exp %50 : vector<8x8xf32>
    %cst_27 = arith.constant dense<0.000000e+00> : vector<8xf32>
    %52 = vector.multi_reduction <add>, %51, %cst_27 [1] : vector<8x8xf32> to vector<8xf32>
    %53 = vector.shape_cast %52 : vector<8xf32> to vector<8x1xf32>
    %54 = tpu.reciprocal %53 {approx = true} : vector<8x1xf32> -> vector<8x1xf32>
    %55 = vector.broadcast %54 : vector<8x1xf32> to vector<8x8xf32>
    %56 = arith.mulf %51, %55 : vector<8x8xf32>
    %57 = arith.truncf %56 : vector<8x8xf32> to vector<8x8xbf16>
    %58 = arith.truncf %40 : vector<8x8xf32> to vector<8x8xbf16>
    %cst_28 = arith.constant dense<0.000000e+00> : vector<8x8xf32>
    %59 = tpu.matmul %57, %58, %cst_28 {dimension_numbers = #tpu.dot_dimension_numbers<[1], [0], [0], [1], [0, 0, 1, 1], [], []>} : vector<8x8xbf16>, vector<8x8xbf16>, vector<8x8xf32> -> vector<8x8xf32>
    %60 = vector.extract_strided_slice %15 {offsets = [0, 16], sizes = [8, 8], strides = [1, 1]} : vector<8x96xf32> to vector<8x8xf32>
    %61 = vector.extract_strided_slice %15 {offsets = [0, 48], sizes = [8, 8], strides = [1, 1]} : vector<8x96xf32> to vector<8x8xf32>
    %62 = vector.extract_strided_slice %15 {offsets = [0, 80], sizes = [8, 8], strides = [1, 1]} : vector<8x96xf32> to vector<8x8xf32>
    %63 = arith.truncf %60 : vector<8x8xf32> to vector<8x8xbf16>
    %64 = arith.truncf %61 : vector<8x8xf32> to vector<8x8xbf16>
    %cst_29 = arith.constant dense<0.000000e+00> : vector<8x8xf32>
    %65 = tpu.matmul %63, %64, %cst_29 {dimension_numbers = #tpu.dot_dimension_numbers<[1], [1], [0], [0], [0, 0, 1, 0], [], []>} : vector<8x8xbf16>, vector<8x8xbf16>, vector<8x8xf32> -> vector<8x8xf32>
    %cst_30 = arith.constant 0.353553385 : f32
    %66 = vector.broadcast %cst_30 : f32 to vector<8x8xf32>
    %67 = arith.mulf %65, %66 : vector<8x8xf32>
    %68 = arith.addf %67, %5 : vector<8x8xf32>
    %cst_31 = arith.constant dense<0xFF800000> : vector<8xf32>
    %69 = vector.multi_reduction <maximumf>, %68, %cst_31 [1] : vector<8x8xf32> to vector<8xf32>
    %70 = vector.shape_cast %69 : vector<8xf32> to vector<8x1xf32>
    %71 = vector.broadcast %70 : vector<8x1xf32> to vector<8x8xf32>
    %72 = arith.subf %68, %71 : vector<8x8xf32>
    %73 = math.exp %72 : vector<8x8xf32>
    %cst_32 = arith.constant dense<0.000000e+00> : vector<8xf32>
    %74 = vector.multi_reduction <add>, %73, %cst_32 [1] : vector<8x8xf32> to vector<8xf32>
    %75 = vector.shape_cast %74 : vector<8xf32> to vector<8x1xf32>
    %76 = tpu.reciprocal %75 {approx = true} : vector<8x1xf32> -> vector<8x1xf32>
    %77 = vector.broadcast %76 : vector<8x1xf32> to vector<8x8xf32>
    %78 = arith.mulf %73, %77 : vector<8x8xf32>
    %79 = arith.truncf %78 : vector<8x8xf32> to vector<8x8xbf16>
    %80 = arith.truncf %62 : vector<8x8xf32> to vector<8x8xbf16>
    %cst_33 = arith.constant dense<0.000000e+00> : vector<8x8xf32>
    %81 = tpu.matmul %79, %80, %cst_33 {dimension_numbers = #tpu.dot_dimension_numbers<[1], [0], [0], [1], [0, 0, 1, 1], [], []>} : vector<8x8xbf16>, vector<8x8xbf16>, vector<8x8xf32> -> vector<8x8xf32>
    %82 = vector.extract_strided_slice %15 {offsets = [0, 24], sizes = [8, 8], strides = [1, 1]} : vector<8x96xf32> to vector<8x8xf32>
    %83 = vector.extract_strided_slice %15 {offsets = [0, 56], sizes = [8, 8], strides = [1, 1]} : vector<8x96xf32> to vector<8x8xf32>
    %84 = vector.extract_strided_slice %15 {offsets = [0, 88], sizes = [8, 8], strides = [1, 1]} : vector<8x96xf32> to vector<8x8xf32>
    %85 = arith.truncf %82 : vector<8x8xf32> to vector<8x8xbf16>
    %86 = arith.truncf %83 : vector<8x8xf32> to vector<8x8xbf16>
    %cst_34 = arith.constant dense<0.000000e+00> : vector<8x8xf32>
    %87 = tpu.matmul %85, %86, %cst_34 {dimension_numbers = #tpu.dot_dimension_numbers<[1], [1], [0], [0], [0, 0, 1, 0], [], []>} : vector<8x8xbf16>, vector<8x8xbf16>, vector<8x8xf32> -> vector<8x8xf32>
    %cst_35 = arith.constant 0.353553385 : f32
    %88 = vector.broadcast %cst_35 : f32 to vector<8x8xf32>
    %89 = arith.mulf %87, %88 : vector<8x8xf32>
    %90 = arith.addf %89, %5 : vector<8x8xf32>
    %cst_36 = arith.constant dense<0xFF800000> : vector<8xf32>
    %91 = vector.multi_reduction <maximumf>, %90, %cst_36 [1] : vector<8x8xf32> to vector<8xf32>
    %92 = vector.shape_cast %91 : vector<8xf32> to vector<8x1xf32>
    %93 = vector.broadcast %92 : vector<8x1xf32> to vector<8x8xf32>
    %94 = arith.subf %90, %93 : vector<8x8xf32>
    %95 = math.exp %94 : vector<8x8xf32>
    %cst_37 = arith.constant dense<0.000000e+00> : vector<8xf32>
    %96 = vector.multi_reduction <add>, %95, %cst_37 [1] : vector<8x8xf32> to vector<8xf32>
    %97 = vector.shape_cast %96 : vector<8xf32> to vector<8x1xf32>
    %98 = tpu.reciprocal %97 {approx = true} : vector<8x1xf32> -> vector<8x1xf32>
    %99 = vector.broadcast %98 : vector<8x1xf32> to vector<8x8xf32>
    %100 = arith.mulf %95, %99 : vector<8x8xf32>
    %101 = arith.truncf %100 : vector<8x8xf32> to vector<8x8xbf16>
    %102 = arith.truncf %84 : vector<8x8xf32> to vector<8x8xbf16>
    %cst_38 = arith.constant dense<0.000000e+00> : vector<8x8xf32>
    %103 = tpu.matmul %101, %102, %cst_38 {dimension_numbers = #tpu.dot_dimension_numbers<[1], [0], [0], [1], [0, 0, 1, 1], [], []>} : vector<8x8xbf16>, vector<8x8xbf16>, vector<8x8xf32> -> vector<8x8xf32>
    %104 = tpu.concatenate %37, %59, %81, %103 in 1 : vector<8x8xf32>, vector<8x8xf32>, vector<8x8xf32>, vector<8x8xf32> -> vector<8x32xf32>
    %c0_39 = arith.constant 0 : index
    %c0_40 = arith.constant 0 : index
    %105 = vector.load %arg7[%c0_39, %c0_40] : memref<32x32xbf16, #tpu.memory_space<vmem>>, vector<32x32xbf16>
    %c0_41 = arith.constant 0 : index
    %c0_42 = arith.constant 0 : index
    %106 = vector.load %arg8[%c0_41, %c0_42] : memref<1x32xf32, #tpu.memory_space<vmem>>, vector<1x32xf32>
    %107 = arith.truncf %104 : vector<8x32xf32> to vector<8x32xbf16>
    %cst_43 = arith.constant dense<0.000000e+00> : vector<8x32xf32>
    %108 = tpu.matmul %107, %105, %cst_43 {dimension_numbers = #tpu.dot_dimension_numbers<[1], [0], [0], [1], [0, 0, 1, 1], [], []>} : vector<8x32xbf16>, vector<32x32xbf16>, vector<8x32xf32> -> vector<8x32xf32>
    %109 = vector.broadcast %106 : vector<1x32xf32> to vector<8x32xf32>
    %110 = arith.addf %108, %109 : vector<8x32xf32>
    %111 = arith.addf %1, %110 : vector<8x32xf32>
    %cst_44 = arith.constant dense<0.000000e+00> : vector<8xf32>
    %112 = vector.multi_reduction <add>, %111, %cst_44 [1] : vector<8x32xf32> to vector<8xf32>
    %113 = vector.shape_cast %112 : vector<8xf32> to vector<8x1xf32>
    %cst_45 = arith.constant 3.200000e+01 : f32
    %114 = vector.broadcast %cst_45 : f32 to vector<8x1xf32>
    %115 = arith.divf %113, %114 : vector<8x1xf32>
    %116 = vector.broadcast %115 : vector<8x1xf32> to vector<8x32xf32>
    %117 = arith.subf %111, %116 : vector<8x32xf32>
    %118 = arith.mulf %117, %117 : vector<8x32xf32>
    %cst_46 = arith.constant dense<0.000000e+00> : vector<8xf32>
    %119 = vector.multi_reduction <add>, %118, %cst_46 [1] : vector<8x32xf32> to vector<8xf32>
    %120 = vector.shape_cast %119 : vector<8xf32> to vector<8x1xf32>
    %cst_47 = arith.constant 3.200000e+01 : f32
    %121 = vector.broadcast %cst_47 : f32 to vector<8x1xf32>
    %122 = arith.divf %120, %121 : vector<8x1xf32>
    %cst_48 = arith.constant 9.99999997E-7 : f32
    %123 = vector.broadcast %cst_48 : f32 to vector<8x1xf32>
    %124 = arith.addf %122, %123 : vector<8x1xf32>
    %125 = math.rsqrt %124 : vector<8x1xf32>
    %126 = vector.broadcast %125 : vector<8x1xf32> to vector<8x32xf32>
    %127 = arith.mulf %117, %126 : vector<8x32xf32>
    %128 = vector.broadcast %8 : vector<1x32xf32> to vector<8x32xf32>
    %129 = arith.mulf %127, %128 : vector<8x32xf32>
    %130 = vector.broadcast %9 : vector<1x32xf32> to vector<8x32xf32>
    %131 = arith.addf %129, %130 : vector<8x32xf32>
    %c0_49 = arith.constant 0 : index
    %c0_50 = arith.constant 0 : index
    %132 = vector.load %arg9[%c0_49, %c0_50] : memref<32x32xbf16, #tpu.memory_space<vmem>>, vector<32x32xbf16>
    %c0_51 = arith.constant 0 : index
    %c0_52 = arith.constant 0 : index
    %133 = vector.load %arg10[%c0_51, %c0_52] : memref<1x32xf32, #tpu.memory_space<vmem>>, vector<1x32xf32>
    %134 = arith.truncf %131 : vector<8x32xf32> to vector<8x32xbf16>
    %cst_53 = arith.constant dense<0.000000e+00> : vector<8x32xf32>
    %135 = tpu.matmul %134, %132, %cst_53 {dimension_numbers = #tpu.dot_dimension_numbers<[1], [0], [0], [1], [0, 0, 1, 1], [], []>} : vector<8x32xbf16>, vector<32x32xbf16>, vector<8x32xf32> -> vector<8x32xf32>
    %136 = vector.broadcast %133 : vector<1x32xf32> to vector<8x32xf32>
    %137 = arith.addf %135, %136 : vector<8x32xf32>
    %c0_54 = arith.constant 0 : index
    %c0_55 = arith.constant 0 : index
    %138 = vector.load %arg11[%c0_54, %c0_55] : memref<32x64xbf16, #tpu.memory_space<vmem>>, vector<32x64xbf16>
    %c0_56 = arith.constant 0 : index
    %c0_57 = arith.constant 0 : index
    %139 = vector.load %arg12[%c0_56, %c0_57] : memref<1x64xf32, #tpu.memory_space<vmem>>, vector<1x64xf32>
    %140 = arith.truncf %3 : vector<8x32xf32> to vector<8x32xbf16>
    %cst_58 = arith.constant dense<0.000000e+00> : vector<8x64xf32>
    %141 = tpu.matmul %140, %138, %cst_58 {dimension_numbers = #tpu.dot_dimension_numbers<[1], [0], [0], [1], [0, 0, 1, 1], [], []>} : vector<8x32xbf16>, vector<32x64xbf16>, vector<8x64xf32> -> vector<8x64xf32>
    %142 = vector.broadcast %139 : vector<1x64xf32> to vector<8x64xf32>
    %143 = arith.addf %141, %142 : vector<8x64xf32>
    %144 = vector.extract_strided_slice %137 {offsets = [0, 0], sizes = [8, 8], strides = [1, 1]} : vector<8x32xf32> to vector<8x8xf32>
    %145 = vector.extract_strided_slice %143 {offsets = [0, 0], sizes = [8, 8], strides = [1, 1]} : vector<8x64xf32> to vector<8x8xf32>
    %146 = vector.extract_strided_slice %143 {offsets = [0, 32], sizes = [8, 8], strides = [1, 1]} : vector<8x64xf32> to vector<8x8xf32>
    %147 = arith.truncf %144 : vector<8x8xf32> to vector<8x8xbf16>
    %148 = arith.truncf %145 : vector<8x8xf32> to vector<8x8xbf16>
    %cst_59 = arith.constant dense<0.000000e+00> : vector<8x8xf32>
    %149 = tpu.matmul %147, %148, %cst_59 {dimension_numbers = #tpu.dot_dimension_numbers<[1], [1], [0], [0], [0, 0, 1, 0], [], []>} : vector<8x8xbf16>, vector<8x8xbf16>, vector<8x8xf32> -> vector<8x8xf32>
    %cst_60 = arith.constant 0.353553385 : f32
    %150 = vector.broadcast %cst_60 : f32 to vector<8x8xf32>
    %151 = arith.mulf %149, %150 : vector<8x8xf32>
    %152 = arith.addf %151, %7 : vector<8x8xf32>
    %cst_61 = arith.constant dense<0xFF800000> : vector<8xf32>
    %153 = vector.multi_reduction <maximumf>, %152, %cst_61 [1] : vector<8x8xf32> to vector<8xf32>
    %154 = vector.shape_cast %153 : vector<8xf32> to vector<8x1xf32>
    %155 = vector.broadcast %154 : vector<8x1xf32> to vector<8x8xf32>
    %156 = arith.subf %152, %155 : vector<8x8xf32>
    %157 = math.exp %156 : vector<8x8xf32>
    %cst_62 = arith.constant dense<0.000000e+00> : vector<8xf32>
    %158 = vector.multi_reduction <add>, %157, %cst_62 [1] : vector<8x8xf32> to vector<8xf32>
    %159 = vector.shape_cast %158 : vector<8xf32> to vector<8x1xf32>
    %160 = tpu.reciprocal %159 {approx = true} : vector<8x1xf32> -> vector<8x1xf32>
    %161 = vector.broadcast %160 : vector<8x1xf32> to vector<8x8xf32>
    %162 = arith.mulf %157, %161 : vector<8x8xf32>
    %163 = arith.truncf %162 : vector<8x8xf32> to vector<8x8xbf16>
    %164 = arith.truncf %146 : vector<8x8xf32> to vector<8x8xbf16>
    %cst_63 = arith.constant dense<0.000000e+00> : vector<8x8xf32>
    %165 = tpu.matmul %163, %164, %cst_63 {dimension_numbers = #tpu.dot_dimension_numbers<[1], [0], [0], [1], [0, 0, 1, 1], [], []>} : vector<8x8xbf16>, vector<8x8xbf16>, vector<8x8xf32> -> vector<8x8xf32>
    %166 = vector.extract_strided_slice %137 {offsets = [0, 8], sizes = [8, 8], strides = [1, 1]} : vector<8x32xf32> to vector<8x8xf32>
    %167 = vector.extract_strided_slice %143 {offsets = [0, 8], sizes = [8, 8], strides = [1, 1]} : vector<8x64xf32> to vector<8x8xf32>
    %168 = vector.extract_strided_slice %143 {offsets = [0, 40], sizes = [8, 8], strides = [1, 1]} : vector<8x64xf32> to vector<8x8xf32>
    %169 = arith.truncf %166 : vector<8x8xf32> to vector<8x8xbf16>
    %170 = arith.truncf %167 : vector<8x8xf32> to vector<8x8xbf16>
    %cst_64 = arith.constant dense<0.000000e+00> : vector<8x8xf32>
    %171 = tpu.matmul %169, %170, %cst_64 {dimension_numbers = #tpu.dot_dimension_numbers<[1], [1], [0], [0], [0, 0, 1, 0], [], []>} : vector<8x8xbf16>, vector<8x8xbf16>, vector<8x8xf32> -> vector<8x8xf32>
    %cst_65 = arith.constant 0.353553385 : f32
    %172 = vector.broadcast %cst_65 : f32 to vector<8x8xf32>
    %173 = arith.mulf %171, %172 : vector<8x8xf32>
    %174 = arith.addf %173, %7 : vector<8x8xf32>
    %cst_66 = arith.constant dense<0xFF800000> : vector<8xf32>
    %175 = vector.multi_reduction <maximumf>, %174, %cst_66 [1] : vector<8x8xf32> to vector<8xf32>
    %176 = vector.shape_cast %175 : vector<8xf32> to vector<8x1xf32>
    %177 = vector.broadcast %176 : vector<8x1xf32> to vector<8x8xf32>
    %178 = arith.subf %174, %177 : vector<8x8xf32>
    %179 = math.exp %178 : vector<8x8xf32>
    %cst_67 = arith.constant dense<0.000000e+00> : vector<8xf32>
    %180 = vector.multi_reduction <add>, %179, %cst_67 [1] : vector<8x8xf32> to vector<8xf32>
    %181 = vector.shape_cast %180 : vector<8xf32> to vector<8x1xf32>
    %182 = tpu.reciprocal %181 {approx = true} : vector<8x1xf32> -> vector<8x1xf32>
    %183 = vector.broadcast %182 : vector<8x1xf32> to vector<8x8xf32>
    %184 = arith.mulf %179, %183 : vector<8x8xf32>
    %185 = arith.truncf %184 : vector<8x8xf32> to vector<8x8xbf16>
    %186 = arith.truncf %168 : vector<8x8xf32> to vector<8x8xbf16>
    %cst_68 = arith.constant dense<0.000000e+00> : vector<8x8xf32>
    %187 = tpu.matmul %185, %186, %cst_68 {dimension_numbers = #tpu.dot_dimension_numbers<[1], [0], [0], [1], [0, 0, 1, 1], [], []>} : vector<8x8xbf16>, vector<8x8xbf16>, vector<8x8xf32> -> vector<8x8xf32>
    %188 = vector.extract_strided_slice %137 {offsets = [0, 16], sizes = [8, 8], strides = [1, 1]} : vector<8x32xf32> to vector<8x8xf32>
    %189 = vector.extract_strided_slice %143 {offsets = [0, 16], sizes = [8, 8], strides = [1, 1]} : vector<8x64xf32> to vector<8x8xf32>
    %190 = vector.extract_strided_slice %143 {offsets = [0, 48], sizes = [8, 8], strides = [1, 1]} : vector<8x64xf32> to vector<8x8xf32>
    %191 = arith.truncf %188 : vector<8x8xf32> to vector<8x8xbf16>
    %192 = arith.truncf %189 : vector<8x8xf32> to vector<8x8xbf16>
    %cst_69 = arith.constant dense<0.000000e+00> : vector<8x8xf32>
    %193 = tpu.matmul %191, %192, %cst_69 {dimension_numbers = #tpu.dot_dimension_numbers<[1], [1], [0], [0], [0, 0, 1, 0], [], []>} : vector<8x8xbf16>, vector<8x8xbf16>, vector<8x8xf32> -> vector<8x8xf32>
    %cst_70 = arith.constant 0.353553385 : f32
    %194 = vector.broadcast %cst_70 : f32 to vector<8x8xf32>
    %195 = arith.mulf %193, %194 : vector<8x8xf32>
    %196 = arith.addf %195, %7 : vector<8x8xf32>
    %cst_71 = arith.constant dense<0xFF800000> : vector<8xf32>
    %197 = vector.multi_reduction <maximumf>, %196, %cst_71 [1] : vector<8x8xf32> to vector<8xf32>
    %198 = vector.shape_cast %197 : vector<8xf32> to vector<8x1xf32>
    %199 = vector.broadcast %198 : vector<8x1xf32> to vector<8x8xf32>
    %200 = arith.subf %196, %199 : vector<8x8xf32>
    %201 = math.exp %200 : vector<8x8xf32>
    %cst_72 = arith.constant dense<0.000000e+00> : vector<8xf32>
    %202 = vector.multi_reduction <add>, %201, %cst_72 [1] : vector<8x8xf32> to vector<8xf32>
    %203 = vector.shape_cast %202 : vector<8xf32> to vector<8x1xf32>
    %204 = tpu.reciprocal %203 {approx = true} : vector<8x1xf32> -> vector<8x1xf32>
    %205 = vector.broadcast %204 : vector<8x1xf32> to vector<8x8xf32>
    %206 = arith.mulf %201, %205 : vector<8x8xf32>
    %207 = arith.truncf %206 : vector<8x8xf32> to vector<8x8xbf16>
    %208 = arith.truncf %190 : vector<8x8xf32> to vector<8x8xbf16>
    %cst_73 = arith.constant dense<0.000000e+00> : vector<8x8xf32>
    %209 = tpu.matmul %207, %208, %cst_73 {dimension_numbers = #tpu.dot_dimension_numbers<[1], [0], [0], [1], [0, 0, 1, 1], [], []>} : vector<8x8xbf16>, vector<8x8xbf16>, vector<8x8xf32> -> vector<8x8xf32>
    %210 = vector.extract_strided_slice %137 {offsets = [0, 24], sizes = [8, 8], strides = [1, 1]} : vector<8x32xf32> to vector<8x8xf32>
    %211 = vector.extract_strided_slice %143 {offsets = [0, 24], sizes = [8, 8], strides = [1, 1]} : vector<8x64xf32> to vector<8x8xf32>
    %212 = vector.extract_strided_slice %143 {offsets = [0, 56], sizes = [8, 8], strides = [1, 1]} : vector<8x64xf32> to vector<8x8xf32>
    %213 = arith.truncf %210 : vector<8x8xf32> to vector<8x8xbf16>
    %214 = arith.truncf %211 : vector<8x8xf32> to vector<8x8xbf16>
    %cst_74 = arith.constant dense<0.000000e+00> : vector<8x8xf32>
    %215 = tpu.matmul %213, %214, %cst_74 {dimension_numbers = #tpu.dot_dimension_numbers<[1], [1], [0], [0], [0, 0, 1, 0], [], []>} : vector<8x8xbf16>, vector<8x8xbf16>, vector<8x8xf32> -> vector<8x8xf32>
    %cst_75 = arith.constant 0.353553385 : f32
    %216 = vector.broadcast %cst_75 : f32 to vector<8x8xf32>
    %217 = arith.mulf %215, %216 : vector<8x8xf32>
    %218 = arith.addf %217, %7 : vector<8x8xf32>
    %cst_76 = arith.constant dense<0xFF800000> : vector<8xf32>
    %219 = vector.multi_reduction <maximumf>, %218, %cst_76 [1] : vector<8x8xf32> to vector<8xf32>
    %220 = vector.shape_cast %219 : vector<8xf32> to vector<8x1xf32>
    %221 = vector.broadcast %220 : vector<8x1xf32> to vector<8x8xf32>
    %222 = arith.subf %218, %221 : vector<8x8xf32>
    %223 = math.exp %222 : vector<8x8xf32>
    %cst_77 = arith.constant dense<0.000000e+00> : vector<8xf32>
    %224 = vector.multi_reduction <add>, %223, %cst_77 [1] : vector<8x8xf32> to vector<8xf32>
    %225 = vector.shape_cast %224 : vector<8xf32> to vector<8x1xf32>
    %226 = tpu.reciprocal %225 {approx = true} : vector<8x1xf32> -> vector<8x1xf32>
    %227 = vector.broadcast %226 : vector<8x1xf32> to vector<8x8xf32>
    %228 = arith.mulf %223, %227 : vector<8x8xf32>
    %229 = arith.truncf %228 : vector<8x8xf32> to vector<8x8xbf16>
    %230 = arith.truncf %212 : vector<8x8xf32> to vector<8x8xbf16>
    %cst_78 = arith.constant dense<0.000000e+00> : vector<8x8xf32>
    %231 = tpu.matmul %229, %230, %cst_78 {dimension_numbers = #tpu.dot_dimension_numbers<[1], [0], [0], [1], [0, 0, 1, 1], [], []>} : vector<8x8xbf16>, vector<8x8xbf16>, vector<8x8xf32> -> vector<8x8xf32>
    %232 = tpu.concatenate %165, %187, %209, %231 in 1 : vector<8x8xf32>, vector<8x8xf32>, vector<8x8xf32>, vector<8x8xf32> -> vector<8x32xf32>
    %c0_79 = arith.constant 0 : index
    %c0_80 = arith.constant 0 : index
    %233 = vector.load %arg13[%c0_79, %c0_80] : memref<32x32xbf16, #tpu.memory_space<vmem>>, vector<32x32xbf16>
    %c0_81 = arith.constant 0 : index
    %c0_82 = arith.constant 0 : index
    %234 = vector.load %arg14[%c0_81, %c0_82] : memref<1x32xf32, #tpu.memory_space<vmem>>, vector<1x32xf32>
    %235 = arith.truncf %232 : vector<8x32xf32> to vector<8x32xbf16>
    %cst_83 = arith.constant dense<0.000000e+00> : vector<8x32xf32>
    %236 = tpu.matmul %235, %233, %cst_83 {dimension_numbers = #tpu.dot_dimension_numbers<[1], [0], [0], [1], [0, 0, 1, 1], [], []>} : vector<8x32xbf16>, vector<32x32xbf16>, vector<8x32xf32> -> vector<8x32xf32>
    %237 = vector.broadcast %234 : vector<1x32xf32> to vector<8x32xf32>
    %238 = arith.addf %236, %237 : vector<8x32xf32>
    %239 = arith.addf %111, %238 : vector<8x32xf32>
    %cst_84 = arith.constant dense<0.000000e+00> : vector<8xf32>
    %240 = vector.multi_reduction <add>, %239, %cst_84 [1] : vector<8x32xf32> to vector<8xf32>
    %241 = vector.shape_cast %240 : vector<8xf32> to vector<8x1xf32>
    %cst_85 = arith.constant 3.200000e+01 : f32
    %242 = vector.broadcast %cst_85 : f32 to vector<8x1xf32>
    %243 = arith.divf %241, %242 : vector<8x1xf32>
    %244 = vector.broadcast %243 : vector<8x1xf32> to vector<8x32xf32>
    %245 = arith.subf %239, %244 : vector<8x32xf32>
    %246 = arith.mulf %245, %245 : vector<8x32xf32>
    %cst_86 = arith.constant dense<0.000000e+00> : vector<8xf32>
    %247 = vector.multi_reduction <add>, %246, %cst_86 [1] : vector<8x32xf32> to vector<8xf32>
    %248 = vector.shape_cast %247 : vector<8xf32> to vector<8x1xf32>
    %cst_87 = arith.constant 3.200000e+01 : f32
    %249 = vector.broadcast %cst_87 : f32 to vector<8x1xf32>
    %250 = arith.divf %248, %249 : vector<8x1xf32>
    %cst_88 = arith.constant 9.99999997E-7 : f32
    %251 = vector.broadcast %cst_88 : f32 to vector<8x1xf32>
    %252 = arith.addf %250, %251 : vector<8x1xf32>
    %253 = math.rsqrt %252 : vector<8x1xf32>
    %254 = vector.broadcast %253 : vector<8x1xf32> to vector<8x32xf32>
    %255 = arith.mulf %245, %254 : vector<8x32xf32>
    %256 = vector.broadcast %8 : vector<1x32xf32> to vector<8x32xf32>
    %257 = arith.mulf %255, %256 : vector<8x32xf32>
    %258 = vector.broadcast %9 : vector<1x32xf32> to vector<8x32xf32>
    %259 = arith.addf %257, %258 : vector<8x32xf32>
    %c0_89 = arith.constant 0 : index
    %c0_90 = arith.constant 0 : index
    %260 = vector.load %arg15[%c0_89, %c0_90] : memref<32x64xbf16, #tpu.memory_space<vmem>>, vector<32x64xbf16>
    %c0_91 = arith.constant 0 : index
    %c0_92 = arith.constant 0 : index
    %261 = vector.load %arg16[%c0_91, %c0_92] : memref<1x64xf32, #tpu.memory_space<vmem>>, vector<1x64xf32>
    %262 = arith.truncf %259 : vector<8x32xf32> to vector<8x32xbf16>
    %cst_93 = arith.constant dense<0.000000e+00> : vector<8x64xf32>
    %263 = tpu.matmul %262, %260, %cst_93 {dimension_numbers = #tpu.dot_dimension_numbers<[1], [0], [0], [1], [0, 0, 1, 1], [], []>} : vector<8x32xbf16>, vector<32x64xbf16>, vector<8x64xf32> -> vector<8x64xf32>
    %264 = vector.broadcast %261 : vector<1x64xf32> to vector<8x64xf32>
    %265 = arith.addf %263, %264 : vector<8x64xf32>
    %cst_94 = arith.constant 0.000000e+00 : f32
    %266 = vector.broadcast %cst_94 : f32 to vector<8x64xf32>
    %267 = arith.maximumf %265, %266 : vector<8x64xf32>
    %c0_95 = arith.constant 0 : index
    %c0_96 = arith.constant 0 : index
    %268 = vector.load %arg17[%c0_95, %c0_96] : memref<64x32xbf16, #tpu.memory_space<vmem>>, vector<64x32xbf16>
    %c0_97 = arith.constant 0 : index
    %c0_98 = arith.constant 0 : index
    %269 = vector.load %arg18[%c0_97, %c0_98] : memref<1x32xf32, #tpu.memory_space<vmem>>, vector<1x32xf32>
    %270 = arith.truncf %267 : vector<8x64xf32> to vector<8x64xbf16>
    %cst_99 = arith.constant dense<0.000000e+00> : vector<8x32xf32>
    %271 = tpu.matmul %270, %268, %cst_99 {dimension_numbers = #tpu.dot_dimension_numbers<[1], [0], [0], [1], [0, 0, 1, 1], [], []>} : vector<8x64xbf16>, vector<64x32xbf16>, vector<8x32xf32> -> vector<8x32xf32>
    %272 = vector.broadcast %269 : vector<1x32xf32> to vector<8x32xf32>
    %273 = arith.addf %271, %272 : vector<8x32xf32>
    %274 = arith.addf %239, %273 : vector<8x32xf32>
    %cst_100 = arith.constant dense<0.000000e+00> : vector<8xf32>
    %275 = vector.multi_reduction <add>, %274, %cst_100 [1] : vector<8x32xf32> to vector<8xf32>
    %276 = vector.shape_cast %275 : vector<8xf32> to vector<8x1xf32>
    %cst_101 = arith.constant 3.200000e+01 : f32
    %277 = vector.broadcast %cst_101 : f32 to vector<8x1xf32>
    %278 = arith.divf %276, %277 : vector<8x1xf32>
    %279 = vector.broadcast %278 : vector<8x1xf32> to vector<8x32xf32>
    %280 = arith.subf %274, %279 : vector<8x32xf32>
    %281 = arith.mulf %280, %280 : vector<8x32xf32>
    %cst_102 = arith.constant dense<0.000000e+00> : vector<8xf32>
    %282 = vector.multi_reduction <add>, %281, %cst_102 [1] : vector<8x32xf32> to vector<8xf32>
    %283 = vector.shape_cast %282 : vector<8xf32> to vector<8x1xf32>
    %cst_103 = arith.constant 3.200000e+01 : f32
    %284 = vector.broadcast %cst_103 : f32 to vector<8x1xf32>
    %285 = arith.divf %283, %284 : vector<8x1xf32>
    %cst_104 = arith.constant 9.99999997E-7 : f32
    %286 = vector.broadcast %cst_104 : f32 to vector<8x1xf32>
    %287 = arith.addf %285, %286 : vector<8x1xf32>
    %288 = math.rsqrt %287 : vector<8x1xf32>
    %289 = vector.broadcast %288 : vector<8x1xf32> to vector<8x32xf32>
    %290 = arith.mulf %280, %289 : vector<8x32xf32>
    %291 = vector.broadcast %8 : vector<1x32xf32> to vector<8x32xf32>
    %292 = arith.mulf %290, %291 : vector<8x32xf32>
    %293 = vector.broadcast %9 : vector<1x32xf32> to vector<8x32xf32>
    %294 = arith.addf %292, %293 : vector<8x32xf32>
    %c0_105 = arith.constant 0 : index
    %c0_106 = arith.constant 0 : index
    %c0_107 = arith.constant 0 : index
    %295 = vector.load %arg21[%c0_105, %c0_106, %c0_107] : memref<1x8x32xf32, #tpu.memory_space<vmem>>, vector<1x8x32xf32>
    %296 = vector.shape_cast %295 : vector<1x8x32xf32> to vector<8x32xf32>
    %297 = vector.shape_cast %294 : vector<8x32xf32> to vector<1x8x32xf32>
    tpu.vector_store %arg21[%c0_105, %c0_106, %c0_107], %297 {strides = array<i32>} : memref<1x8x32xf32, #tpu.memory_space<vmem>>, vector<1x8x32xf32>,
    return
  }
  func.func @transform_0(%arg0: i32) -> (i32, i32, i32) {
    %c0_i32 = arith.constant 0 : i32
    %c0_i32_0 = arith.constant 0 : i32
    %c0_i32_1 = arith.constant 0 : i32
    return %arg0, %c0_i32, %c0_i32_0 : i32, i32, i32
  }
  func.func @transform_1(%arg0: i32) -> (i32, i32, i32) {
    %c0_i32 = arith.constant 0 : i32
    %c0_i32_0 = arith.constant 0 : i32
    %c0_i32_1 = arith.constant 0 : i32
    return %arg0, %c0_i32, %c0_i32_0 : i32, i32, i32
  }
  func.func @transform_2(%arg0: i32) -> (i32, i32, i32) {
    %c0_i32 = arith.constant 0 : i32
    %c0_i32_0 = arith.constant 0 : i32
    %c0_i32_1 = arith.constant 0 : i32
    return %arg0, %c0_i32, %c0_i32_0 : i32, i32, i32
  }
  func.func @transform_3(%arg0: i32) -> (i32, i32, i32) {
    %c0_i32 = arith.constant 0 : i32
    %c0_i32_0 = arith.constant 0 : i32
    %c0_i32_1 = arith.constant 0 : i32
    return %arg0, %c0_i32, %c0_i32_0 : i32, i32, i32
  }
  func.func @transform_4(%arg0: i32) -> (i32, i32) {
    %c0_i32 = arith.constant 0 : i32
    %c0_i32_0 = arith.constant 0 : i32
    %c0_i32_1 = arith.constant 0 : i32
    return %c0_i32, %c0_i32_0 : i32, i32
  }
  func.func @transform_5(%arg0: i32) -> (i32, i32) {
    %c0_i32 = arith.constant 0 : i32
    %c0_i32_0 = arith.constant 0 : i32
    %c0_i32_1 = arith.constant 0 : i32
    return %c0_i32, %c0_i32_0 : i32, i32
  }
  func.func @transform_6(%arg0: i32) -> (i32, i32) {
    %c0_i32 = arith.constant 0 : i32
    %c0_i32_0 = arith.constant 0 : i32
    %c0_i32_1 = arith.constant 0 : i32
    return %c0_i32, %c0_i32_0 : i32, i32
  }
  func.func @transform_7(%arg0: i32) -> (i32, i32) {
    %c0_i32 = arith.constant 0 : i32
    %c0_i32_0 = arith.constant 0 : i32
    %c0_i32_1 = arith.constant 0 : i32
    return %c0_i32, %c0_i32_0 : i32, i32
  }
  func.func @transform_8(%arg0: i32) -> (i32, i32) {
    %c0_i32 = arith.constant 0 : i32
    %c0_i32_0 = arith.constant 0 : i32
    %c0_i32_1 = arith.constant 0 : i32
    return %c0_i32, %c0_i32_0 : i32, i32
  }
  func.func @transform_9(%arg0: i32) -> (i32, i32) {
    %c0_i32 = arith.constant 0 : i32
    %c0_i32_0 = arith.constant 0 : i32
    %c0_i32_1 = arith.constant 0 : i32
    return %c0_i32, %c0_i32_0 : i32, i32
  }
  func.func @transform_10(%arg0: i32) -> (i32, i32) {
    %c0_i32 = arith.constant 0 : i32
    %c0_i32_0 = arith.constant 0 : i32
    %c0_i32_1 = arith.constant 0 : i32
    return %c0_i32, %c0_i32_0 : i32, i32
  }
  func.func @transform_11(%arg0: i32) -> (i32, i32) {
    %c0_i32 = arith.constant 0 : i32
    %c0_i32_0 = arith.constant 0 : i32
    %c0_i32_1 = arith.constant 0 : i32
    return %c0_i32, %c0_i32_0 : i32, i32
  }
  func.func @transform_12(%arg0: i32) -> (i32, i32) {
    %c0_i32 = arith.constant 0 : i32
    %c0_i32_0 = arith.constant 0 : i32
    %c0_i32_1 = arith.constant 0 : i32
    return %c0_i32, %c0_i32_0 : i32, i32
  }
  func.func @transform_13(%arg0: i32) -> (i32, i32) {
    %c0_i32 = arith.constant 0 : i32
    %c0_i32_0 = arith.constant 0 : i32
    %c0_i32_1 = arith.constant 0 : i32
    return %c0_i32, %c0_i32_0 : i32, i32
  }
  func.func @transform_14(%arg0: i32) -> (i32, i32) {
    %c0_i32 = arith.constant 0 : i32
    %c0_i32_0 = arith.constant 0 : i32
    %c0_i32_1 = arith.constant 0 : i32
    return %c0_i32, %c0_i32_0 : i32, i32
  }
  func.func @transform_15(%arg0: i32) -> (i32, i32) {
    %c0_i32 = arith.constant 0 : i32
    %c0_i32_0 = arith.constant 0 : i32
    %c0_i32_1 = arith.constant 0 : i32
    return %c0_i32, %c0_i32_0 : i32, i32
  }
  func.func @transform_16(%arg0: i32) -> (i32, i32) {
    %c0_i32 = arith.constant 0 : i32
    %c0_i32_0 = arith.constant 0 : i32
    %c0_i32_1 = arith.constant 0 : i32
    return %c0_i32, %c0_i32_0 : i32, i32
  }
  func.func @transform_17(%arg0: i32) -> (i32, i32) {
    %c0_i32 = arith.constant 0 : i32
    %c0_i32_0 = arith.constant 0 : i32
    %c0_i32_1 = arith.constant 0 : i32
    return %c0_i32, %c0_i32_0 : i32, i32
  }
  func.func @transform_18(%arg0: i32) -> (i32, i32) {
    %c0_i32 = arith.constant 0 : i32
    %c0_i32_0 = arith.constant 0 : i32
    %c0_i32_1 = arith.constant 0 : i32
    return %c0_i32, %c0_i32_0 : i32, i32
  }
  func.func @transform_19(%arg0: i32) -> (i32, i32) {
    %c0_i32 = arith.constant 0 : i32
    %c0_i32_0 = arith.constant 0 : i32
    %c0_i32_1 = arith.constant 0 : i32
    return %c0_i32, %c0_i32_0 : i32, i32
  }
  func.func @transform_20(%arg0: i32) -> (i32, i32, i32) {
    %c0_i32 = arith.constant 0 : i32
    %c0_i32_0 = arith.constant 0 : i32
    %c0_i32_1 = arith.constant 0 : i32
    return %arg0, %c0_i32, %c0_i32_0 : i32, i32, i32
  }
}

</mosaic_0001>

<bundles_post_ra>
// kernel: run.5
= control target key start
LH: loop header
LB: loop body
LE: loop exit
PB: predicated region body
PF: predicated region fallthrough
CT: control target
= control target key end

     0   :  { %7 = vsyncpa [#allocation3], 0  ;;  %s601_s0 = inlined_call_operand.vmem [shape: f32[2,8,32], index: 0, kind: input, shape index: {}]   ;;  %s602_s1 = inlined_call_operand.vmem [shape: bf16[128,32], index: 1, kind: input, shape index: {}]   ;;  %s603_s2 = inlined_call_operand.hbm [shape: f32[2,8,128], index: 2, kind: output, shape index: {}]  }
   0x1   :  { %9 = vsyncpa [#allocation3 + $0x1], 0  ;;  %s483_s9 = smov 0   ;;  %s485_s10 = smov 0  }
   0x2   :  { %s487_s11 = smov 0   ;;  %s489_s12 = smov 0  }
   0x3 LB: > { %s504_s13 = sadd.s32 4294967295, %s466_s12   ;;  %s314_s14 = sadd.s32 4294967294, %s466_s12   ;;  %s466_s12 = sphi %s489_s12, %s609_s12   ;;  %s462_s11 = sphi %s487_s11, %s608_s11   ;;  %s458_s10 = sphi %s485_s10, %s607_s10   ;;  %s454_s9 = sphi %s483_s9, %s606_s9  }
   0x4   : > { %s508_s15 = sadd.s32 1, %s466_s12   ;;  %s69_s16 = sadd.s32 1, %s462_s11 }
   0x5   : > { %s66_s17 = ssub.s32 %s466_s12, %s508_s15  ;;  %p79_p0 = scmp.ne.s32.totalorder %s462_s11, %s458_s10 }
   0x6   : > { %p67_p1 = scmp.eq.s32.totalorder %s66_s17, 0  ;;  %p80_p2 = scmp.eq.s32.totalorder %s504_s13, 1 }
   0x7   : > { %p85_p3 = scmp.ne.s32.totalorder %s458_s10, %s454_s9  ;;  %p86_p4 = scmp.eq.s32.totalorder %s314_s14, 1 }
   0x8   : > { %s519_s18 = scalar_select %p67_p1, %s462_s11, %s69_s16  }
   0x9   : > { %p521_p5 = por %p80_p2, %p79_p0  ;;  %p525_p6 = por %p86_p4, %p85_p3 }
   0xa   : > { %p317_p7 = scmp.ge.s32.totalorder %s466_s12, 1  ;;  %p114_p8 = scmp.lt.s32.totalorder %s466_s12, 3 }
   0xc   : > { %p115_p9 = pnand %p317_p7, %p114_p8 }
   0xd   : > { %p135_p10 = scmp.lt.s32.totalorder (!%p115_p9), %s504_s13, 1  ;;  %s132_s23 = sand.u32 (!%p115_p9), 1, %s458_s10  }
   0xe   : > { %118 = sbr.rel (%p115_p9) target bundleno = 218 (0xda), region = 28  ;;  %s354_s24 = sshll.u32 (!%p115_p9), %s504_s13, 3 }
   0xf   : > { %s318_s25 = sshll.u32 (!%p115_p9), %s132_s23, 3  ;;  %s250_s28 = scalar_lea.hbm (!%p115_p9), %s603_s2, %s354_s24 }
  0x10   : > { %s134_s29 = scalar_lea.vmem (!%p115_p9), [#allocation2], %s318_s25  ;;  %s254_s3 = sshll.u32 (!%p115_p9), %s250_s28, 4  ;;  %s255_s3 = int_to_ptr.hbm [resolvable:$true] %s254_s3 }
  0x11   : > { %s252_s30 = sshll.u32 (!%p115_p9), %s134_s29, 4  ;;  %s240_s4 = scalar_lea.sflag (!%p115_p9), [#allocation3], %s132_s23  ;;  %s253_s30 = int_to_ptr.vmem [resolvable:$true] %s252_s30 }
  0x12   : > { %s418_s5 = sshra.s32 (!%p115_p9), %s255_s3, 4  ;;  %s424_s8 = scalar_lea.hbm (!%p115_p9), %s603_s2, 16  ;;  %s419_s5 = int_to_ptr.hbm [resolvable:$true] %s418_s5 }
  0x13   : > { %v364_v0 = vld [vmem:[%s602_s1 + $0x38] sm:$0xff]  ;;  %vm197_vm0 = vcmask 261120   ;;  %v363_v2 = vld [vmem:[%s602_s1 + $0x30] sm:$0xff]  ;;  %v362_v4 = vld [vmem:[%s602_s1 + $0x28] sm:$0xff]  ;;  %s136_s7 = scalar_select %p135_p10, %s504_s13, 1 }
  0x14   : > { %v223_v1 = vsel %vm197_vm0, %v364_v0, 0  ;;  %v220_v3 = vsel %vm197_vm0, %v363_v2, 0  ;;  %v217_v5 = vsel %vm197_vm0, %v362_v4, 0  ;;  %v361_v6 = vld [vmem:[%s602_s1 + $0x20] sm:$0xff]  ;;  %v360_v8 = vld [vmem:[%s602_s1 + $0x18] sm:$0xff]  ;;  %v359_v10 = vld [vmem:[%s602_s1 + $0x10] sm:$0xff]  ;;  %p425_p0 = scmp.lt.s32.totalorder %s419_s5, %s603_s2 }
  0x15   : > { %225 = vmatpush.bf16.xpose.msra.mxu0 %v223_v1  ;;  %v214_v7 = vsel %vm197_vm0, %v361_v6, 0  ;;  %v211_v9 = vsel %vm197_vm0, %v360_v8, 0  ;;  %v208_v11 = vsel %vm197_vm0, %v359_v10, 0  ;;  %v358_v12 = vld [vmem:[%s602_s1 + $0x8] sm:$0xff]  ;;  %v357_v14 = vld [vmem:[%s602_s1] sm:$0xff]  ;;  %s319_s16 = sshll.u32 %s136_s7, 3 }
  0x16   : > { %v205_v13 = vsel %vm197_vm0, %v358_v12, 0  ;;  %v202_v15 = vsel %vm197_vm0, %v357_v14, 0  ;;  %s138_s22 = scalar_lea.vmem %s601_s0, %s319_s16  ;;  %s420_s6 = scalar_lea.hbm %s419_s5, 8 }
  0x17   : > { %v139_v16 = vld [vmem:[%s138_s22] sm:$0xff]  ;;  %p421_p11 = scmp.ne.s32.totalorder %s419_s5, %s420_s6  ;;  %p426_p1 = scmp.lt.s32.totalorder %s424_s8, %s420_s6 }
  0x18   : > { %v140_v17 = vpack.c.bf16 %v139_v16, %v139_v16 }
  0x19   : > { %p422_p12 = pnand %p421_p11, %p521_p5  ;;  %p427_p2 = por %p426_p1, %p425_p0 }
  0x1b   : > { %p423_p13 = pneg %p422_p12 }
  0x1d   : > { %226 = vmatpush.bf16.xpose.msra.mxu0 %v220_v3  ;;  %p428_p3 = pnand %p427_p2, %p423_p13 }
  0x25   : > { %227 = vmatpush.bf16.xpose.msra.mxu0 %v217_v5 }
  0x2d   : > { %228 = vmatpush.bf16.xpose.msra.mxu0 %v214_v7 }
  0x35   : > { %229 = vmatpush.bf16.xpose.msra.mxu0 %v211_v9 }
  0x3d   : > { %230 = vmatpush.bf16.xpose.msra.mxu0 %v208_v11 }
  0x45   : > { %231 = vmatpush.bf16.xpose.msra.mxu0 %v205_v13 }
  0x4d   : > { %232 = vmatpush.bf16.xpose.msra.mxu0 %v202_v15 }
  0x54   : > { %352 = vmatmul.msk.bf16.vlgmr.msra.gmra.mxu0 %vm197_vm0, %v140_v17 }
  0xd1   : > { %v234_v18 = vpop.f32.mrf.mxu0 }
  0xd2   : > { %238 = vst [vmem:[%s134_s29] sm:$0xff] %v234_v18 }
  0xd3   : > { %431 = shalt.err (!%p428_p3)
}
  0xd4   : > { %365 = dma.vmem_to_hbm [thread:$0]  (%p521_p5), %s253_s30, 128, %s255_s3, %s240_s4  }
  0xd9   : > { %v236_v19 = vpop.f32.mrf.mxu0 }
  0xda PF: > { %p371_p4 = scmp.ge.s32.totalorder %s466_s12, 2  ;;  %s266_s17 = sand.u32 1, %s454_s9  }
  0xdb   : > { %s267_s21 = scalar_lea.sflag [#allocation3], %s266_s17 }
  0xdc   : > { %p368_p7 = pnand %p371_p4, %p525_p6 }
  0xde   : > { %p369_p8 = pneg %p368_p7 }
  0xe0   : > { %449 = dma.done.wait (%p369_p8), %s267_s21, 128  }
  0xe1   : > { %451 = vsyncadd (%p369_p8), %s267_s21, 4294967168  ;;  %p12_p9 = scmp.ge.s32.totalorder %s508_s15, 4   ;;  %s606_s9 = smov %s458_s10 }
  0xe2   : > { %s607_s10 = smov %s462_s11  ;;  %s608_s11 = smov %s519_s18 }
  0xe3   : > { %s609_s12 = smov %s508_s15  ;;  %14 = sbr.rel (!%p12_p9) target bundleno = 3 (0x3), region = 63 }
  0xe8   :  { %273 = vsyncpa [#allocation3], 1 }
  0xe9   :  { %275 = vsyncpa [#allocation3 + $0x1], 1 }

// kernel: run.4
= control target key start
LH: loop header
LB: loop body
LE: loop exit
PB: predicated region body
PF: predicated region fallthrough
CT: control target
= control target key end

     0   :  { %s2491_s0 = inlined_call_operand.vmem [shape: f32[2,8,32], index: 0, kind: input, shape index: {}]   ;;  %s2492_s1 = inlined_call_operand.vmem [shape: f32[2,8,32], index: 1, kind: input, shape index: {}]   ;;  %s2493_s2 = inlined_call_operand.vmem [shape: f32[2,8,8], index: 2, kind: input, shape index: {}]   ;;  %s2494_s3 = inlined_call_operand.vmem [shape: f32[2,8,8], index: 3, kind: input, shape index: {}]   ;;  %s2495_s4 = inlined_call_operand.vmem [shape: bf16[32,96], index: 4, kind: input, shape index: {}]   ;;  %s2496_s5 = inlined_call_operand.vmem [shape: f32[1,96], index: 5, kind: input, shape index: {}]   ;;  %s2497_s6 = inlined_call_operand.vmem [shape: bf16[32,32], index: 6, kind: input, shape index: {}]   ;;  %s2498_s7 = inlined_call_operand.vmem [shape: f32[1,32], index: 7, kind: input, shape index: {}]   ;;  %s2499_s8 = inlined_call_operand.vmem [shape: bf16[32,32], index: 8, kind: input, shape index: {}]   ;;  %s2500_s9 = inlined_call_operand.vmem [shape: f32[1,32], index: 9, kind: input, shape index: {}]   ;;  %s2501_s10 = inlined_call_operand.vmem [shape: bf16[32,64], index: 10, kind: input, shape index: {}]   ;;  %s2502_s11 = inlined_call_operand.vmem [shape: f32[1,64], index: 11, kind: input, shape index: {}]   ;;  %s2503_s12 = inlined_call_operand.vmem [shape: bf16[32,32], index: 12, kind: input, shape index: {}]   ;;  %s2504_s13 = inlined_call_operand.vmem [shape: f32[1,32], index: 13, kind: input, shape index: {}]   ;;  %s2505_s14 = inlined_call_operand.vmem [shape: bf16[32,64], index: 14, kind: input, shape index: {}]   ;;  %s2506_s15 = inlined_call_operand.vmem [shape: f32[1,64], index: 15, kind: input, shape index: {}]   ;;  %s2507_s16 = inlined_call_operand.vmem [shape: bf16[64,32], index: 16, kind: input, shape index: {}]   ;;  %s2508_s17 = inlined_call_operand.vmem [shape: f32[1,32], index: 17, kind: input, shape index: {}]   ;;  %s2509_s18 = inlined_call_operand.vmem [shape: f32[1,32], index: 18, kind: input, shape index: {}]   ;;  %s2510_s19 = inlined_call_operand.vmem [shape: f32[1,32], index: 19, kind: input, shape index: {}]   ;;  %s2511_s20 = inlined_call_operand.vmem [shape: f32[2,8,32], index: 20, kind: output, shape index: {0}]   ;;  %s2512_s21 = inlined_call_operand.hbm [shape: f32[2,4,8,8], index: 21, kind: output, shape index: {1}]  }
   0x1   :  { %2532 = sst [smem:[#allocation10_spill]] %s2491_s0 }
   0x2   :  { %2533 = sst [smem:[#allocation11_spill]] %s2492_s1 }
   0x3   :  { %2534 = sst [smem:[#allocation12_spill]] %s2493_s2 }
   0x4   :  { %2535 = sst [smem:[#allocation13_spill]] %s2494_s3 }
   0x5   :  { %2536 = sst [smem:[#allocation14_spill]] %s2495_s4 }
   0x6   :  { %2537 = sst [smem:[#allocation15_spill]] %s2496_s5 }
   0x7   :  { %2538 = sst [smem:[#allocation16_spill]] %s2497_s6 }
   0x8   :  { %2539 = sst [smem:[#allocation17_spill]] %s2498_s7 }
   0x9   :  { %2540 = sst [smem:[#allocation18_spill]] %s2499_s8 }
   0xa   :  { %2541 = sst [smem:[#allocation19_spill]] %s2500_s9 }
   0xb   :  { %2542 = sst [smem:[#allocation20_spill]] %s2501_s10 }
   0xc   :  { %2543 = sst [smem:[#allocation21_spill]] %s2502_s11 }
   0xd   :  { %27 = vsyncpa [#allocation3], 0 }
   0xe   :  { %29 = vsyncpa [#allocation3 + $0x1], 0  ;;  %s2154_s2 = smov 0   ;;  %s2156_s25 = smov 0  }
   0xf   :  { %s2158_s26 = smov 0   ;;  %s2160_s27 = smov 0  }
  0x10 LB: > { %2544 = sst [smem:[#allocation5_spill]] %s2014_s2  ;;  %s2175_s3 = sadd.s32 4294967295, %s2026_s27   ;;  %s2026_s27 = sphi %s2160_s27, %s2575_s27   ;;  %s2022_s26 = sphi %s2158_s26, %s2577_s26   ;;  %s2018_s25 = sphi %s2156_s25, %s2579_s25   ;;  %s2014_s2 = sphi %s2154_s2, %s2578_s2  }
  0x11   : > { %2545 = sst [smem:[#allocation6_spill]] %s2022_s26  ;;  %s1738_s28 = sadd.s32 4294967294, %s2026_s27  }
  0x12   : > { %s2179_s29 = sadd.s32 1, %s2026_s27   ;;  %s508_s0 = sadd.s32 1, %s2022_s26 }
  0x13   : > { %2546 = sst [smem:[#allocation7_spill]] %s2179_s29  ;;  %s505_s4 = ssub.s32 %s2026_s27, %s2179_s29 }
  0x14   : > { %p518_p0 = scmp.ne.s32.totalorder %s2022_s26, %s2018_s25  ;;  %p506_p1 = scmp.eq.s32.totalorder %s505_s4, 0 }
  0x15   : > { %p519_p2 = scmp.eq.s32.totalorder %s2175_s3, 1  ;;  %p524_p3 = scmp.ne.s32.totalorder %s2018_s25, %s2014_s2 }
  0x16   : > { %p525_p4 = scmp.eq.s32.totalorder %s1738_s28, 1  ;;  %p1741_p7 = scmp.ge.s32.totalorder %s2026_s27, 1 }
  0x17   : > { %s2190_s30 = scalar_select %p506_p1, %s2022_s26, %s508_s0  }
  0x18   : > { %p2192_p5 = por %p519_p2, %p518_p0  ;;  %p2196_p6 = por %p525_p4, %p524_p3 }
  0x19   : > { %2547 = sst [smem:[#allocation8_spill]] %s2190_s30  ;;  %p619_p8 = scmp.lt.s32.totalorder %s2026_s27, 3 }
  0x1a   : > { %s2549_s22 = scalar_select %p2196_p6, 1, 0 }
  0x1b   : > { %p620_p9 = pnand %p1741_p7, %p619_p8 }
  0x1c   : > { %2550 = sst [smem:[#allocation9_spill]] %s2549_s22  ;;  %p694_p10 = scmp.lt.s32.totalorder (!%p620_p9), %s2175_s3, 1 }
  0x1d   : > { %623 = sbr.rel (%p620_p9) target bundleno = 3227 (0xc9b), region = 100  ;;  %s2551_s24 = sld [smem:[#allocation14_spill]] (!%p620_p9) }
  0x1e   : > { %s2552_s22 = sld [smem:[#allocation10_spill]] (!%p620_p9)  ;;  %s2523_s0 = smov (!%p620_p9), 104  }
  0x1f   : > { %s2553_s28 = sld [smem:[#allocation15_spill]] (!%p620_p9)  ;;  %s2522_s26 = smov (!%p620_p9), 96  }
  0x20   : > { %s2519_s29 = smov (!%p620_p9), 80   ;;  %s2529_s23 = smov (!%p620_p9), 112  }
  0x21   : > { %s2037_s1 = smov (!%p620_p9), 56   ;;  %s2555_s6 = sld [smem:[#allocation16_spill]] (!%p620_p9) }
  0x22   : > { %s695_s4 = scalar_select %p694_p10, %s2175_s3, 1  ;;  %vm742_vm0 = vcmask 261120   ;;  %vm763_vm1 = vcmask 64512   ;;  %vm802_vm2 = vcmask 1043456   ;;  %vm1006_vm3 = vcmask 130048  }
  0x23   : > { %v1844_v0 = vld [vmem:[%s2551_s24 + $0x8] sm:$0xff]  ;;  %v1843_v1 = vld [vmem:[%s2551_s24] sm:$0xff]  ;;  %vm1008_vm4 = vcmask 195584   ;;  %s2556_s7 = sld [smem:[#allocation17_spill]]  ;;  %vm1550_vm12 = vcmask 523264  }
  0x24   : > { %752 = vmatpush.bf16.msra.mxu0 %v1844_v0  ;;  %s2210_s30 = sshll.u32 %s695_s4, 3  ;;  %s2520_s4 = smov 88  }
  0x25   : > { %s697_s2 = scalar_lea.vmem %s2552_s22, %s2210_s30  ;;  %v1915_v4 = vld [vmem:[%s2553_s28] ss:$0 sm:$0xff]  ;;  %s2521_s22 = smov 72  }
  0x26   : > { %v2216_v2 = vld [vmem:[%s697_s2] sm:$0xff]  ;;  %s2029_s2 = smov 120   ;;  %s2038_s28 = smov 48  }
  0x27   : > { %v726_v3 = vpack.c.bf16 %v2216_v2, %v2216_v2  ;;  %s2557_s10 = sld [smem:[#allocation20_spill]] }
  0x28   : > { %753 = vmatpush.bf16.msra.mxu0 %v1843_v1  ;;  %s2559_s8 = sld [smem:[#allocation18_spill]] }
  0x29   : > { %s2560_s11 = sld [smem:[#allocation21_spill]] }
  0x2a   : > { %s2562_s9 = sld [smem:[#allocation19_spill]] }
  0x2b   : > { %1756 = vmatmul.msk.bf16.vlgmr.msra.gmra.mxu0 %vm742_vm0, %v726_v3 }
  0xa8   : > { %v755_v5 = vpop.f32.mrf.mxu0 }
  0xa9   : > { %v756_v6 = vadd.f32 %v1915_v4, %v755_v5 }
  0xab   : > { %v2224_v7 = vpack.c.bf16 %v756_v6, %v756_v6 }
  0xad   : > { %935 = vrot.lane.b32.xlu2 %v2224_v7, %s2523_s0  ;;  %819 = vrot.lane.b32.xlu1 %v2224_v7, %s2029_s2  ;;  %s2558_s0 = sld [smem:[#allocation11_spill]] }
  0xae   : > { %761 = vrot.lane.b32.xlu0 %v2224_v7, %s2522_s26 }
  0xb0   : > { %v757_v8 = vpop.f32.mrf.mxu0 }
  0xb3   : > { %s701_s26 = scalar_lea.vmem %s2558_s0, %s2210_s30  ;;  %s2565_s0 = smov 96  }
  0xb5   : > { %879 = vrot.lane.b32.xlu2 %v2224_v7, %s2519_s29  ;;  %937 = vrot.lane.b32.xlu1 %v2224_v7, %s2521_s22  ;;  %s2554_s29 = sld [smem:[#allocation12_spill]]  ;;  %s2567_s22 = smov 88  }
  0xb6   : > { %821 = vrot.lane.b32.xlu0 %v2224_v7, %s2520_s4 }
  0xbb   : > { %s705_s4 = scalar_lea.vmem %s2554_s29, %s2210_s30  ;;  %s2035_s29 = smov 64  }
  0xbc   : > { %v717_v21 = vld [vmem:[%s705_s4] sm:$0xff]  ;;  %s2036_s4 = smov 40  }
  0xbe   : > { %877 = vrot.lane.b32.xlu0 %v2224_v7, %s2529_s23  ;;  %s2568_s23 = smov 80  }
 0x107   : > { %v936_v9 = vpop.permute.xlu2 %935 }
 0x10f   : > { %v880_v10 = vpop.permute.xlu2 %879 }
 0x110   : > { %v885_v11 = vsel %vm763_vm1, %v880_v10, 0 }
 0x111   : > { %894 = vmatpush.bf16.xpose.msrb.mxu0 %v885_v11 }
 0x11f   : > { %v820_v12 = vpop.permute.xlu1 %819 }
 0x120   : > { %v762_v13 = vpop.permute.xlu0 %761 }
 0x121   : > { %v768_v14 = vsel %vm763_vm1, %v762_v13, 0 }
 0x122   : > { %777 = vmatpush.bf16.xpose.msra.mxu1 %v768_v14 }
 0x127   : > { %v938_v15 = vpop.permute.xlu1 %937 }
 0x128   : > { %v822_v16 = vpop.permute.xlu0 %821  ;;  %v943_v17 = vsel %vm763_vm1, %v938_v15, 0 }
 0x129   : > { %1757 = vmatmul.msk.bf16.vlgmr.msra.gmra.mxu1 %vm763_vm1, %v2224_v7  ;;  %v827_v18 = vsel %vm763_vm1, %v822_v16, 0 }
 0x12a   : > { %836 = vmatpush.bf16.xpose.msra.mxu3 %v827_v18 }
 0x130   : > { %v878_v19 = vpop.permute.xlu0 %877 }
 0x131   : > { %1759 = vmatmul.msk.bf16.vlgmr.msra.gmra.mxu3 %vm763_vm1, %v820_v12  ;;  %1761 = vmatmul.msk.bf16.vlgmr.msrb.gmra.mxu0 %vm763_vm1, %v878_v19 }
 0x132   : > { %952 = vmatpush.bf16.xpose.msrb.mxu3 %v943_v17 }
 0x141   : > { %1763 = vmatmul.msk.bf16.vlgmr.msrb.gmra.mxu3 %vm763_vm1, %v936_v9 }
 0x1a6   : > { %v779_v20 = vpop.f32.mrf.mxu1 }
 0x1a7   : > { %v783_v22 = vmul.f32 0.35355338, %v779_v20 }
 0x1a9   : > { %v784_v23 = vadd.f32 %v783_v22, %v717_v21 }
 0x1ab   : > { %v785_v24 = vsel %vm763_vm1, %v784_v23, -inf }
 0x1ac   : > { %786 = vmax.xlane.f32.xlu1 %v785_v24 }
 0x1ae   : > { %v781_v25 = vpop.f32.mrf.mxu1  ;;  %v896_v26 = vpop.f32.mrf.mxu0 }
 0x1af   : > { %v900_v31 = vmul.f32 0.35355338, %v896_v26 }
 0x1b1   : > { %v901_v34 = vadd.f32 %v900_v31, %v717_v21  ;;  %v1845_v31 = vld [vmem:[%s2555_s6] sm:$0xff] }
 0x1b3   : > { %v902_v35 = vsel %vm763_vm1, %v901_v34, -inf }
 0x1b4   : > { %v838_v27 = vpop.f32.mrf.mxu3 }
 0x1b5   : > { %v842_v28 = vmul.f32 0.35355338, %v838_v27 }
 0x1b6   : > { %v898_v29 = vpop.f32.mrf.mxu0 }
 0x1b7   : > { %v843_v30 = vadd.f32 %v842_v28, %v717_v21 }
 0x1b9   : > { %v844_v32 = vsel %vm763_vm1, %v843_v30, -inf }
 0x1ba   : > { %845 = vmax.xlane.f32.xlu2 %v844_v32 }
 0x1bc   : > { %v840_v33 = vpop.f32.mrf.mxu3 }
 0x1c2   : > { %903 = vmax.xlane.f32.xlu2 %v902_v35 }
 0x1c4   : > { %v954_v36 = vpop.f32.mrf.mxu3 }
 0x1c5   : > { %v958_v37 = vmul.f32 0.35355338, %v954_v36 }
 0x1c7   : > { %v959_v38 = vadd.f32 %v958_v37, %v717_v21 }
 0x1c9   : > { %v960_v39 = vsel %vm763_vm1, %v959_v38, -inf }
 0x1ca   : > { %961 = vmax.xlane.f32.xlu0 %v960_v39  ;;  %v1916_v39 = vld [vmem:[%s2556_s7] ss:$0 sm:$0xff] }
 0x1cc   : > { %v956_v40 = vpop.f32.mrf.mxu3 }
 0x1da   : > { %797 = vrot.lane.b32.xlu2 %v2224_v7, %s2035_s29  ;;  %s2527_s29 = smov 8  }
 0x1e2   : > { %972 = vrot.lane.b32.xlu2 %v2224_v7, %s2036_s4  ;;  %s2526_s4 = smov 16  }
 0x21f   : > { %v787_v41 = vpop.xlane.xlu1 %786 }
 0x220   : > { %v788_v42 = vsub.f32 %v784_v23, %v787_v41 }
 0x222   : > { %v789_v43 = vmul.f32 1.442695, %v788_v42 }
 0x224   : > { %1924 = vpow2.f32 %v789_v43 }
 0x22a   : > { %v1925_v44 = vpop.eup %1924 }
 0x22b   : > { %v791_v45 = vsel %vm763_vm1, %v1925_v44, 0.0 }
 0x22c   : > { %792 = vadd.xlane.f32.xlu1 %v791_v45  ;;  %v2042_v45 = vmov 32.0  }
 0x22d   : > { %v846_v46 = vpop.xlane.xlu2 %845 }
 0x22e   : > { %v847_v49 = vsub.f32 %v843_v30, %v846_v46  ;;  %v1846_v30 = vld [vmem:[%s2555_s6 + $0x8] sm:$0xff]  ;;  %s1859_s6 = sshll.u32 %s2175_s3, 5  ;;  %s1984_s3 = scalar_lea.hbm %s2512_s21, 64 }
 0x22f   : > { %1040 = vmatpush.bf16.msra.mxu0 %v1846_v30  ;;  %v1850_v46 = vld [vmem:[%s2557_s10 + $0x8] sm:$0xff] }
 0x230   : > { %v848_v51 = vmul.f32 1.442695, %v847_v49  ;;  %1152 = vmatpush.bf16.msra.mxu3 %v1850_v46 }
 0x233   : > { %1041 = vmatpush.bf16.msra.mxu0 %v1845_v31 }
 0x235   : > { %v904_v47 = vpop.xlane.xlu2 %903 }
 0x236   : > { %v905_v48 = vsub.f32 %v901_v34, %v904_v47  ;;  %v1849_v47 = vld [vmem:[%s2557_s10] sm:$0xff] }
 0x237   : > { %1153 = vmatpush.bf16.msra.mxu3 %v1849_v47 }
 0x238   : > { %v906_v50 = vmul.f32 1.442695, %v905_v48 }
 0x23a   : > { %1926 = vpow2.f32 %v906_v50 }
 0x23b   : > { %1928 = vpow2.f32 %v848_v51 }
 0x23d   : > { %v798_v52 = vpop.permute.xlu2 %797  ;;  %v962_v53 = vpop.xlane.xlu0 %961 }
 0x23e   : > { %v804_v54 = vsel %vm802_vm2, %v798_v52, 0  ;;  %v963_v56 = vsub.f32 %v959_v38, %v962_v53 }
 0x23f   : > { %813 = vmatpush.bf16.msra.mxu2 %v804_v54 }
 0x240   : > { %v1927_v55 = vpop.eup %1926  ;;  %v964_v58 = vmul.f32 1.442695, %v963_v56 }
 0x241   : > { %v908_v57 = vsel %vm763_vm1, %v1927_v55, 0.0  ;;  %v1929_v59 = vpop.eup %1928 }
 0x242   : > { %909 = vadd.xlane.f32.xlu0 %v908_v57  ;;  %1930 = vpow2.f32 %v964_v58  ;;  %v850_v60 = vsel %vm763_vm1, %v1929_v59, 0.0  ;;  %v716_v58 = vld [vmem:[%s701_s26] sm:$0xff]  ;;  %s2561_s26 = smov 112  }
 0x245   : > { %856 = vrot.lane.b32.xlu1 %v2224_v7, %s2037_s1  ;;  %v973_v5 = vpop.permute.xlu2 %972  ;;  %s2525_s1 = smov 24  }
 0x246   : > { %v978_v9 = vsel %vm802_vm2, %v973_v5, 0 }
 0x248   : > { %v1931_v61 = vpop.eup %1930 }
 0x249   : > { %v966_v62 = vsel %vm763_vm1, %v1931_v61, 0.0 }
 0x24a   : > { %851 = vadd.xlane.f32.xlu0 %v850_v60  ;;  %v1848_v60 = vld [vmem:[%s2559_s8 + $0x8] sm:$0xff] }
 0x252   : > { %967 = vadd.xlane.f32.xlu0 %v966_v62 }
 0x266   : > { %914 = vrot.lane.b32.xlu0 %v2224_v7, %s2038_s28 }
 0x29f   : > { %v793_v63 = vpop.xlane.xlu1 %792 }
 0x2a0   : > { %1932 = vrcp.f32 %v793_v63 }
 0x2a6   : > { %v1933_v0 = vpop.eup %1932 }
 0x2a7   : > { %v795_v1 = vmul.f32 %v1933_v0, %v1925_v44 }
 0x2a9   : > { %v796_v3 = vpack.c.bf16 %v795_v1, %v795_v1 }
 0x2ab   : > { %1758 = vmatmul.msk.bf16.vlgmr.msra.gmra.mxu2 %vm763_vm1, %v796_v3 }
 0x2b5   : > { %v910_v4 = vpop.xlane.xlu0 %909 }
 0x2b7   : > { %v857_v6 = vpop.permute.xlu1 %856 }
 0x2b8   : > { %v862_v8 = vsel %vm802_vm2, %v857_v6, 0 }
 0x2b9   : > { %871 = vmatpush.bf16.msrb.mxu2 %v862_v8 }
 0x2bd   : > { %987 = vmatpush.bf16.msra.mxu2 %v978_v9  ;;  %v852_v10 = vpop.xlane.xlu0 %851  ;;  %v2320_v9 = vld [vmem:[%s2509_s18] ss:$0 sm:$0xff] }
 0x2be   : > { %1934 = vrcp.f32 %v852_v10 }
 0x2c4   : > { %v1935_v11 = vpop.eup %1934 }
 0x2c5   : > { %v854_v7 = vmul.f32 %v1935_v11, %v1929_v59  ;;  %v968_v12 = vpop.xlane.xlu0 %967  ;;  %v1127_v59 = vpack.c.bf16 %v716_v58, %v716_v58 }
 0x2c6   : > { %1936 = vrcp.f32 %v968_v12 }
 0x2c7   : > { %v855_v13 = vpack.c.bf16 %v854_v7, %v854_v7  ;;  %1938 = vrcp.f32 %v910_v4  ;;  %1791 = vmatmul.msk.bf16.vlgmr.msra.gmra.mxu3 %vm742_vm0, %v1127_v59  ;;  %v2325_v7 = vld [vmem:[%s2510_s19] ss:$0 sm:$0xff] }
 0x2c8   : > { %1940 = vrcp.f32 %v2042_v45 }
 0x2c9   : > { %1760 = vmatmul.msk.bf16.vlgmr.msrb.gmra.mxu2 %vm763_vm1, %v855_v13 }
 0x2cc   : > { %v1937_v14 = vpop.eup %1936 }
 0x2cd   : > { %v970_v15 = vmul.f32 %v1937_v14, %v1931_v61  ;;  %v1939_v16 = vpop.eup %1938  ;;  %v1847_v61 = vld [vmem:[%s2559_s8] sm:$0xff] }
 0x2ce   : > { %v912_v17 = vmul.f32 %v1939_v16, %v1927_v55  ;;  %v1941_v48 = vpop.eup %1940 }
 0x2cf   : > { %v971_v18 = vpack.c.bf16 %v970_v15, %v970_v15  ;;  %vm1056_vm5 = vweird.f32 %v1941_v48  ;;  %v1919_v15 = vld [vmem:[%s2560_s11] ss:$0 sm:$0xff] }
 0x2d0   : > { %v913_v21 = vpack.c.bf16 %v912_v17, %v912_v17 }
 0x2d8   : > { %v915_v19 = vpop.permute.xlu0 %914 }
 0x2d9   : > { %1764 = vmatmul.msk.bf16.vlgmr.msra.gmra.mxu2 %vm763_vm1, %v971_v18  ;;  %v920_v20 = vsel %vm802_vm2, %v915_v19, 0 }
 0x2da   : > { %929 = vmatpush.bf16.msrb.mxu1 %v920_v20 }
 0x2dd   : > { %1762 = vmatmul.msk.bf16.vlgmr.msrb.gmra.mxu1 %vm763_vm1, %v913_v21  ;;  %v1920_v21 = vld [vmem:[%s2562_s9] ss:$0 sm:$0xff] }
 0x2de   : > { %1115 = vmatpush.bf16.msra.mxu1 %v1848_v60 }
 0x2e2   : > { %1116 = vmatpush.bf16.msra.mxu1 %v1847_v61 }
 0x32e   : > { %v815_v22 = vpop.f32.mrf.mxu2 }
 0x336   : > { %v817_v23 = vpop.f32.mrf.mxu2 }
 0x34a   : > { %v1155_v16 = vpop.f32.mrf.mxu3 }
 0x34b   : > { %v1156_v17 = vadd.f32 %v1919_v15, %v1155_v16 }
 0x34c   : > { %v873_v24 = vpop.f32.mrf.mxu2 }
 0x34d   : > { %994 = vrot.lane.b32.xlu1 %v873_v24, %s2527_s29  ;;  %v2333_v18 = vpack.c.bf16 %v1156_v17, %v1156_v17  ;;  %s2564_s29 = sld [smem:[#allocation13_spill]] }
 0x34f   : > { %1220 = vrot.lane.b32.xlu0 %v2333_v18, %s2029_s2  ;;  %v1165_v19 = vsel %vm763_vm1, %v2333_v18, 0 }
 0x350   : > { %1174 = vmatpush.bf16.xpose.msrb.mxu2 %v1165_v19 }
 0x352   : > { %v1157_v20 = vpop.f32.mrf.mxu3 }
 0x353   : > { %s709_s28 = scalar_lea.vmem %s2564_s29, %s2210_s30  ;;  %s2569_s29 = smov 8  }
 0x354   : > { %v875_v25 = vpop.f32.mrf.mxu2 }
 0x357   : > { %1280 = vrot.lane.b32.xlu0 %v2333_v18, %s2561_s26 }
 0x35a   : > { %v931_v26 = vpop.f32.mrf.mxu1 }
 0x35b   : > { %998 = vrot.lane.b32.xlu2 %v931_v26, %s2526_s4  ;;  %s2531_s4 = sand.u32 1, %s2018_s25  }
 0x35c   : > { %v989_v27 = vpop.f32.mrf.mxu2 }
 0x35d   : > { %1002 = vrot.lane.b32.xlu1 %v989_v27, %s2525_s1  ;;  %s2563_s1 = smov 104  }
 0x362   : > { %v933_v28 = vpop.f32.mrf.mxu1 }
 0x364   : > { %v991_v29 = vpop.f32.mrf.mxu2 }
 0x3b5   : > { %v999_v34 = vpop.permute.xlu2 %998 }
 0x3bf   : > { %v995_v32 = vpop.permute.xlu1 %994 }
 0x3c0   : > { %v1005_v33 = vsel %vm763_vm1, %v815_v22, %v995_v32 }
 0x3c1   : > { %v1007_v36 = vsel %vm1006_vm3, %v1005_v33, %v999_v34  ;;  %v1221_v26 = vpop.permute.xlu0 %1220 }
 0x3c2   : > { %v1226_v27 = vsel %vm763_vm1, %v1221_v26, 0 }
 0x3c3   : > { %1235 = vmatpush.bf16.xpose.msrb.mxu1 %v1226_v27 }
 0x3c9   : > { %v1281_v28 = vpop.permute.xlu0 %1280 }
 0x3ca   : > { %v1286_v29 = vsel %vm763_vm1, %v1281_v28, 0 }
 0x3cb   : > { %1295 = vmatpush.bf16.xpose.msra.mxu2 %v1286_v29 }
 0x3cf   : > { %v1003_v35 = vpop.permute.xlu1 %1002 }
 0x3d0   : > { %v1009_v37 = vsel %vm1008_vm4, %v1007_v36, %v1003_v35  ;;  %v718_v36 = vld [vmem:[%s709_s28] sm:$0xff]  ;;  %s2570_s28 = smov 16  }
 0x3d1   : > { %v1015_v38 = vpack.c.bf16 %v1009_v37, %v1009_v37 }
 0x3d3   : > { %1773 = vmatmul.msk.bf16.vlgmr.msra.gmra.mxu0 %vm742_vm0, %v1015_v38 }
 0x450   : > { %v1043_v40 = vpop.f32.mrf.mxu0 }
 0x451   : > { %v1044_v41 = vadd.f32 %v1916_v39, %v1043_v40 }
 0x453   : > { %v2290_v42 = vadd.f32 %v1044_v41, %v2216_v2  ;;  %v1052_v2 = vmul.f32 32.0, %v1941_v48 }
 0x455   : > { %v1048_v43 = vsel %vm742_vm0, %v2290_v42, 0.0  ;;  %v1053_v49 = vsub.f32 1.0, %v1052_v2 }
 0x456   : > { %1049 = vadd.xlane.f32.xlu2 %v1048_v43 }
 0x457   : > { %v1054_v50 = vmul.f32 %v1941_v48, %v1053_v49 }
 0x458   : > { %v1045_v44 = vpop.f32.mrf.mxu0 }
 0x459   : > { %v1055_v51 = vadd.f32 %v1941_v48, %v1054_v50 }
 0x45b   : > { %v2300_v52 = vsel %vm1056_vm5, %v1941_v48, %v1055_v51 }
 0x4c9   : > { %v1050_v53 = vpop.xlane.xlu2 %1049 }
 0x4ca   : > { %v1058_v54 = vmul.f32 %v2300_v52, %v1050_v53 }
 0x4cc   : > { %v1059_v55 = vsub.f32 %v2290_v42, %v1058_v54 }
 0x4ce   : > { %v1060_v56 = vmul.f32 %v1059_v55, %v1059_v55 }
 0x4d0   : > { %v1061_v57 = vsel %vm742_vm0, %v1060_v56, 0.0 }
 0x4d1   : > { %1062 = vadd.xlane.f32.xlu1 %v1061_v57 }
 0x544   : > { %v1063_v62 = vpop.xlane.xlu1 %1062 }
 0x545   : > { %v1064_v63 = vmul.f32 %v1063_v62, %v2300_v52 }
 0x547   : > { %v1065_v0 = vadd.f32 1e-06, %v1064_v63 }
 0x549   : > { %1942 = vrsqrt.f32 %v1065_v0  ;;  %vm1072_vm7 = vweird.f32 %v1065_v0 }
 0x54f   : > { %v1943_v1 = vpop.eup %1942 }
 0x550   : > { %v1067_v3 = vmul.f32 %v1943_v1, %v1065_v0  ;;  %vm1073_vm6 = vweird.f32 %v1943_v1 }
 0x551   : > { %vm1074_vm8 = vmor %vm1072_vm7, %vm1073_vm6 }
 0x552   : > { %v1068_v4 = vmul.f32 %v1943_v1, %v1067_v3 }
 0x554   : > { %v1069_v5 = vmul.f32 0.5, %v1068_v4 }
 0x556   : > { %v1070_v6 = vsub.f32 1.5, %v1069_v5 }
 0x558   : > { %v1071_v8 = vmul.f32 %v1943_v1, %v1070_v6 }
 0x55a   : > { %v1075_v10 = vsel %vm1074_vm8, %v1943_v1, %v1071_v8 }
 0x55b   : > { %v1076_v11 = vmul.f32 %v1075_v10, %v1059_v55 }
 0x55d   : > { %v1080_v12 = vmul.f32 %v2320_v9, %v1076_v11 }
 0x55f   : > { %v1084_v13 = vadd.f32 %v2325_v7, %v1080_v12 }
 0x561   : > { %v1090_v14 = vpack.c.bf16 %v1084_v13, %v1084_v13 }
 0x563   : > { %1782 = vmatmul.msk.bf16.vlgmr.msra.gmra.mxu1 %vm742_vm0, %v1090_v14 }
 0x5e0   : > { %v1118_v22 = vpop.f32.mrf.mxu1 }
 0x5e1   : > { %v1119_v23 = vadd.f32 %v1920_v21, %v1118_v22 }
 0x5e3   : > { %v1159_v24 = vpack.c.bf16 %v1119_v23, %v1119_v23 }
 0x5e5   : > { %1338 = vrot.lane.b32.xlu2 %v1159_v24, %s2563_s1  ;;  %1218 = vrot.lane.b32.xlu0 %v1159_v24, %s2029_s2 }
 0x5e6   : > { %1792 = vmatmul.msk.bf16.vlgmr.msrb.gmra.mxu2 %vm763_vm1, %v1159_v24 }
 0x5e8   : > { %v1120_v25 = vpop.f32.mrf.mxu1 }
 0x5ed   : > { %1340 = vrot.lane.b32.xlu0 %v2333_v18, %s2563_s1  ;;  %s1742_s1 = sshll.u32 %s2531_s4, 5 }
 0x5ee   : > { %s2378_s2 = scalar_lea.vmem [#allocation2], %s1742_s1 }
 0x5ef   : > { %s1613_s1 = sshll.u32 %s2378_s2, 4  ;;  %s1614_s1 = int_to_ptr.vmem [resolvable:$true] %s1613_s1 }
 0x5f5   : > { %1278 = vrot.lane.b32.xlu0 %v1159_v24, %s2561_s26  ;;  %s2566_s26 = smov 72  }
 0x63f   : > { %v1339_v33 = vpop.permute.xlu2 %1338 }
 0x657   : > { %v1219_v30 = vpop.permute.xlu0 %1218 }
 0x658   : > { %1794 = vmatmul.msk.bf16.vlgmr.msrb.gmra.mxu1 %vm763_vm1, %v1219_v30 }
 0x65f   : > { %v1341_v31 = vpop.permute.xlu0 %1340 }
 0x660   : > { %v1346_v32 = vsel %vm763_vm1, %v1341_v31, 0 }
 0x661   : > { %1355 = vmatpush.bf16.xpose.msra.mxu1 %v1346_v32 }
 0x667   : > { %v1279_v34 = vpop.permute.xlu0 %1278 }
 0x668   : > { %1797 = vmatmul.msk.bf16.vlgmr.msra.gmra.mxu2 %vm763_vm1, %v1279_v34  ;;  %1800 = vmatmul.msk.bf16.vlgmr.msra.gmra.mxu1 %vm763_vm1, %v1339_v33 }
 0x669   : > { %v1176_v35 = vpop.f32.mrf.mxu2 }
 0x66a   : > { %v1180_v37 = vmul.f32 0.35355338, %v1176_v35 }
 0x66c   : > { %v1181_v38 = vadd.f32 %v1180_v37, %v718_v36 }
 0x66e   : > { %v1182_v39 = vsel %vm763_vm1, %v1181_v38, -inf }
 0x66f   : > { %1183 = vmax.xlane.f32.xlu0 %v1182_v39 }
 0x671   : > { %v1178_v40 = vpop.f32.mrf.mxu2 }
 0x683   : > { %1195 = vrot.lane.b32.xlu0 %v2333_v18, %s2565_s0  ;;  %s2571_s0 = smov 24  }
 0x68b   : > { %1375 = vrot.lane.b32.xlu0 %v2333_v18, %s2566_s26 }
 0x6d5   : > { %v1237_v41 = vpop.f32.mrf.mxu1 }
 0x6d6   : > { %v1241_v43 = vmul.f32 0.35355338, %v1237_v41 }
 0x6d8   : > { %v1242_v44 = vadd.f32 %v1241_v43, %v718_v36 }
 0x6da   : > { %v1243_v45 = vsel %vm763_vm1, %v1242_v44, -inf }
 0x6db   : > { %1244 = vmax.xlane.f32.xlu1 %v1243_v45 }
 0x6dd   : > { %v1239_v46 = vpop.f32.mrf.mxu1 }
 0x6e2   : > { %v1184_v2 = vpop.xlane.xlu0 %1183 }
 0x6e3   : > { %v1185_v53 = vsub.f32 %v1181_v38, %v1184_v2  ;;  %v1852_v2 = vld [vmem:[%s2503_s12 + $0x8] sm:$0xff] }
 0x6e4   : > { %1443 = vmatpush.bf16.msrb.mxu2 %v1852_v2 }
 0x6e5   : > { %v1357_v47 = vpop.f32.mrf.mxu1  ;;  %v1186_v56 = vmul.f32 1.442695, %v1185_v53 }
 0x6e6   : > { %v1361_v54 = vmul.f32 0.35355338, %v1357_v47 }
 0x6e7   : > { %1944 = vpow2.f32 %v1186_v56 }
 0x6e8   : > { %v1362_v58 = vadd.f32 %v1361_v54, %v718_v36 }
 0x6ea   : > { %v1363_v61 = vsel %vm763_vm1, %v1362_v58, -inf }
 0x6eb   : > { %v1297_v48 = vpop.f32.mrf.mxu2 }
 0x6ec   : > { %v1301_v49 = vmul.f32 0.35355338, %v1297_v48 }
 0x6ed   : > { %v1359_v50 = vpop.f32.mrf.mxu1  ;;  %v1945_v62 = vpop.eup %1944 }
 0x6ee   : > { %v1302_v51 = vadd.f32 %v1301_v49, %v718_v36  ;;  %v1188_v63 = vsel %vm763_vm1, %v1945_v62, 0.0  ;;  %v1851_v49 = vld [vmem:[%s2503_s12] sm:$0xff] }
 0x6ef   : > { %1444 = vmatpush.bf16.msrb.mxu2 %v1851_v49 }
 0x6f0   : > { %v1303_v55 = vsel %vm763_vm1, %v1302_v51, -inf }
 0x6f1   : > { %1304 = vmax.xlane.f32.xlu1 %v1303_v55 }
 0x6f3   : > { %v1299_v57 = vpop.f32.mrf.mxu2 }
 0x6f5   : > { %v1196_v59 = vpop.permute.xlu0 %1195 }
 0x6f6   : > { %v1201_v60 = vsel %vm802_vm2, %v1196_v59, 0 }
 0x6f7   : > { %1210 = vmatpush.bf16.msrb.mxu0 %v1201_v60 }
 0x6f9   : > { %1364 = vmax.xlane.f32.xlu1 %v1363_v61 }
 0x6fd   : > { %v1376_v23 = vpop.permute.xlu0 %1375 }
 0x6fe   : > { %v1381_v26 = vsel %vm802_vm2, %v1376_v23, 0 }
 0x701   : > { %1189 = vadd.xlane.f32.xlu1 %v1188_v63 }
 0x71a   : > { %1255 = vrot.lane.b32.xlu1 %v2333_v18, %s2567_s22  ;;  %s1612_s22 = scalar_lea.hbm %s2512_s21, %s1859_s6 }
 0x74e   : > { %v1245_v0 = vpop.xlane.xlu1 %1244 }
 0x74f   : > { %v1246_v1 = vsub.f32 %v1242_v44, %v1245_v0 }
 0x751   : > { %v1247_v3 = vmul.f32 1.442695, %v1246_v1 }
 0x753   : > { %1946 = vpow2.f32 %v1247_v3 }
 0x759   : > { %v1947_v4 = vpop.eup %1946 }
 0x75a   : > { %v1249_v5 = vsel %vm763_vm1, %v1947_v4, 0.0 }
 0x75b   : > { %1250 = vadd.xlane.f32.xlu2 %v1249_v5 }
 0x764   : > { %v1305_v6 = vpop.xlane.xlu1 %1304 }
 0x765   : > { %v1306_v8 = vsub.f32 %v1302_v51, %v1305_v6  ;;  %v1854_v6 = vld [vmem:[%s2505_s14 + $0x8] sm:$0xff] }
 0x767   : > { %v1307_v10 = vmul.f32 1.442695, %v1306_v8  ;;  %v1858_v8 = vld [vmem:[%s2507_s16 + $0x18] sm:$0xff] }
 0x768   : > { %1558 = vmatpush.bf16.msrb.mxu1 %v1858_v8 }
 0x769   : > { %1948 = vpow2.f32 %v1307_v10 }
 0x76c   : > { %v1365_v11 = vpop.xlane.xlu1 %1364 }
 0x76d   : > { %v1366_v12 = vsub.f32 %v1362_v58, %v1365_v11  ;;  %v1921_v58 = vld [vmem:[%s2504_s13] ss:$0 sm:$0xff] }
 0x76f   : > { %v1949_v13 = vpop.eup %1948  ;;  %v1367_v14 = vmul.f32 1.442695, %v1366_v12  ;;  %v1857_v12 = vld [vmem:[%s2507_s16 + $0x10] sm:$0xff] }
 0x770   : > { %v1309_v15 = vsel %vm763_vm1, %v1949_v13, 0.0  ;;  %1559 = vmatpush.bf16.msrb.mxu1 %v1857_v12 }
 0x771   : > { %1950 = vpow2.f32 %v1367_v14  ;;  %1310 = vadd.xlane.f32.xlu2 %v1309_v15 }
 0x774   : > { %v1190_v16 = vpop.xlane.xlu1 %1189 }
 0x775   : > { %1952 = vrcp.f32 %v1190_v16 }
 0x777   : > { %v1951_v17 = vpop.eup %1950 }
 0x778   : > { %v1369_v19 = vsel %vm763_vm1, %v1951_v17, 0.0 }
 0x779   : > { %1370 = vadd.xlane.f32.xlu1 %v1369_v19 }
 0x77b   : > { %v1953_v20 = vpop.eup %1952 }
 0x77c   : > { %v1192_v21 = vmul.f32 %v1953_v20, %v1945_v62 }
 0x77e   : > { %v1193_v22 = vpack.c.bf16 %v1192_v21, %v1192_v21  ;;  %1216 = vst.msk [vmem:[%s2378_s2] sm:$0xff] %vm763_vm1, %v1192_v21 }
 0x780   : > { %1793 = vmatmul.msk.bf16.vlgmr.msrb.gmra.mxu0 %vm763_vm1, %v1193_v22 }
 0x789   : > { %1315 = vrot.lane.b32.xlu2 %v2333_v18, %s2568_s23  ;;  %s1615_s23 = sshll.u32 %s1612_s22, 4  ;;  %s1616_s23 = int_to_ptr.hbm [resolvable:$true] %s1615_s23 }
 0x78a   : > { %s1978_s7 = sshra.s32 %s1616_s23, 4  ;;  %s1979_s7 = int_to_ptr.hbm [resolvable:$true] %s1978_s7 }
 0x78b   : > { %s1980_s8 = scalar_lea.hbm %s1979_s7, 32  ;;  %p1985_p0 = scmp.lt.s32.totalorder %s1979_s7, %s2512_s21 }
 0x78c   : > { %v1256_v24 = vpop.permute.xlu1 %1255  ;;  %p1981_p11 = scmp.ne.s32.totalorder %s1979_s7, %s1980_s8  ;;  %p1986_p1 = scmp.lt.s32.totalorder %s1984_s3, %s1980_s8 }
 0x78d   : > { %v1261_v25 = vsel %vm802_vm2, %v1256_v24, 0 }
 0x78e   : > { %1270 = vmatpush.bf16.msrb.mxu3 %v1261_v25  ;;  %p1982_p12 = pnand %p1981_p11, %p2192_p5  ;;  %p1987_p2 = por %p1986_p1, %p1985_p0 }
 0x790   : > { %p1983_p13 = pneg %p1982_p12 }
 0x792   : > { %1390 = vmatpush.bf16.msra.mxu3 %v1381_v26  ;;  %v1856_v26 = vld [vmem:[%s2507_s16 + $0x8] sm:$0xff]  ;;  %p1988_p3 = pnand %p1987_p2, %p1983_p13 }
 0x793   : > { %1560 = vmatpush.bf16.msrb.mxu1 %v1856_v26 }
 0x7ce   : > { %v1251_v27 = vpop.xlane.xlu2 %1250 }
 0x7cf   : > { %1954 = vrcp.f32 %v1251_v27  ;;  %v1855_v27 = vld [vmem:[%s2507_s16] sm:$0xff] }
 0x7d0   : > { %1561 = vmatpush.bf16.msrb.mxu1 %v1855_v27 }
 0x7d5   : > { %v1955_v28 = vpop.eup %1954 }
 0x7d6   : > { %v1253_v29 = vmul.f32 %v1955_v28, %v1947_v4  ;;  %v1922_v28 = vld [vmem:[%s2506_s15] ss:$0 sm:$0xff] }
 0x7d8   : > { %v1254_v30 = vpack.c.bf16 %v1253_v29, %v1253_v29  ;;  %1796 = vst.msk [vmem:[%s2378_s2 + $0x8] sm:$0xff] %vm763_vm1, %v1253_v29 }
 0x7da   : > { %1795 = vmatmul.msk.bf16.vlgmr.msrb.gmra.mxu3 %vm763_vm1, %v1254_v30 }
 0x7e4   : > { %v1311_v18 = vpop.xlane.xlu2 %1310 }
 0x7e5   : > { %1956 = vrcp.f32 %v1311_v18 }
 0x7eb   : > { %v1957_v31 = vpop.eup %1956 }
 0x7ec   : > { %v1313_v32 = vmul.f32 %v1957_v31, %v1949_v13  ;;  %v1316_v33 = vpop.permute.xlu2 %1315  ;;  %v1371_v34 = vpop.xlane.xlu1 %1370 }
 0x7ed   : > { %v1321_v35 = vsel %vm802_vm2, %v1316_v33, 0  ;;  %1958 = vrcp.f32 %v1371_v34  ;;  %v1923_v33 = vld [vmem:[%s2508_s17] ss:$0 sm:$0xff] }
 0x7ee   : > { %v1314_v36 = vpack.c.bf16 %v1313_v32, %v1313_v32  ;;  %1799 = vst.msk [vmem:[%s2378_s2 + $0x10] sm:$0xff] %vm763_vm1, %v1313_v32  ;;  %1330 = vmatpush.bf16.msra.mxu0 %v1321_v35 }
 0x7f1   : > { %1798 = vmatmul.msk.bf16.vlgmr.msra.gmra.mxu0 %vm763_vm1, %v1314_v36 }
 0x7f2   : > { %1505 = vmatpush.bf16.msrb.mxu0 %v1854_v6 }
 0x7f3   : > { %v1959_v37 = vpop.eup %1958 }
 0x7f4   : > { %v1373_v38 = vmul.f32 %v1959_v37, %v1951_v17 }
 0x7f6   : > { %v1374_v39 = vpack.c.bf16 %v1373_v38, %v1373_v38  ;;  %1802 = vst.msk [vmem:[%s2378_s2 + $0x18] sm:$0xff] %vm763_vm1, %v1373_v38 }
 0x7f8   : > { %1801 = vmatmul.msk.bf16.vlgmr.msra.gmra.mxu3 %vm763_vm1, %v1374_v39 }
 0x7fd   : > { %v1212_v40 = vpop.f32.mrf.mxu0 }
 0x805   : > { %v1214_v41 = vpop.f32.mrf.mxu0 }
 0x85d   : > { %v1272_v43 = vpop.f32.mrf.mxu3 }
 0x85e   : > { %1399 = vrot.lane.b32.xlu0 %v1272_v43, %s2569_s29 }
 0x865   : > { %v1274_v44 = vpop.f32.mrf.mxu3 }
 0x86e   : > { %v1332_v45 = vpop.f32.mrf.mxu0 }
 0x86f   : > { %1403 = vrot.lane.b32.xlu0 %v1332_v45, %s2570_s28  ;;  %s2572_s28 = sand.u32 1, %s2018_s25  }
 0x876   : > { %v1334_v46 = vpop.f32.mrf.mxu0 }
 0x87b   : > { %v1392_v47 = vpop.f32.mrf.mxu3 }
 0x87c   : > { %1407 = vrot.lane.b32.xlu0 %v1392_v47, %s2571_s0  ;;  %s1598_s0 = scalar_lea.sflag [#allocation3], %s2572_s28 }
 0x883   : > { %v1394_v48 = vpop.f32.mrf.mxu3 }
 0x8d0   : > { %v1400_v50 = vpop.permute.xlu0 %1399 }
 0x8d1   : > { %v1410_v53 = vsel %vm763_vm1, %v1212_v40, %v1400_v50 }
 0x8e1   : > { %v1404_v51 = vpop.permute.xlu0 %1403 }
 0x8e2   : > { %v1411_v54 = vsel %vm1006_vm3, %v1410_v53, %v1404_v51 }
 0x8ee   : > { %v1408_v55 = vpop.permute.xlu0 %1407 }
 0x8ef   : > { %v1412_v56 = vsel %vm1008_vm4, %v1411_v54, %v1408_v55 }
 0x8f0   : > { %v1418_v57 = vpack.c.bf16 %v1412_v56, %v1412_v56 }
 0x8f2   : > { %1811 = vmatmul.msk.bf16.vlgmr.msrb.gmra.mxu2 %vm742_vm0, %v1418_v57 }
 0x975   : > { %v1446_v59 = vpop.f32.mrf.mxu2 }
 0x976   : > { %v1447_v60 = vadd.f32 %v1921_v58, %v1446_v59 }
 0x978   : > { %v1450_v61 = vadd.f32 %v1447_v60, %v2290_v42  ;;  %v1853_v42 = vld [vmem:[%s2505_s14] sm:$0xff] }
 0x979   : > { %1506 = vmatpush.bf16.msrb.mxu0 %v1853_v42 }
 0x97a   : > { %v1451_v62 = vsel %vm742_vm0, %v1450_v61, 0.0 }
 0x97b   : > { %1452 = vadd.xlane.f32.xlu2 %v1451_v62 }
 0x97d   : > { %v1448_v63 = vpop.f32.mrf.mxu2 }
 0x9ee   : > { %v1453_v0 = vpop.xlane.xlu2 %1452 }
 0x9ef   : > { %v1454_v1 = vmul.f32 %v1453_v0, %v2300_v52 }
 0x9f1   : > { %v1455_v3 = vsub.f32 %v1450_v61, %v1454_v1 }
 0x9f3   : > { %v1456_v4 = vmul.f32 %v1455_v3, %v1455_v3 }
 0x9f5   : > { %v1457_v5 = vsel %vm742_vm0, %v1456_v4, 0.0 }
 0x9f6   : > { %1458 = vadd.xlane.f32.xlu0 %v1457_v5 }
 0xa69   : > { %v1459_v10 = vpop.xlane.xlu0 %1458 }
 0xa6a   : > { %v1460_v11 = vmul.f32 %v1459_v10, %v2300_v52 }
 0xa6c   : > { %v1461_v13 = vadd.f32 1e-06, %v1460_v11 }
 0xa6e   : > { %1960 = vrsqrt.f32 %v1461_v13  ;;  %vm1468_vm10 = vweird.f32 %v1461_v13 }
 0xa74   : > { %v1961_v14 = vpop.eup %1960 }
 0xa75   : > { %v1463_v15 = vmul.f32 %v1961_v14, %v1461_v13  ;;  %vm1469_vm9 = vweird.f32 %v1961_v14 }
 0xa76   : > { %vm1470_vm11 = vmor %vm1468_vm10, %vm1469_vm9 }
 0xa77   : > { %v1464_v16 = vmul.f32 %v1961_v14, %v1463_v15 }
 0xa79   : > { %v1465_v17 = vmul.f32 0.5, %v1464_v16 }
 0xa7b   : > { %v1466_v19 = vsub.f32 1.5, %v1465_v17 }
 0xa7d   : > { %v1467_v20 = vmul.f32 %v1961_v14, %v1466_v19 }
 0xa7f   : > { %v1471_v21 = vsel %vm1470_vm11, %v1961_v14, %v1467_v20 }
 0xa80   : > { %v1472_v22 = vmul.f32 %v1471_v21, %v1455_v3 }
 0xa82   : > { %v1473_v23 = vmul.f32 %v2320_v9, %v1472_v22 }
 0xa84   : > { %v1474_v24 = vadd.f32 %v2325_v7, %v1473_v23 }
 0xa86   : > { %v1480_v25 = vpack.c.bf16 %v1474_v24, %v1474_v24 }
 0xa88   : > { %1820 = vmatmul.msk.bf16.vlgmr.msrb.gmra.mxu0 %vm742_vm0, %v1480_v25 }
 0xb05   : > { %v1508_v29 = vpop.f32.mrf.mxu0 }
 0xb06   : > { %v1509_v30 = vadd.f32 %v1922_v28, %v1508_v29 }
 0xb08   : > { %v1512_v18 = vmax.f32 %v1509_v30, 0.0 }
 0xb0a   : > { %v1522_v31 = vpack.c.bf16 %v1512_v18, %v1512_v18 }
 0xb0c   : > { %1837 = vmatmul.msk.bf16.vlgmr.msrb.gmra.mxu1 %vm1550_vm12, %v1522_v31 }
 0xb0d   : > { %v1510_v32 = vpop.f32.mrf.mxu0 }
 0xb89   : > { %v1563_v34 = vpop.f32.mrf.mxu1 }
 0xb8a   : > { %v1564_v35 = vadd.f32 %v1923_v33, %v1563_v34 }
 0xb8c   : > { %v1567_v36 = vadd.f32 %v1564_v35, %v1450_v61 }
 0xb8e   : > { %v1568_v37 = vsel %vm742_vm0, %v1567_v36, 0.0 }
 0xb8f   : > { %1569 = vadd.xlane.f32.xlu1 %v1568_v37 }
 0xb91   : > { %v1565_v38 = vpop.f32.mrf.mxu1 }
 0xc02   : > { %v1570_v39 = vpop.xlane.xlu1 %1569 }
 0xc03   : > { %v1571_v40 = vmul.f32 %v1570_v39, %v2300_v52 }
 0xc05   : > { %v1572_v41 = vsub.f32 %v1567_v36, %v1571_v40 }
 0xc07   : > { %v1573_v43 = vmul.f32 %v1572_v41, %v1572_v41 }
 0xc09   : > { %v1574_v44 = vsel %vm742_vm0, %v1573_v43, 0.0 }
 0xc0a   : > { %1575 = vadd.xlane.f32.xlu1 %v1574_v44 }
 0xc0b   : > { %1991 = shalt.err (!%p1988_p3)
}
 0xc0c   : > { %s2043_s2 = smov 128   ;;  %s713_s9 = scalar_lea.vmem %s2511_s20, %s2210_s30 }
 0xc0d   : > { %1860 = dma.vmem_to_hbm [thread:$0]  (%p2192_p5), %s1614_s1, 512, %s1616_s23, %s1598_s0, %s2043_s2, %s2043_s2, %s2569_s29  }
 0xc7d   : > { %v1576_v45 = vpop.xlane.xlu1 %1575 }
 0xc7e   : > { %v1577_v46 = vmul.f32 %v1576_v45, %v2300_v52 }
 0xc80   : > { %v1578_v47 = vadd.f32 1e-06, %v1577_v46 }
 0xc82   : > { %1962 = vrsqrt.f32 %v1578_v47  ;;  %vm1585_vm14 = vweird.f32 %v1578_v47 }
 0xc88   : > { %v1963_v48 = vpop.eup %1962 }
 0xc89   : > { %v1580_v2 = vmul.f32 %v1963_v48, %v1578_v47  ;;  %vm1586_vm13 = vweird.f32 %v1963_v48 }
 0xc8a   : > { %vm1587_vm15 = vmor %vm1585_vm14, %vm1586_vm13 }
 0xc8b   : > { %v1581_v49 = vmul.f32 %v1963_v48, %v1580_v2 }
 0xc8d   : > { %v1582_v50 = vmul.f32 0.5, %v1581_v49 }
 0xc8f   : > { %v1583_v51 = vsub.f32 1.5, %v1582_v50 }
 0xc91   : > { %v1584_v53 = vmul.f32 %v1963_v48, %v1583_v51 }
 0xc93   : > { %v1588_v54 = vsel %vm1587_vm15, %v1963_v48, %v1584_v53 }
 0xc94   : > { %v1589_v55 = vmul.f32 %v1588_v54, %v1572_v41 }
 0xc96   : > { %v1590_v56 = vmul.f32 %v2320_v9, %v1589_v55 }
 0xc98   : > { %v1591_v52 = vadd.f32 %v2325_v7, %v1590_v56 }
 0xc9a   : > { %1592 = vst.msk [vmem:[%s713_s9] sm:$0xff] %vm742_vm0, %v1591_v52 }
 0xc9b PF: > { %s2573_s10 = sld [smem:[#allocation5_spill]]  ;;  %p1866_p4 = scmp.ge.s32.totalorder %s2026_s27, 2 }
 0xc9d   : > { %p1863_p5 = pnand %p1866_p4, %p2196_p6 }
 0xc9f   : > { %p1864_p7 = pneg %p1863_p5 }
 0xca1   : > { %s1637_s5 = sand.u32 1, %s2573_s10  }
 0xca2   : > { %s1638_s29 = scalar_lea.sflag [#allocation3], %s1637_s5 }
 0xca3   : > { %2009 = dma.done.wait (%p1864_p7), %s1638_s29, 512  }
 0xca4   : > { %2011 = vsyncadd (%p1864_p7), %s1638_s29, 4294966784  ;;  %s2575_s27 = sld [smem:[#allocation7_spill]]  ;;  %s2578_s2 = smov %s2018_s25 }
 0xca5   : > { %s2576_s6 = sld [smem:[#allocation6_spill]] }
 0xca6   : > { %s2577_s26 = sld [smem:[#allocation8_spill]] }
 0xcaa   : > { %p32_p8 = scmp.ge.s32.totalorder %s2575_s27, 4  }
 0xcab   : > { %s2579_s25 = smov %s2576_s6 }
 0xcac   :  { %34 = sbr.rel (!%p32_p8) target bundleno = 16 (0x10), region = 159 }
 0xcb1   :  { %1644 = vsyncpa [#allocation3], 1 }
 0xcb2   :  { %1646 = vsyncpa [#allocation3 + $0x1], 1 }

// kernel: run.3
= control target key start
LH: loop header
LB: loop body
LE: loop exit
PB: predicated region body
PF: predicated region fallthrough
CT: control target
= control target key end

     0   :  { %s2202_s0 = inlined_call_operand.vmem [shape: f32[2,8,32], index: 0, kind: input, shape index: {}]   ;;  %s2203_s1 = inlined_call_operand.vmem [shape: f32[2,8,32], index: 1, kind: input, shape index: {}]   ;;  %s2204_s2 = inlined_call_operand.vmem [shape: f32[2,8,8], index: 2, kind: input, shape index: {}]   ;;  %s2205_s3 = inlined_call_operand.vmem [shape: f32[2,8,8], index: 3, kind: input, shape index: {}]   ;;  %s2206_s4 = inlined_call_operand.vmem [shape: bf16[32,96], index: 4, kind: input, shape index: {}]   ;;  %s2207_s5 = inlined_call_operand.vmem [shape: f32[1,96], index: 5, kind: input, shape index: {}]   ;;  %s2208_s6 = inlined_call_operand.vmem [shape: bf16[32,32], index: 6, kind: input, shape index: {}]   ;;  %s2209_s7 = inlined_call_operand.vmem [shape: f32[1,32], index: 7, kind: input, shape index: {}]   ;;  %s2210_s8 = inlined_call_operand.vmem [shape: bf16[32,32], index: 8, kind: input, shape index: {}]   ;;  %s2211_s9 = inlined_call_operand.vmem [shape: f32[1,32], index: 9, kind: input, shape index: {}]   ;;  %s2212_s10 = inlined_call_operand.vmem [shape: bf16[32,64], index: 10, kind: input, shape index: {}]   ;;  %s2213_s11 = inlined_call_operand.vmem [shape: f32[1,64], index: 11, kind: input, shape index: {}]   ;;  %s2214_s12 = inlined_call_operand.vmem [shape: bf16[32,32], index: 12, kind: input, shape index: {}]   ;;  %s2215_s13 = inlined_call_operand.vmem [shape: f32[1,32], index: 13, kind: input, shape index: {}]   ;;  %s2216_s14 = inlined_call_operand.vmem [shape: bf16[32,64], index: 14, kind: input, shape index: {}]   ;;  %s2217_s15 = inlined_call_operand.vmem [shape: f32[1,64], index: 15, kind: input, shape index: {}]   ;;  %s2218_s16 = inlined_call_operand.vmem [shape: bf16[64,32], index: 16, kind: input, shape index: {}]   ;;  %s2219_s17 = inlined_call_operand.vmem [shape: f32[1,32], index: 17, kind: input, shape index: {}]   ;;  %s2220_s18 = inlined_call_operand.vmem [shape: f32[1,32], index: 18, kind: input, shape index: {}]   ;;  %s2221_s19 = inlined_call_operand.vmem [shape: f32[1,32], index: 19, kind: input, shape index: {}]   ;;  %s2222_s20 = inlined_call_operand.vmem [shape: f32[2,8,32], index: 20, kind: output, shape index: {}]  }
   0x1   :  { %2230 = sst [smem:[#allocation2_spill]] %s2202_s0 }
   0x2   :  { %2231 = sst [smem:[#allocation3_spill]] %s2203_s1  ;;  %s1952_s1 = smov 0  }
   0x3   :  { %2232 = sst [smem:[#allocation4_spill]] %s2204_s2 }
   0x4   :  { %2233 = sst [smem:[#allocation5_spill]] %s2205_s3 }
   0x5   :  { %2234 = sst [smem:[#allocation6_spill]] %s2206_s4 }
   0x6 LB: > { %s1637_s22 = sadd.s32 4294967295, %s1830_s1   ;;  %p1641_p0 = scmp.ge.s32.totalorder %s1830_s1, 1  ;;  %s1830_s1 = sphi %s1952_s1, %s30_s1  }
   0x7   : > { %p588_p1 = scmp.lt.s32.totalorder %s1830_s1, 3 }
   0x9   : > { %p589_p2 = pnand %p1641_p0, %p588_p1 }
   0xa   : > { %s2235_s2 = sld [smem:[#allocation6_spill]] (!%p589_p2)  ;;  %p656_p3 = scmp.lt.s32.totalorder (!%p589_p2), %s1637_s22, 1 }
   0xb   : > { %592 = sbr.rel (%p589_p2) target bundleno = 3208 (0xc88), region = 100  ;;  %s2236_s4 = sld [smem:[#allocation2_spill]] (!%p589_p2) }
   0xc   : > { %s1832_s21 = smov (!%p589_p2), 104   ;;  %s1834_s23 = smov (!%p589_p2), 96  }
   0xd   : > { %s2224_s24 = smov (!%p589_p2), 80   ;;  %s2229_s25 = smov (!%p589_p2), 72  }
   0xe   : > { %s2225_s3 = smov (!%p589_p2), 88   ;;  %s1838_s27 = smov (!%p589_p2), 112  }
   0xf   : > { %s1839_s0 = smov (!%p589_p2), 64   ;;  %s1840_s28 = smov (!%p589_p2), 40  }
  0x10   : > { %v1737_v0 = vld [vmem:[%s2235_s2 + $0x8] sm:$0xff]  ;;  %v1736_v1 = vld [vmem:[%s2235_s2] sm:$0xff]  ;;  %s2247_s22 = smov (!%p656_p3, %s1637_s22), 1  ;;  %vm704_vm0 = vcmask 261120   ;;  %vm725_vm1 = vcmask 64512   ;;  %vm764_vm2 = vcmask 1043456  }
  0x11   : > { %714 = vmatpush.bf16.msra.mxu0 %v1737_v0  ;;  %s1966_s26 = sshll.u32 %s2247_s22, 3  ;;  %v1775_v4 = vld [vmem:[%s2207_s5] ss:$0 sm:$0xff]  ;;  %s1833_s22 = smov 120   ;;  %vm968_vm3 = vcmask 130048   ;;  %vm970_vm4 = vcmask 195584  }
  0x12   : > { %s659_s29 = scalar_lea.vmem %s2236_s4, %s1966_s26  ;;  %s1841_s4 = smov 56   ;;  %vm1505_vm12 = vcmask 523264  }
  0x13   : > { %v1972_v2 = vld [vmem:[%s659_s29] sm:$0xff]  ;;  %s2237_s29 = sld [smem:[#allocation4_spill]] }
  0x14   : > { %v688_v3 = vpack.c.bf16 %v1972_v2, %v1972_v2 }
  0x15   : > { %715 = vmatpush.bf16.msra.mxu0 %v1736_v1 }
  0x18   : > { %1655 = vmatmul.msk.bf16.vlgmr.msra.gmra.mxu0 %vm704_vm0, %v688_v3 }
  0x19   : > { %s667_s30 = scalar_lea.vmem %s2237_s29, %s1966_s26  ;;  %s1842_s29 = smov 48  }
  0x1a   : > { %v679_v21 = vld [vmem:[%s667_s30] sm:$0xff]  ;;  %s2228_s30 = smov 8  }
  0x95   : > { %v717_v5 = vpop.f32.mrf.mxu0 }
  0x96   : > { %v718_v6 = vadd.f32 %v1775_v4, %v717_v5 }
  0x98   : > { %v1980_v7 = vpack.c.bf16 %v718_v6, %v718_v6 }
  0x9a   : > { %897 = vrot.lane.b32.xlu2 %v1980_v7, %s1832_s21  ;;  %781 = vrot.lane.b32.xlu1 %v1980_v7, %s1833_s22 }
  0x9b   : > { %723 = vrot.lane.b32.xlu0 %v1980_v7, %s1834_s23 }
  0x9d   : > { %v719_v8 = vpop.f32.mrf.mxu0 }
  0xa2   : > { %841 = vrot.lane.b32.xlu2 %v1980_v7, %s2224_s24  ;;  %899 = vrot.lane.b32.xlu1 %v1980_v7, %s2229_s25  ;;  %s2238_s24 = sld [smem:[#allocation3_spill]]  ;;  %s2242_s25 = smov 80  }
  0xa3   : > { %783 = vrot.lane.b32.xlu0 %v1980_v7, %s2225_s3 }
  0xa8   : > { %s663_s3 = scalar_lea.vmem %s2238_s24, %s1966_s26  ;;  %s2245_s24 = smov 24  }
  0xab   : > { %839 = vrot.lane.b32.xlu0 %v1980_v7, %s1838_s27 }
  0xf4   : > { %v898_v9 = vpop.permute.xlu2 %897 }
  0xfc   : > { %v842_v10 = vpop.permute.xlu2 %841 }
  0xfd   : > { %v847_v11 = vsel %vm725_vm1, %v842_v10, 0 }
  0xfe   : > { %856 = vmatpush.bf16.xpose.msrb.mxu0 %v847_v11 }
 0x10c   : > { %v782_v12 = vpop.permute.xlu1 %781 }
 0x10d   : > { %v724_v13 = vpop.permute.xlu0 %723 }
 0x10e   : > { %v730_v14 = vsel %vm725_vm1, %v724_v13, 0 }
 0x10f   : > { %739 = vmatpush.bf16.xpose.msra.mxu1 %v730_v14 }
 0x114   : > { %v900_v15 = vpop.permute.xlu1 %899 }
 0x115   : > { %v784_v16 = vpop.permute.xlu0 %783  ;;  %v905_v17 = vsel %vm725_vm1, %v900_v15, 0 }
 0x116   : > { %1656 = vmatmul.msk.bf16.vlgmr.msra.gmra.mxu1 %vm725_vm1, %v1980_v7  ;;  %v789_v18 = vsel %vm725_vm1, %v784_v16, 0 }
 0x117   : > { %798 = vmatpush.bf16.xpose.msra.mxu3 %v789_v18 }
 0x11d   : > { %v840_v19 = vpop.permute.xlu0 %839 }
 0x11e   : > { %1658 = vmatmul.msk.bf16.vlgmr.msra.gmra.mxu3 %vm725_vm1, %v782_v12  ;;  %1660 = vmatmul.msk.bf16.vlgmr.msrb.gmra.mxu0 %vm725_vm1, %v840_v19 }
 0x11f   : > { %914 = vmatpush.bf16.xpose.msrb.mxu3 %v905_v17 }
 0x12e   : > { %1662 = vmatmul.msk.bf16.vlgmr.msrb.gmra.mxu3 %vm725_vm1, %v898_v9 }
 0x193   : > { %v741_v20 = vpop.f32.mrf.mxu1 }
 0x194   : > { %v745_v22 = vmul.f32 0.35355338, %v741_v20 }
 0x196   : > { %v746_v23 = vadd.f32 %v745_v22, %v679_v21 }
 0x198   : > { %v747_v24 = vsel %vm725_vm1, %v746_v23, -inf }
 0x199   : > { %748 = vmax.xlane.f32.xlu1 %v747_v24 }
 0x19b   : > { %v743_v25 = vpop.f32.mrf.mxu1  ;;  %v858_v26 = vpop.f32.mrf.mxu0 }
 0x19c   : > { %v862_v31 = vmul.f32 0.35355338, %v858_v26 }
 0x19e   : > { %v863_v34 = vadd.f32 %v862_v31, %v679_v21  ;;  %v1738_v31 = vld [vmem:[%s2208_s6] sm:$0xff] }
 0x1a0   : > { %v864_v35 = vsel %vm725_vm1, %v863_v34, -inf }
 0x1a1   : > { %v800_v27 = vpop.f32.mrf.mxu3 }
 0x1a2   : > { %v804_v28 = vmul.f32 0.35355338, %v800_v27 }
 0x1a3   : > { %v860_v29 = vpop.f32.mrf.mxu0 }
 0x1a4   : > { %v805_v30 = vadd.f32 %v804_v28, %v679_v21 }
 0x1a6   : > { %v806_v32 = vsel %vm725_vm1, %v805_v30, -inf }
 0x1a7   : > { %807 = vmax.xlane.f32.xlu2 %v806_v32 }
 0x1a9   : > { %v802_v33 = vpop.f32.mrf.mxu3 }
 0x1af   : > { %865 = vmax.xlane.f32.xlu2 %v864_v35 }
 0x1b1   : > { %v916_v36 = vpop.f32.mrf.mxu3 }
 0x1b2   : > { %v920_v37 = vmul.f32 0.35355338, %v916_v36 }
 0x1b4   : > { %v921_v38 = vadd.f32 %v920_v37, %v679_v21 }
 0x1b6   : > { %v922_v39 = vsel %vm725_vm1, %v921_v38, -inf }
 0x1b7   : > { %923 = vmax.xlane.f32.xlu0 %v922_v39  ;;  %v1776_v39 = vld [vmem:[%s2209_s7] ss:$0 sm:$0xff] }
 0x1b9   : > { %v918_v40 = vpop.f32.mrf.mxu3 }
 0x1c7   : > { %759 = vrot.lane.b32.xlu2 %v1980_v7, %s1839_s0  ;;  %s2227_s0 = smov 16  }
 0x1cf   : > { %934 = vrot.lane.b32.xlu2 %v1980_v7, %s1840_s28  ;;  %s2226_s28 = smov 24  }
 0x20c   : > { %v749_v41 = vpop.xlane.xlu1 %748 }
 0x20d   : > { %v750_v42 = vsub.f32 %v746_v23, %v749_v41 }
 0x20f   : > { %v751_v43 = vmul.f32 1.442695, %v750_v42 }
 0x211   : > { %1784 = vpow2.f32 %v751_v43 }
 0x217   : > { %v1785_v44 = vpop.eup %1784 }
 0x218   : > { %v753_v45 = vsel %vm725_vm1, %v1785_v44, 0.0 }
 0x219   : > { %754 = vadd.xlane.f32.xlu1 %v753_v45  ;;  %v1846_v45 = vmov 32.0  }
 0x21a   : > { %v808_v46 = vpop.xlane.xlu2 %807 }
 0x21b   : > { %v809_v49 = vsub.f32 %v805_v30, %v808_v46  ;;  %v1739_v30 = vld [vmem:[%s2208_s6 + $0x8] sm:$0xff] }
 0x21c   : > { %1002 = vmatpush.bf16.msra.mxu0 %v1739_v30  ;;  %v1743_v46 = vld [vmem:[%s2212_s10 + $0x8] sm:$0xff] }
 0x21d   : > { %v810_v51 = vmul.f32 1.442695, %v809_v49  ;;  %1114 = vmatpush.bf16.msra.mxu3 %v1743_v46 }
 0x220   : > { %1003 = vmatpush.bf16.msra.mxu0 %v1738_v31 }
 0x222   : > { %v866_v47 = vpop.xlane.xlu2 %865 }
 0x223   : > { %v867_v48 = vsub.f32 %v863_v34, %v866_v47  ;;  %v1742_v47 = vld [vmem:[%s2212_s10] sm:$0xff] }
 0x224   : > { %1115 = vmatpush.bf16.msra.mxu3 %v1742_v47 }
 0x225   : > { %v868_v50 = vmul.f32 1.442695, %v867_v48 }
 0x227   : > { %1786 = vpow2.f32 %v868_v50 }
 0x228   : > { %1788 = vpow2.f32 %v810_v51 }
 0x22a   : > { %v760_v52 = vpop.permute.xlu2 %759  ;;  %v924_v53 = vpop.xlane.xlu0 %923 }
 0x22b   : > { %v766_v54 = vsel %vm764_vm2, %v760_v52, 0  ;;  %v925_v56 = vsub.f32 %v921_v38, %v924_v53 }
 0x22c   : > { %775 = vmatpush.bf16.msra.mxu2 %v766_v54 }
 0x22d   : > { %v1787_v55 = vpop.eup %1786  ;;  %v926_v58 = vmul.f32 1.442695, %v925_v56 }
 0x22e   : > { %v870_v57 = vsel %vm725_vm1, %v1787_v55, 0.0  ;;  %v1789_v59 = vpop.eup %1788 }
 0x22f   : > { %871 = vadd.xlane.f32.xlu0 %v870_v57  ;;  %1790 = vpow2.f32 %v926_v58  ;;  %v812_v60 = vsel %vm725_vm1, %v1789_v59, 0.0  ;;  %v678_v58 = vld [vmem:[%s663_s3] sm:$0xff]  ;;  %s675_s3 = scalar_lea.vmem %s2222_s20, %s1966_s26 }
 0x232   : > { %818 = vrot.lane.b32.xlu1 %v1980_v7, %s1841_s4  ;;  %v935_v5 = vpop.permute.xlu2 %934 }
 0x233   : > { %v940_v9 = vsel %vm764_vm2, %v935_v5, 0 }
 0x235   : > { %v1791_v61 = vpop.eup %1790 }
 0x236   : > { %v928_v62 = vsel %vm725_vm1, %v1791_v61, 0.0 }
 0x237   : > { %813 = vadd.xlane.f32.xlu0 %v812_v60  ;;  %v1741_v60 = vld [vmem:[%s2210_s8 + $0x8] sm:$0xff] }
 0x23f   : > { %929 = vadd.xlane.f32.xlu0 %v928_v62 }
 0x253   : > { %876 = vrot.lane.b32.xlu0 %v1980_v7, %s1842_s29  ;;  %s2244_s29 = smov 16  }
 0x28c   : > { %v755_v63 = vpop.xlane.xlu1 %754 }
 0x28d   : > { %1792 = vrcp.f32 %v755_v63 }
 0x293   : > { %v1793_v0 = vpop.eup %1792 }
 0x294   : > { %v757_v1 = vmul.f32 %v1793_v0, %v1785_v44 }
 0x296   : > { %v758_v3 = vpack.c.bf16 %v757_v1, %v757_v1 }
 0x298   : > { %1657 = vmatmul.msk.bf16.vlgmr.msra.gmra.mxu2 %vm725_vm1, %v758_v3 }
 0x2a2   : > { %v872_v4 = vpop.xlane.xlu0 %871 }
 0x2a4   : > { %v819_v6 = vpop.permute.xlu1 %818 }
 0x2a5   : > { %v824_v8 = vsel %vm764_vm2, %v819_v6, 0 }
 0x2a6   : > { %833 = vmatpush.bf16.msrb.mxu2 %v824_v8 }
 0x2aa   : > { %949 = vmatpush.bf16.msra.mxu2 %v940_v9  ;;  %v814_v10 = vpop.xlane.xlu0 %813  ;;  %v2076_v9 = vld [vmem:[%s2220_s18] ss:$0 sm:$0xff] }
 0x2ab   : > { %1794 = vrcp.f32 %v814_v10 }
 0x2b1   : > { %v1795_v11 = vpop.eup %1794 }
 0x2b2   : > { %v816_v7 = vmul.f32 %v1795_v11, %v1789_v59  ;;  %v930_v12 = vpop.xlane.xlu0 %929  ;;  %v1089_v59 = vpack.c.bf16 %v678_v58, %v678_v58 }
 0x2b3   : > { %1796 = vrcp.f32 %v930_v12 }
 0x2b4   : > { %v817_v13 = vpack.c.bf16 %v816_v7, %v816_v7  ;;  %1798 = vrcp.f32 %v872_v4  ;;  %1690 = vmatmul.msk.bf16.vlgmr.msra.gmra.mxu3 %vm704_vm0, %v1089_v59  ;;  %v2081_v7 = vld [vmem:[%s2221_s19] ss:$0 sm:$0xff] }
 0x2b5   : > { %1800 = vrcp.f32 %v1846_v45 }
 0x2b6   : > { %1659 = vmatmul.msk.bf16.vlgmr.msrb.gmra.mxu2 %vm725_vm1, %v817_v13 }
 0x2b9   : > { %v1797_v14 = vpop.eup %1796 }
 0x2ba   : > { %v932_v15 = vmul.f32 %v1797_v14, %v1791_v61  ;;  %v1799_v16 = vpop.eup %1798  ;;  %v1740_v61 = vld [vmem:[%s2210_s8] sm:$0xff] }
 0x2bb   : > { %v874_v17 = vmul.f32 %v1799_v16, %v1787_v55  ;;  %v1801_v48 = vpop.eup %1800 }
 0x2bc   : > { %v933_v18 = vpack.c.bf16 %v932_v15, %v932_v15  ;;  %vm1018_vm5 = vweird.f32 %v1801_v48  ;;  %v1779_v15 = vld [vmem:[%s2213_s11] ss:$0 sm:$0xff] }
 0x2bd   : > { %v875_v21 = vpack.c.bf16 %v874_v17, %v874_v17 }
 0x2c5   : > { %v877_v19 = vpop.permute.xlu0 %876 }
 0x2c6   : > { %1663 = vmatmul.msk.bf16.vlgmr.msra.gmra.mxu2 %vm725_vm1, %v933_v18  ;;  %v882_v20 = vsel %vm764_vm2, %v877_v19, 0 }
 0x2c7   : > { %891 = vmatpush.bf16.msrb.mxu1 %v882_v20 }
 0x2ca   : > { %1661 = vmatmul.msk.bf16.vlgmr.msrb.gmra.mxu1 %vm725_vm1, %v875_v21  ;;  %v1780_v21 = vld [vmem:[%s2211_s9] ss:$0 sm:$0xff] }
 0x2cb   : > { %1077 = vmatpush.bf16.msra.mxu1 %v1741_v60 }
 0x2cf   : > { %1078 = vmatpush.bf16.msra.mxu1 %v1740_v61 }
 0x31b   : > { %v777_v22 = vpop.f32.mrf.mxu2 }
 0x323   : > { %v779_v23 = vpop.f32.mrf.mxu2 }
 0x337   : > { %v1117_v16 = vpop.f32.mrf.mxu3 }
 0x338   : > { %v1118_v17 = vadd.f32 %v1779_v15, %v1117_v16 }
 0x339   : > { %v835_v24 = vpop.f32.mrf.mxu2 }
 0x33a   : > { %956 = vrot.lane.b32.xlu1 %v835_v24, %s2228_s30  ;;  %v2089_v18 = vpack.c.bf16 %v1118_v17, %v1118_v17  ;;  %s2243_s30 = smov 8  }
 0x33c   : > { %1181 = vrot.lane.b32.xlu0 %v2089_v18, %s1833_s22  ;;  %v1127_v19 = vsel %vm725_vm1, %v2089_v18, 0 }
 0x33d   : > { %1136 = vmatpush.bf16.xpose.msrb.mxu2 %v1127_v19 }
 0x33f   : > { %v1119_v20 = vpop.f32.mrf.mxu3 }
 0x341   : > { %v837_v25 = vpop.f32.mrf.mxu2 }
 0x344   : > { %1239 = vrot.lane.b32.xlu0 %v2089_v18, %s1838_s27 }
 0x347   : > { %v893_v26 = vpop.f32.mrf.mxu1 }
 0x348   : > { %960 = vrot.lane.b32.xlu2 %v893_v26, %s2227_s0 }
 0x349   : > { %v951_v27 = vpop.f32.mrf.mxu2 }
 0x34a   : > { %964 = vrot.lane.b32.xlu1 %v951_v27, %s2226_s28 }
 0x34f   : > { %v895_v28 = vpop.f32.mrf.mxu1 }
 0x351   : > { %v953_v29 = vpop.f32.mrf.mxu2 }
 0x3a2   : > { %v961_v34 = vpop.permute.xlu2 %960 }
 0x3ac   : > { %v957_v32 = vpop.permute.xlu1 %956 }
 0x3ad   : > { %v967_v33 = vsel %vm725_vm1, %v777_v22, %v957_v32 }
 0x3ae   : > { %v969_v36 = vsel %vm968_vm3, %v967_v33, %v961_v34  ;;  %v1182_v26 = vpop.permute.xlu0 %1181 }
 0x3af   : > { %v1187_v27 = vsel %vm725_vm1, %v1182_v26, 0 }
 0x3b0   : > { %1196 = vmatpush.bf16.xpose.msrb.mxu1 %v1187_v27 }
 0x3b6   : > { %v1240_v28 = vpop.permute.xlu0 %1239 }
 0x3b7   : > { %v1245_v29 = vsel %vm725_vm1, %v1240_v28, 0 }
 0x3b8   : > { %1254 = vmatpush.bf16.xpose.msra.mxu2 %v1245_v29 }
 0x3bc   : > { %v965_v35 = vpop.permute.xlu1 %964 }
 0x3bd   : > { %v971_v37 = vsel %vm970_vm4, %v969_v36, %v965_v35 }
 0x3be   : > { %v977_v38 = vpack.c.bf16 %v971_v37, %v971_v37 }
 0x3c0   : > { %1672 = vmatmul.msk.bf16.vlgmr.msra.gmra.mxu0 %vm704_vm0, %v977_v38 }
 0x43d   : > { %v1005_v40 = vpop.f32.mrf.mxu0 }
 0x43e   : > { %v1006_v41 = vadd.f32 %v1776_v39, %v1005_v40 }
 0x440   : > { %v2046_v42 = vadd.f32 %v1006_v41, %v1972_v2  ;;  %v1014_v2 = vmul.f32 32.0, %v1801_v48 }
 0x442   : > { %v1010_v43 = vsel %vm704_vm0, %v2046_v42, 0.0  ;;  %v1015_v49 = vsub.f32 1.0, %v1014_v2 }
 0x443   : > { %1011 = vadd.xlane.f32.xlu2 %v1010_v43 }
 0x444   : > { %v1016_v50 = vmul.f32 %v1801_v48, %v1015_v49 }
 0x445   : > { %v1007_v44 = vpop.f32.mrf.mxu0 }
 0x446   : > { %v1017_v51 = vadd.f32 %v1801_v48, %v1016_v50 }
 0x448   : > { %v2056_v52 = vsel %vm1018_vm5, %v1801_v48, %v1017_v51 }
 0x4b6   : > { %v1012_v53 = vpop.xlane.xlu2 %1011 }
 0x4b7   : > { %v1020_v54 = vmul.f32 %v2056_v52, %v1012_v53 }
 0x4b9   : > { %v1021_v55 = vsub.f32 %v2046_v42, %v1020_v54 }
 0x4bb   : > { %v1022_v56 = vmul.f32 %v1021_v55, %v1021_v55 }
 0x4bd   : > { %v1023_v57 = vsel %vm704_vm0, %v1022_v56, 0.0 }
 0x4be   : > { %1024 = vadd.xlane.f32.xlu1 %v1023_v57 }
 0x531   : > { %v1025_v62 = vpop.xlane.xlu1 %1024 }
 0x532   : > { %v1026_v63 = vmul.f32 %v1025_v62, %v2056_v52 }
 0x534   : > { %v1027_v0 = vadd.f32 1e-06, %v1026_v63 }
 0x536   : > { %1802 = vrsqrt.f32 %v1027_v0  ;;  %vm1034_vm7 = vweird.f32 %v1027_v0 }
 0x53c   : > { %v1803_v1 = vpop.eup %1802 }
 0x53d   : > { %v1029_v3 = vmul.f32 %v1803_v1, %v1027_v0  ;;  %vm1035_vm6 = vweird.f32 %v1803_v1 }
 0x53e   : > { %vm1036_vm8 = vmor %vm1034_vm7, %vm1035_vm6 }
 0x53f   : > { %v1030_v4 = vmul.f32 %v1803_v1, %v1029_v3 }
 0x541   : > { %v1031_v5 = vmul.f32 0.5, %v1030_v4 }
 0x543   : > { %v1032_v6 = vsub.f32 1.5, %v1031_v5 }
 0x545   : > { %v1033_v8 = vmul.f32 %v1803_v1, %v1032_v6 }
 0x547   : > { %v1037_v10 = vsel %vm1036_vm8, %v1803_v1, %v1033_v8 }
 0x548   : > { %v1038_v11 = vmul.f32 %v1037_v10, %v1021_v55 }
 0x54a   : > { %v1042_v12 = vmul.f32 %v2076_v9, %v1038_v11 }
 0x54c   : > { %v1046_v13 = vadd.f32 %v2081_v7, %v1042_v12 }
 0x54e   : > { %v1052_v14 = vpack.c.bf16 %v1046_v13, %v1046_v13 }
 0x550   : > { %1681 = vmatmul.msk.bf16.vlgmr.msra.gmra.mxu1 %vm704_vm0, %v1052_v14 }
 0x5cd   : > { %v1080_v22 = vpop.f32.mrf.mxu1 }
 0x5ce   : > { %v1081_v23 = vadd.f32 %v1780_v21, %v1080_v22 }
 0x5d0   : > { %v1121_v24 = vpack.c.bf16 %v1081_v23, %v1081_v23 }
 0x5d2   : > { %1295 = vrot.lane.b32.xlu2 %v1121_v24, %s1832_s21  ;;  %1179 = vrot.lane.b32.xlu0 %v1121_v24, %s1833_s22 }
 0x5d3   : > { %1691 = vmatmul.msk.bf16.vlgmr.msrb.gmra.mxu2 %vm725_vm1, %v1121_v24 }
 0x5d5   : > { %v1082_v25 = vpop.f32.mrf.mxu1 }
 0x5da   : > { %1297 = vrot.lane.b32.xlu0 %v2089_v18, %s1832_s21  ;;  %s2239_s21 = sld [smem:[#allocation5_spill]] }
 0x5e0   : > { %s671_s28 = scalar_lea.vmem %s2239_s21, %s1966_s26 }
 0x5e1   : > { %v680_v36 = vld [vmem:[%s671_s28] sm:$0xff] }
 0x5e2   : > { %1237 = vrot.lane.b32.xlu0 %v1121_v24, %s1838_s27  ;;  %s2240_s27 = smov 72  }
 0x62c   : > { %v1296_v33 = vpop.permute.xlu2 %1295 }
 0x644   : > { %v1180_v30 = vpop.permute.xlu0 %1179 }
 0x645   : > { %1693 = vmatmul.msk.bf16.vlgmr.msrb.gmra.mxu1 %vm725_vm1, %v1180_v30 }
 0x64c   : > { %v1298_v31 = vpop.permute.xlu0 %1297 }
 0x64d   : > { %v1303_v32 = vsel %vm725_vm1, %v1298_v31, 0 }
 0x64e   : > { %1312 = vmatpush.bf16.xpose.msra.mxu1 %v1303_v32 }
 0x654   : > { %v1238_v34 = vpop.permute.xlu0 %1237 }
 0x655   : > { %1695 = vmatmul.msk.bf16.vlgmr.msra.gmra.mxu2 %vm725_vm1, %v1238_v34  ;;  %1697 = vmatmul.msk.bf16.vlgmr.msra.gmra.mxu1 %vm725_vm1, %v1296_v33 }
 0x656   : > { %v1138_v35 = vpop.f32.mrf.mxu2 }
 0x657   : > { %v1142_v37 = vmul.f32 0.35355338, %v1138_v35 }
 0x659   : > { %v1143_v38 = vadd.f32 %v1142_v37, %v680_v36 }
 0x65b   : > { %v1144_v39 = vsel %vm725_vm1, %v1143_v38, -inf }
 0x65c   : > { %1145 = vmax.xlane.f32.xlu0 %v1144_v39 }
 0x65e   : > { %v1140_v40 = vpop.f32.mrf.mxu2 }
 0x670   : > { %1157 = vrot.lane.b32.xlu0 %v2089_v18, %s1834_s23  ;;  %s2241_s23 = smov 88  }
 0x678   : > { %1332 = vrot.lane.b32.xlu0 %v2089_v18, %s2240_s27 }
 0x6c2   : > { %v1198_v41 = vpop.f32.mrf.mxu1 }
 0x6c3   : > { %v1202_v43 = vmul.f32 0.35355338, %v1198_v41 }
 0x6c5   : > { %v1203_v44 = vadd.f32 %v1202_v43, %v680_v36 }
 0x6c7   : > { %v1204_v45 = vsel %vm725_vm1, %v1203_v44, -inf }
 0x6c8   : > { %1205 = vmax.xlane.f32.xlu1 %v1204_v45 }
 0x6ca   : > { %v1200_v46 = vpop.f32.mrf.mxu1 }
 0x6cf   : > { %v1146_v2 = vpop.xlane.xlu0 %1145 }
 0x6d0   : > { %v1147_v53 = vsub.f32 %v1143_v38, %v1146_v2  ;;  %v1745_v2 = vld [vmem:[%s2214_s12 + $0x8] sm:$0xff] }
 0x6d1   : > { %1398 = vmatpush.bf16.msrb.mxu2 %v1745_v2 }
 0x6d2   : > { %v1314_v47 = vpop.f32.mrf.mxu1  ;;  %v1148_v56 = vmul.f32 1.442695, %v1147_v53 }
 0x6d3   : > { %v1318_v54 = vmul.f32 0.35355338, %v1314_v47 }
 0x6d4   : > { %1804 = vpow2.f32 %v1148_v56 }
 0x6d5   : > { %v1319_v58 = vadd.f32 %v1318_v54, %v680_v36 }
 0x6d7   : > { %v1320_v61 = vsel %vm725_vm1, %v1319_v58, -inf }
 0x6d8   : > { %v1256_v48 = vpop.f32.mrf.mxu2 }
 0x6d9   : > { %v1260_v49 = vmul.f32 0.35355338, %v1256_v48 }
 0x6da   : > { %v1316_v50 = vpop.f32.mrf.mxu1  ;;  %v1805_v62 = vpop.eup %1804 }
 0x6db   : > { %v1261_v51 = vadd.f32 %v1260_v49, %v680_v36  ;;  %v1150_v63 = vsel %vm725_vm1, %v1805_v62, 0.0  ;;  %v1744_v49 = vld [vmem:[%s2214_s12] sm:$0xff] }
 0x6dc   : > { %1399 = vmatpush.bf16.msrb.mxu2 %v1744_v49 }
 0x6dd   : > { %v1262_v55 = vsel %vm725_vm1, %v1261_v51, -inf }
 0x6de   : > { %1263 = vmax.xlane.f32.xlu1 %v1262_v55 }
 0x6e0   : > { %v1258_v57 = vpop.f32.mrf.mxu2 }
 0x6e2   : > { %v1158_v59 = vpop.permute.xlu0 %1157 }
 0x6e3   : > { %v1163_v60 = vsel %vm764_vm2, %v1158_v59, 0 }
 0x6e4   : > { %1172 = vmatpush.bf16.msrb.mxu0 %v1163_v60 }
 0x6e6   : > { %1321 = vmax.xlane.f32.xlu1 %v1320_v61 }
 0x6ea   : > { %v1333_v23 = vpop.permute.xlu0 %1332 }
 0x6eb   : > { %v1338_v26 = vsel %vm764_vm2, %v1333_v23, 0 }
 0x6ee   : > { %1151 = vadd.xlane.f32.xlu1 %v1150_v63 }
 0x707   : > { %1216 = vrot.lane.b32.xlu1 %v2089_v18, %s2241_s23 }
 0x73b   : > { %v1206_v0 = vpop.xlane.xlu1 %1205 }
 0x73c   : > { %v1207_v1 = vsub.f32 %v1203_v44, %v1206_v0 }
 0x73e   : > { %v1208_v3 = vmul.f32 1.442695, %v1207_v1 }
 0x740   : > { %1806 = vpow2.f32 %v1208_v3 }
 0x746   : > { %v1807_v4 = vpop.eup %1806 }
 0x747   : > { %v1210_v5 = vsel %vm725_vm1, %v1807_v4, 0.0 }
 0x748   : > { %1211 = vadd.xlane.f32.xlu2 %v1210_v5 }
 0x751   : > { %v1264_v6 = vpop.xlane.xlu1 %1263 }
 0x752   : > { %v1265_v8 = vsub.f32 %v1261_v51, %v1264_v6  ;;  %v1747_v6 = vld [vmem:[%s2216_s14 + $0x8] sm:$0xff] }
 0x754   : > { %v1266_v10 = vmul.f32 1.442695, %v1265_v8  ;;  %v1751_v8 = vld [vmem:[%s2218_s16 + $0x18] sm:$0xff] }
 0x755   : > { %1513 = vmatpush.bf16.msrb.mxu1 %v1751_v8 }
 0x756   : > { %1808 = vpow2.f32 %v1266_v10 }
 0x759   : > { %v1322_v11 = vpop.xlane.xlu1 %1321 }
 0x75a   : > { %v1323_v12 = vsub.f32 %v1319_v58, %v1322_v11  ;;  %v1781_v58 = vld [vmem:[%s2215_s13] ss:$0 sm:$0xff] }
 0x75c   : > { %v1809_v13 = vpop.eup %1808  ;;  %v1324_v14 = vmul.f32 1.442695, %v1323_v12  ;;  %v1750_v12 = vld [vmem:[%s2218_s16 + $0x10] sm:$0xff] }
 0x75d   : > { %v1268_v15 = vsel %vm725_vm1, %v1809_v13, 0.0  ;;  %1514 = vmatpush.bf16.msrb.mxu1 %v1750_v12 }
 0x75e   : > { %1810 = vpow2.f32 %v1324_v14  ;;  %1269 = vadd.xlane.f32.xlu2 %v1268_v15 }
 0x761   : > { %v1152_v16 = vpop.xlane.xlu1 %1151 }
 0x762   : > { %1812 = vrcp.f32 %v1152_v16 }
 0x764   : > { %v1811_v17 = vpop.eup %1810 }
 0x765   : > { %v1326_v19 = vsel %vm725_vm1, %v1811_v17, 0.0 }
 0x766   : > { %1327 = vadd.xlane.f32.xlu1 %v1326_v19 }
 0x768   : > { %v1813_v20 = vpop.eup %1812 }
 0x769   : > { %v1154_v21 = vmul.f32 %v1813_v20, %v1805_v62 }
 0x76b   : > { %v1155_v22 = vpack.c.bf16 %v1154_v21, %v1154_v21 }
 0x76d   : > { %1692 = vmatmul.msk.bf16.vlgmr.msrb.gmra.mxu0 %vm725_vm1, %v1155_v22 }
 0x776   : > { %1274 = vrot.lane.b32.xlu2 %v2089_v18, %s2242_s25 }
 0x779   : > { %v1217_v24 = vpop.permute.xlu1 %1216 }
 0x77a   : > { %v1222_v25 = vsel %vm764_vm2, %v1217_v24, 0 }
 0x77b   : > { %1231 = vmatpush.bf16.msrb.mxu3 %v1222_v25 }
 0x77f   : > { %1347 = vmatpush.bf16.msra.mxu3 %v1338_v26  ;;  %v1749_v26 = vld [vmem:[%s2218_s16 + $0x8] sm:$0xff] }
 0x780   : > { %1515 = vmatpush.bf16.msrb.mxu1 %v1749_v26 }
 0x7bb   : > { %v1212_v27 = vpop.xlane.xlu2 %1211 }
 0x7bc   : > { %1814 = vrcp.f32 %v1212_v27  ;;  %v1748_v27 = vld [vmem:[%s2218_s16] sm:$0xff] }
 0x7bd   : > { %1516 = vmatpush.bf16.msrb.mxu1 %v1748_v27 }
 0x7c2   : > { %v1815_v28 = vpop.eup %1814 }
 0x7c3   : > { %v1214_v29 = vmul.f32 %v1815_v28, %v1807_v4  ;;  %v1782_v28 = vld [vmem:[%s2217_s15] ss:$0 sm:$0xff] }
 0x7c5   : > { %v1215_v30 = vpack.c.bf16 %v1214_v29, %v1214_v29 }
 0x7c7   : > { %1694 = vmatmul.msk.bf16.vlgmr.msrb.gmra.mxu3 %vm725_vm1, %v1215_v30 }
 0x7d1   : > { %v1270_v31 = vpop.xlane.xlu2 %1269 }
 0x7d2   : > { %1816 = vrcp.f32 %v1270_v31 }
 0x7d8   : > { %v1817_v32 = vpop.eup %1816 }
 0x7d9   : > { %v1272_v33 = vmul.f32 %v1817_v32, %v1809_v13  ;;  %v1275_v18 = vpop.permute.xlu2 %1274  ;;  %v1328_v34 = vpop.xlane.xlu1 %1327 }
 0x7da   : > { %v1280_v35 = vsel %vm764_vm2, %v1275_v18, 0  ;;  %1818 = vrcp.f32 %v1328_v34  ;;  %v1783_v18 = vld [vmem:[%s2219_s17] ss:$0 sm:$0xff] }
 0x7db   : > { %v1273_v36 = vpack.c.bf16 %v1272_v33, %v1272_v33  ;;  %1289 = vmatpush.bf16.msra.mxu0 %v1280_v35 }
 0x7de   : > { %1696 = vmatmul.msk.bf16.vlgmr.msra.gmra.mxu0 %vm725_vm1, %v1273_v36 }
 0x7df   : > { %1460 = vmatpush.bf16.msrb.mxu0 %v1747_v6 }
 0x7e0   : > { %v1819_v37 = vpop.eup %1818 }
 0x7e1   : > { %v1330_v38 = vmul.f32 %v1819_v37, %v1811_v17 }
 0x7e3   : > { %v1331_v39 = vpack.c.bf16 %v1330_v38, %v1330_v38 }
 0x7e5   : > { %1698 = vmatmul.msk.bf16.vlgmr.msra.gmra.mxu3 %vm725_vm1, %v1331_v39 }
 0x7ea   : > { %v1174_v40 = vpop.f32.mrf.mxu0 }
 0x7f2   : > { %v1176_v41 = vpop.f32.mrf.mxu0 }
 0x84a   : > { %v1233_v43 = vpop.f32.mrf.mxu3 }
 0x84b   : > { %1354 = vrot.lane.b32.xlu0 %v1233_v43, %s2243_s30 }
 0x852   : > { %v1235_v44 = vpop.f32.mrf.mxu3 }
 0x85b   : > { %v1291_v45 = vpop.f32.mrf.mxu0 }
 0x85c   : > { %1358 = vrot.lane.b32.xlu0 %v1291_v45, %s2244_s29 }
 0x863   : > { %v1293_v46 = vpop.f32.mrf.mxu0 }
 0x868   : > { %v1349_v47 = vpop.f32.mrf.mxu3 }
 0x869   : > { %1362 = vrot.lane.b32.xlu0 %v1349_v47, %s2245_s24 }
 0x870   : > { %v1351_v48 = vpop.f32.mrf.mxu3 }
 0x8bd   : > { %v1355_v50 = vpop.permute.xlu0 %1354 }
 0x8be   : > { %v1365_v53 = vsel %vm725_vm1, %v1174_v40, %v1355_v50 }
 0x8ce   : > { %v1359_v51 = vpop.permute.xlu0 %1358 }
 0x8cf   : > { %v1366_v54 = vsel %vm968_vm3, %v1365_v53, %v1359_v51 }
 0x8db   : > { %v1363_v55 = vpop.permute.xlu0 %1362 }
 0x8dc   : > { %v1367_v56 = vsel %vm970_vm4, %v1366_v54, %v1363_v55 }
 0x8dd   : > { %v1373_v57 = vpack.c.bf16 %v1367_v56, %v1367_v56 }
 0x8df   : > { %1707 = vmatmul.msk.bf16.vlgmr.msrb.gmra.mxu2 %vm704_vm0, %v1373_v57 }
 0x962   : > { %v1401_v59 = vpop.f32.mrf.mxu2 }
 0x963   : > { %v1402_v60 = vadd.f32 %v1781_v58, %v1401_v59 }
 0x965   : > { %v1405_v61 = vadd.f32 %v1402_v60, %v2046_v42  ;;  %v1746_v42 = vld [vmem:[%s2216_s14] sm:$0xff] }
 0x966   : > { %1461 = vmatpush.bf16.msrb.mxu0 %v1746_v42 }
 0x967   : > { %v1406_v62 = vsel %vm704_vm0, %v1405_v61, 0.0 }
 0x968   : > { %1407 = vadd.xlane.f32.xlu2 %v1406_v62 }
 0x96a   : > { %v1403_v63 = vpop.f32.mrf.mxu2 }
 0x9db   : > { %v1408_v0 = vpop.xlane.xlu2 %1407 }
 0x9dc   : > { %v1409_v1 = vmul.f32 %v1408_v0, %v2056_v52 }
 0x9de   : > { %v1410_v3 = vsub.f32 %v1405_v61, %v1409_v1 }
 0x9e0   : > { %v1411_v4 = vmul.f32 %v1410_v3, %v1410_v3 }
 0x9e2   : > { %v1412_v5 = vsel %vm704_vm0, %v1411_v4, 0.0 }
 0x9e3   : > { %1413 = vadd.xlane.f32.xlu0 %v1412_v5 }
 0xa56   : > { %v1414_v10 = vpop.xlane.xlu0 %1413 }
 0xa57   : > { %v1415_v11 = vmul.f32 %v1414_v10, %v2056_v52 }
 0xa59   : > { %v1416_v13 = vadd.f32 1e-06, %v1415_v11 }
 0xa5b   : > { %1820 = vrsqrt.f32 %v1416_v13  ;;  %vm1423_vm10 = vweird.f32 %v1416_v13 }
 0xa61   : > { %v1821_v14 = vpop.eup %1820 }
 0xa62   : > { %v1418_v15 = vmul.f32 %v1821_v14, %v1416_v13  ;;  %vm1424_vm9 = vweird.f32 %v1821_v14 }
 0xa63   : > { %vm1425_vm11 = vmor %vm1423_vm10, %vm1424_vm9 }
 0xa64   : > { %v1419_v16 = vmul.f32 %v1821_v14, %v1418_v15 }
 0xa66   : > { %v1420_v17 = vmul.f32 0.5, %v1419_v16 }
 0xa68   : > { %v1421_v19 = vsub.f32 1.5, %v1420_v17 }
 0xa6a   : > { %v1422_v20 = vmul.f32 %v1821_v14, %v1421_v19 }
 0xa6c   : > { %v1426_v21 = vsel %vm1425_vm11, %v1821_v14, %v1422_v20 }
 0xa6d   : > { %v1427_v22 = vmul.f32 %v1426_v21, %v1410_v3 }
 0xa6f   : > { %v1428_v23 = vmul.f32 %v2076_v9, %v1427_v22 }
 0xa71   : > { %v1429_v24 = vadd.f32 %v2081_v7, %v1428_v23 }
 0xa73   : > { %v1435_v25 = vpack.c.bf16 %v1429_v24, %v1429_v24 }
 0xa75   : > { %1716 = vmatmul.msk.bf16.vlgmr.msrb.gmra.mxu0 %vm704_vm0, %v1435_v25 }
 0xaf2   : > { %v1463_v29 = vpop.f32.mrf.mxu0 }
 0xaf3   : > { %v1464_v30 = vadd.f32 %v1782_v28, %v1463_v29 }
 0xaf5   : > { %v1467_v31 = vmax.f32 %v1464_v30, 0.0 }
 0xaf7   : > { %v1477_v32 = vpack.c.bf16 %v1467_v31, %v1467_v31 }
 0xaf9   : > { %1733 = vmatmul.msk.bf16.vlgmr.msrb.gmra.mxu1 %vm1505_vm12, %v1477_v32 }
 0xafa   : > { %v1465_v33 = vpop.f32.mrf.mxu0 }
 0xb76   : > { %v1518_v34 = vpop.f32.mrf.mxu1 }
 0xb77   : > { %v1519_v35 = vadd.f32 %v1783_v18, %v1518_v34 }
 0xb79   : > { %v1522_v36 = vadd.f32 %v1519_v35, %v1405_v61 }
 0xb7b   : > { %v1523_v37 = vsel %vm704_vm0, %v1522_v36, 0.0 }
 0xb7c   : > { %1524 = vadd.xlane.f32.xlu1 %v1523_v37 }
 0xb7e   : > { %v1520_v38 = vpop.f32.mrf.mxu1 }
 0xbef   : > { %v1525_v39 = vpop.xlane.xlu1 %1524 }
 0xbf0   : > { %v1526_v40 = vmul.f32 %v1525_v39, %v2056_v52 }
 0xbf2   : > { %v1527_v41 = vsub.f32 %v1522_v36, %v1526_v40 }
 0xbf4   : > { %v1528_v43 = vmul.f32 %v1527_v41, %v1527_v41 }
 0xbf6   : > { %v1529_v44 = vsel %vm704_vm0, %v1528_v43, 0.0 }
 0xbf7   : > { %1530 = vadd.xlane.f32.xlu1 %v1529_v44 }
 0xc6a   : > { %v1531_v45 = vpop.xlane.xlu1 %1530 }
 0xc6b   : > { %v1532_v46 = vmul.f32 %v1531_v45, %v2056_v52 }
 0xc6d   : > { %v1533_v47 = vadd.f32 1e-06, %v1532_v46 }
 0xc6f   : > { %1822 = vrsqrt.f32 %v1533_v47  ;;  %vm1540_vm14 = vweird.f32 %v1533_v47 }
 0xc75   : > { %v1823_v48 = vpop.eup %1822 }
 0xc76   : > { %v1535_v2 = vmul.f32 %v1823_v48, %v1533_v47  ;;  %vm1541_vm13 = vweird.f32 %v1823_v48 }
 0xc77   : > { %vm1542_vm15 = vmor %vm1540_vm14, %vm1541_vm13 }
 0xc78   : > { %v1536_v49 = vmul.f32 %v1823_v48, %v1535_v2 }
 0xc7a   : > { %v1537_v50 = vmul.f32 0.5, %v1536_v49 }
 0xc7c   : > { %v1538_v51 = vsub.f32 1.5, %v1537_v50 }
 0xc7e   : > { %v1539_v53 = vmul.f32 %v1823_v48, %v1538_v51 }
 0xc80   : > { %v1543_v54 = vsel %vm1542_vm15, %v1823_v48, %v1539_v53 }
 0xc81   : > { %v1544_v55 = vmul.f32 %v1543_v54, %v1527_v41 }
 0xc83   : > { %v1545_v56 = vmul.f32 %v2076_v9, %v1544_v55 }
 0xc85   : > { %v1546_v52 = vadd.f32 %v2081_v7, %v1545_v56 }
 0xc87   : > { %1547 = vst.msk [vmem:[%s675_s3] sm:$0xff] %vm704_vm0, %v1546_v52 }
 0xc88 PF: > { %s30_s1 = sadd.s32 1, %s1830_s1  }
 0xc89   : > { %p27_p4 = scmp.ge.s32.totalorder %s30_s1, 4  }
 0xc8b   :  { %29 = sbr.rel (!%p27_p4) target bundleno = 6 (0x6), region = 139 }

</bundles_post_ra>
